<compile_context>
chip_gen: v6e
topology: v6e:2x2x1
jax: 0.10.0
libtpu: 0.0.40
codegen_flags: <defaults>
</compile_context>

<pallas_src>
import jax
import jax.numpy as jnp
from jax.experimental import pallas as pl
from jax.experimental.pallas import tpu as pltpu

# ----------------------- model hyper-parameters ----------------------------
N_POSENC = 6
POSENC_DIM = 3 + 3 * 2 * N_POSENC       # 39
HIDDEN = 256
N_LAYERS = 8
SKIPS = (4,)
OUTPUT_CH = 4
TM_MAX = 4096                           # max points per kernel tile (multiple of 256)


def _posenc(x):
    """Positional encoding: [x, sin(2^i x), cos(2^i x)] for i in 0..5 (PyTorch order)."""
    feats = [x]
    for i in range(N_POSENC):
        s = (2.0 ** i) * x
        feats.append(jnp.sin(s))
        feats.append(jnp.cos(s))
    return jnp.concatenate(feats, axis=-1)


# ------------------------------- kernel -------------------------------------
def nerf_kernel(enc_ref,
                w0_ref, b0_ref, w1_ref, b1_ref, w2_ref, b2_ref, w3_ref, b3_ref,
                w4h_ref, w4e_ref, b4_ref,
                w5_ref, b5_ref, w6_ref, b6_ref, w7_ref, b7_ref,
                w8_ref, b8_ref,
                out_ref):
    def dense_relu(x_bf16, w_ref, b_ref):
        acc = jnp.dot(x_bf16, w_ref[...], preferred_element_type=jnp.float32)
        return jnp.maximum(acc + b_ref[...], 0.0).astype(jnp.bfloat16)

    h = dense_relu(enc_ref[...], w0_ref, b0_ref)         # (TM, 256)
    h = dense_relu(h, w1_ref, b1_ref)
    h = dense_relu(h, w2_ref, b2_ref)
    h = dense_relu(h, w3_ref, b3_ref)

    # Skip layer 4.  The module does torch.cat([out, curr_x], -1) (hidden first,
    # encoding second), so:  cat([h, enc]) @ W4 == h @ W4[:256] + enc @ W4[256:].
    # enc is re-read here (not kept live since layer 0) to shorten its live range.
    acc = (jnp.dot(h, w4h_ref[...], preferred_element_type=jnp.float32)
           + jnp.dot(enc_ref[...], w4e_ref[...], preferred_element_type=jnp.float32)
           + b4_ref[...])
    h = jnp.maximum(acc, 0.0).astype(jnp.bfloat16)

    h = dense_relu(h, w5_ref, b5_ref)
    h = dense_relu(h, w6_ref, b6_ref)
    h = dense_relu(h, w7_ref, b7_ref)

    # TODO(synk): on the 256-wide MXUs (v6e/v7x) this 256->4 head still occupies a
    # full MXU pass (~10% of per-tile MXU cycles); a VPU-multiply + XLU lane-reduce
    # could recover it, but needs a bundle-dump validation before committing.
    o = jnp.dot(h, w8_ref[...], preferred_element_type=jnp.float32) + b8_ref[...]
    # Heads fused into one (TM, 4) store: sigmoid on lanes 0..2, ReLU on lane 3.
    lane = jax.lax.broadcasted_iota(jnp.int32, o.shape, 1)
    out_ref[...] = jnp.where(lane < 3, jax.nn.sigmoid(o), jnp.maximum(o, 0.0))


# ------------------------------ parameters ----------------------------------
def init_params(key):
    """Deterministic xavier-uniform weights / PyTorch-style uniform biases.
    Weights stored as (in_dim, out_dim) so the forward does x @ W."""
    layer_in = [POSENC_DIM]
    for j in range(1, N_LAYERS):
        layer_in.append(HIDDEN + (POSENC_DIM if j in SKIPS else 0))
    layer_in.append(HIDDEN)
    layer_out = [HIDDEN] * N_LAYERS + [OUTPUT_CH]

    params = []
    for di, do in zip(layer_in, layer_out):
        key, kw, kb = jax.random.split(key, 3)
        limit = (6.0 / (di + do)) ** 0.5
        w = jax.random.uniform(kw, (di, do), jnp.float32, -limit, limit)
        bl = 1.0 / (di ** 0.5)
        b = jax.random.uniform(kb, (1, do), jnp.float32, -bl, bl)
        params.append((w, b))
    return params


# ------------------------------- wrapper -------------------------------------
def _choose_tm(n):
    """Biggest MXU-friendly tile <= TM_MAX that doesn't over-pad tiny batches."""
    tm = ((n + 255) // 256) * 256
    return max(256, min(TM_MAX, tm))


def nrf_forward(x, params):
    in_shape = x.shape
    pts = x.reshape(-1, 3).astype(jnp.float32)
    n = pts.shape[0]
    tm = _choose_tm(n)
    n_pad = pl.cdiv(n, tm) * tm
    pts_p = jnp.pad(pts, ((0, n_pad - n), (0, 0)))

    # Positional encoding precomputed (vectorized, f32) in XLA, cast to bf16;
    # the kernel stays MXU-bound (see header for why it is not done in-kernel).
    enc = _posenc(pts_p).astype(jnp.bfloat16)            # (n_pad, 39)

    # Assemble kernel params: bf16 weights (skip-layer weight split), f32 biases.
    flat = []
    for j, (w, b) in enumerate(params):
        if j in SKIPS:
            flat += [w[:HIDDEN].astype(jnp.bfloat16),     # rows for hidden ("out")
                     w[HIDDEN:].astype(jnp.bfloat16),     # rows for encoding
                     b.astype(jnp.float32)]
        else:
            flat += [w.astype(jnp.bfloat16), b.astype(jnp.float32)]

    in_specs = [pl.BlockSpec((tm, POSENC_DIM), lambda i: (i, 0))]
    for a in flat:
        # Grid-invariant full blocks; Pallas skips the re-DMA for unchanged indices.
        # TODO(synk): pipeline_mode=pl.Buffered(1) would halve their VMEM footprint.
        in_specs.append(pl.BlockSpec(a.shape, lambda i: (0, 0)))
    out_spec = pl.BlockSpec((tm, OUTPUT_CH), lambda i: (i, 0))

    flops = 2 * n_pad * (POSENC_DIM * HIDDEN
                         + 6 * HIDDEN * HIDDEN
                         + (HIDDEN + POSENC_DIM) * HIDDEN
                         + HIDDEN * OUTPUT_CH)
    bytes_accessed = (enc.size * 2 + n_pad * OUTPUT_CH * 4
                      + sum(int(a.size) * a.dtype.itemsize for a in flat))
    cost = pl.CostEstimate(flops=flops,
                           transcendentals=4 * n_pad,
                           bytes_accessed=bytes_accessed)

    out = pl.pallas_call(
        nerf_kernel,
        out_shape=jax.ShapeDtypeStruct((n_pad, OUTPUT_CH), jnp.float32),
        grid_spec=pltpu.PrefetchScalarGridSpec(
            num_scalar_prefetch=0,
            grid=(n_pad // tm,),
            in_specs=in_specs,
            out_specs=out_spec),
        compiler_params=pltpu.CompilerParams(
            dimension_semantics=("parallel",),
            # <= 48 MiB keeps the tiling safe on v7x (64 MiB VMEM/TC); v5e/v6e have
            # 128 MiB physical so this only matters as a lower bound there.
            vmem_limit_bytes=48 * 1024 * 1024),
        cost_estimate=cost,
    )(enc, *flat)

    rgb = out[:n, :3].reshape(in_shape[:-1] + (3,))
    dens = out[:n, 3].reshape(in_shape[:-1])
    return rgb, dens


# ----------------------------- pure-JAX reference ----------------------------
def nrf_ref(x, params):
    pts = x.reshape(-1, 3).astype(jnp.float32)
    enc = _posenc(pts)
    out = enc
    for j in range(N_LAYERS):
        if j in SKIPS:
            out = jnp.concatenate([out, enc], axis=-1)   # module: cat([out, curr_x])
        w, b = params[j]
        out = jnp.maximum(out @ w + b, 0.0)
    w, b = params[N_LAYERS]
    out = out @ w + b
    rgb = jax.nn.sigmoid(out[:, :3]).reshape(x.shape[:-1] + (3,))
    dens = jnp.maximum(out[:, 3], 0.0).reshape(x.shape[:-1])
    return rgb, dens


# --------------------------------- main ---------------------------------------
if __name__ == "__main__":
    key = jax.random.PRNGKey(0)
    kx, kx2, kp = jax.random.split(key, 3)
    params = init_params(kp)

    # Small NeRF-style input: (rays=2, samples_per_ray=8, xyz=3) -> single tile.
    x_small = jax.random.normal(kx, (2, 8, 3), dtype=jnp.float32)
    rgb, density = nrf_forward(x_small, params)
    jax.block_until_ready(rgb)
    jax.block_until_ready(density)
    rgb_ref, dens_ref = nrf_ref(x_small, params)
    assert rgb.shape == (2, 8, 3) and density.shape == (2, 8)
    # bf16 matmuls (f32 accumulation) vs f32 reference -> loosened tolerances.
    assert jnp.allclose(rgb, rgb_ref, atol=5e-2, rtol=5e-2)
    assert jnp.allclose(density, dens_ref, atol=1e-1, rtol=1e-1)

    # Multi-tile case: 2 * TM_MAX points -> grid of 2 (even, so it also shards
    # across both v7x TensorCores) exercising the i > 0 index_map path and the
    # per-tile output writeback.
    x_big = jax.random.normal(kx2, (2, TM_MAX, 3), dtype=jnp.float32)
    rgb2, dens2 = nrf_forward(x_big, params)
    jax.block_until_ready(rgb2)
    jax.block_until_ready(dens2)
    rgb2_ref, dens2_ref = nrf_ref(x_big, params)
    assert rgb2.shape == (2, TM_MAX, 3) and dens2.shape == (2, TM_MAX)
    assert jnp.allclose(rgb2, rgb2_ref, atol=5e-2, rtol=5e-2)
    assert jnp.allclose(dens2, dens2_ref, atol=1e-1, rtol=1e-1)

    print("KERNEL_OK")
</pallas_src>

<mosaic_0001>
module attributes {stable_mosaic.version = 11 : i64} {
  func.func @nerf_kernel(%arg0: i32, %arg1: memref<256x39xbf16, #tpu.memory_space<vmem>>, %arg2: memref<39x256xbf16, #tpu.memory_space<vmem>>, %arg3: memref<1x256xf32, #tpu.memory_space<vmem>>, %arg4: memref<256x256xbf16, #tpu.memory_space<vmem>>, %arg5: memref<1x256xf32, #tpu.memory_space<vmem>>, %arg6: memref<256x256xbf16, #tpu.memory_space<vmem>>, %arg7: memref<1x256xf32, #tpu.memory_space<vmem>>, %arg8: memref<256x256xbf16, #tpu.memory_space<vmem>>, %arg9: memref<1x256xf32, #tpu.memory_space<vmem>>, %arg10: memref<256x256xbf16, #tpu.memory_space<vmem>>, %arg11: memref<39x256xbf16, #tpu.memory_space<vmem>>, %arg12: memref<1x256xf32, #tpu.memory_space<vmem>>, %arg13: memref<256x256xbf16, #tpu.memory_space<vmem>>, %arg14: memref<1x256xf32, #tpu.memory_space<vmem>>, %arg15: memref<256x256xbf16, #tpu.memory_space<vmem>>, %arg16: memref<1x256xf32, #tpu.memory_space<vmem>>, %arg17: memref<256x256xbf16, #tpu.memory_space<vmem>>, %arg18: memref<1x256xf32, #tpu.memory_space<vmem>>, %arg19: memref<256x4xbf16, #tpu.memory_space<vmem>>, %arg20: memref<1x4xf32, #tpu.memory_space<vmem>>, %arg21: memref<256x4xf32, #tpu.memory_space<vmem>>) attributes {dimension_semantics = [#tpu.dimension_semantics<parallel>], iteration_bounds = array<i64: 1>, scalar_prefetch = 0 : i64, scratch_operands = 0 : i64, tpu.core_type = #tpu.core_type<tc>, window_params = [{transform_indices = @transform_0, window_bounds = array<i64: 256, 39>}, {pipeline_mode = #tpu.pipeline_mode<synchronous>, transform_indices = @transform_1, window_bounds = array<i64: 39, 256>}, {pipeline_mode = #tpu.pipeline_mode<synchronous>, transform_indices = @transform_2, window_bounds = array<i64: 1, 256>}, {pipeline_mode = #tpu.pipeline_mode<synchronous>, transform_indices = @transform_3, window_bounds = array<i64: 256, 256>}, {pipeline_mode = #tpu.pipeline_mode<synchronous>, transform_indices = @transform_4, window_bounds = array<i64: 1, 256>}, {pipeline_mode = #tpu.pipeline_mode<synchronous>, transform_indices = @transform_5, window_bounds = array<i64: 256, 256>}, {pipeline_mode = #tpu.pipeline_mode<synchronous>, transform_indices = @transform_6, window_bounds = array<i64: 1, 256>}, {pipeline_mode = #tpu.pipeline_mode<synchronous>, transform_indices = @transform_7, window_bounds = array<i64: 256, 256>}, {pipeline_mode = #tpu.pipeline_mode<synchronous>, transform_indices = @transform_8, window_bounds = array<i64: 1, 256>}, {pipeline_mode = #tpu.pipeline_mode<synchronous>, transform_indices = @transform_9, window_bounds = array<i64: 256, 256>}, {pipeline_mode = #tpu.pipeline_mode<synchronous>, transform_indices = @transform_10, window_bounds = array<i64: 39, 256>}, {pipeline_mode = #tpu.pipeline_mode<synchronous>, transform_indices = @transform_11, window_bounds = array<i64: 1, 256>}, {pipeline_mode = #tpu.pipeline_mode<synchronous>, transform_indices = @transform_12, window_bounds = array<i64: 256, 256>}, {pipeline_mode = #tpu.pipeline_mode<synchronous>, transform_indices = @transform_13, window_bounds = array<i64: 1, 256>}, {pipeline_mode = #tpu.pipeline_mode<synchronous>, transform_indices = @transform_14, window_bounds = array<i64: 256, 256>}, {pipeline_mode = #tpu.pipeline_mode<synchronous>, transform_indices = @transform_15, window_bounds = array<i64: 1, 256>}, {pipeline_mode = #tpu.pipeline_mode<synchronous>, transform_indices = @transform_16, window_bounds = array<i64: 256, 256>}, {pipeline_mode = #tpu.pipeline_mode<synchronous>, transform_indices = @transform_17, window_bounds = array<i64: 1, 256>}, {pipeline_mode = #tpu.pipeline_mode<synchronous>, transform_indices = @transform_18, window_bounds = array<i64: 256, 4>}, {pipeline_mode = #tpu.pipeline_mode<synchronous>, transform_indices = @transform_19, window_bounds = array<i64: 1, 4>}, {transform_indices = @transform_20, window_bounds = array<i64: 256, 4>}]} {
    %c0 = arith.constant 0 : index
    %c0_0 = arith.constant 0 : index
    %0 = vector.load %arg1[%c0, %c0_0] : memref<256x39xbf16, #tpu.memory_space<vmem>>, vector<256x39xbf16>
    %c0_1 = arith.constant 0 : index
    %c0_2 = arith.constant 0 : index
    %1 = vector.load %arg2[%c0_1, %c0_2] : memref<39x256xbf16, #tpu.memory_space<vmem>>, vector<39x256xbf16>
    %cst = arith.constant dense<0.000000e+00> : vector<256x256xf32>
    %2 = tpu.matmul %0, %1, %cst {dimension_numbers = #tpu.dot_dimension_numbers<[1], [0], [0], [1], [0, 0, 1, 1], [], []>} : vector<256x39xbf16>, vector<39x256xbf16>, vector<256x256xf32> -> vector<256x256xf32>
    %c0_3 = arith.constant 0 : index
    %c0_4 = arith.constant 0 : index
    %3 = vector.load %arg3[%c0_3, %c0_4] : memref<1x256xf32, #tpu.memory_space<vmem>>, vector<1x256xf32>
    %4 = vector.broadcast %3 : vector<1x256xf32> to vector<256x256xf32>
    %5 = arith.addf %2, %4 : vector<256x256xf32>
    %cst_5 = arith.constant 0.000000e+00 : f32
    %6 = vector.broadcast %cst_5 : f32 to vector<256x256xf32>
    %7 = arith.maximumf %5, %6 : vector<256x256xf32>
    %8 = arith.truncf %7 : vector<256x256xf32> to vector<256x256xbf16>
    %c0_6 = arith.constant 0 : index
    %c0_7 = arith.constant 0 : index
    %9 = vector.load %arg4[%c0_6, %c0_7] : memref<256x256xbf16, #tpu.memory_space<vmem>>, vector<256x256xbf16>
    %cst_8 = arith.constant dense<0.000000e+00> : vector<256x256xf32>
    %10 = tpu.matmul %8, %9, %cst_8 {dimension_numbers = #tpu.dot_dimension_numbers<[1], [0], [0], [1], [0, 0, 1, 1], [], []>} : vector<256x256xbf16>, vector<256x256xbf16>, vector<256x256xf32> -> vector<256x256xf32>
    %c0_9 = arith.constant 0 : index
    %c0_10 = arith.constant 0 : index
    %11 = vector.load %arg5[%c0_9, %c0_10] : memref<1x256xf32, #tpu.memory_space<vmem>>, vector<1x256xf32>
    %12 = vector.broadcast %11 : vector<1x256xf32> to vector<256x256xf32>
    %13 = arith.addf %10, %12 : vector<256x256xf32>
    %cst_11 = arith.constant 0.000000e+00 : f32
    %14 = vector.broadcast %cst_11 : f32 to vector<256x256xf32>
    %15 = arith.maximumf %13, %14 : vector<256x256xf32>
    %16 = arith.truncf %15 : vector<256x256xf32> to vector<256x256xbf16>
    %c0_12 = arith.constant 0 : index
    %c0_13 = arith.constant 0 : index
    %17 = vector.load %arg6[%c0_12, %c0_13] : memref<256x256xbf16, #tpu.memory_space<vmem>>, vector<256x256xbf16>
    %cst_14 = arith.constant dense<0.000000e+00> : vector<256x256xf32>
    %18 = tpu.matmul %16, %17, %cst_14 {dimension_numbers = #tpu.dot_dimension_numbers<[1], [0], [0], [1], [0, 0, 1, 1], [], []>} : vector<256x256xbf16>, vector<256x256xbf16>, vector<256x256xf32> -> vector<256x256xf32>
    %c0_15 = arith.constant 0 : index
    %c0_16 = arith.constant 0 : index
    %19 = vector.load %arg7[%c0_15, %c0_16] : memref<1x256xf32, #tpu.memory_space<vmem>>, vector<1x256xf32>
    %20 = vector.broadcast %19 : vector<1x256xf32> to vector<256x256xf32>
    %21 = arith.addf %18, %20 : vector<256x256xf32>
    %cst_17 = arith.constant 0.000000e+00 : f32
    %22 = vector.broadcast %cst_17 : f32 to vector<256x256xf32>
    %23 = arith.maximumf %21, %22 : vector<256x256xf32>
    %24 = arith.truncf %23 : vector<256x256xf32> to vector<256x256xbf16>
    %c0_18 = arith.constant 0 : index
    %c0_19 = arith.constant 0 : index
    %25 = vector.load %arg8[%c0_18, %c0_19] : memref<256x256xbf16, #tpu.memory_space<vmem>>, vector<256x256xbf16>
    %cst_20 = arith.constant dense<0.000000e+00> : vector<256x256xf32>
    %26 = tpu.matmul %24, %25, %cst_20 {dimension_numbers = #tpu.dot_dimension_numbers<[1], [0], [0], [1], [0, 0, 1, 1], [], []>} : vector<256x256xbf16>, vector<256x256xbf16>, vector<256x256xf32> -> vector<256x256xf32>
    %c0_21 = arith.constant 0 : index
    %c0_22 = arith.constant 0 : index
    %27 = vector.load %arg9[%c0_21, %c0_22] : memref<1x256xf32, #tpu.memory_space<vmem>>, vector<1x256xf32>
    %28 = vector.broadcast %27 : vector<1x256xf32> to vector<256x256xf32>
    %29 = arith.addf %26, %28 : vector<256x256xf32>
    %cst_23 = arith.constant 0.000000e+00 : f32
    %30 = vector.broadcast %cst_23 : f32 to vector<256x256xf32>
    %31 = arith.maximumf %29, %30 : vector<256x256xf32>
    %32 = arith.truncf %31 : vector<256x256xf32> to vector<256x256xbf16>
    %c0_24 = arith.constant 0 : index
    %c0_25 = arith.constant 0 : index
    %33 = vector.load %arg10[%c0_24, %c0_25] : memref<256x256xbf16, #tpu.memory_space<vmem>>, vector<256x256xbf16>
    %cst_26 = arith.constant dense<0.000000e+00> : vector<256x256xf32>
    %34 = tpu.matmul %32, %33, %cst_26 {dimension_numbers = #tpu.dot_dimension_numbers<[1], [0], [0], [1], [0, 0, 1, 1], [], []>} : vector<256x256xbf16>, vector<256x256xbf16>, vector<256x256xf32> -> vector<256x256xf32>
    %c0_27 = arith.constant 0 : index
    %c0_28 = arith.constant 0 : index
    %35 = vector.load %arg1[%c0_27, %c0_28] : memref<256x39xbf16, #tpu.memory_space<vmem>>, vector<256x39xbf16>
    %c0_29 = arith.constant 0 : index
    %c0_30 = arith.constant 0 : index
    %36 = vector.load %arg11[%c0_29, %c0_30] : memref<39x256xbf16, #tpu.memory_space<vmem>>, vector<39x256xbf16>
    %cst_31 = arith.constant dense<0.000000e+00> : vector<256x256xf32>
    %37 = tpu.matmul %35, %36, %cst_31 {dimension_numbers = #tpu.dot_dimension_numbers<[1], [0], [0], [1], [0, 0, 1, 1], [], []>} : vector<256x39xbf16>, vector<39x256xbf16>, vector<256x256xf32> -> vector<256x256xf32>
    %38 = arith.addf %34, %37 : vector<256x256xf32>
    %c0_32 = arith.constant 0 : index
    %c0_33 = arith.constant 0 : index
    %39 = vector.load %arg12[%c0_32, %c0_33] : memref<1x256xf32, #tpu.memory_space<vmem>>, vector<1x256xf32>
    %40 = vector.broadcast %39 : vector<1x256xf32> to vector<256x256xf32>
    %41 = arith.addf %38, %40 : vector<256x256xf32>
    %cst_34 = arith.constant 0.000000e+00 : f32
    %42 = vector.broadcast %cst_34 : f32 to vector<256x256xf32>
    %43 = arith.maximumf %41, %42 : vector<256x256xf32>
    %44 = arith.truncf %43 : vector<256x256xf32> to vector<256x256xbf16>
    %c0_35 = arith.constant 0 : index
    %c0_36 = arith.constant 0 : index
    %45 = vector.load %arg13[%c0_35, %c0_36] : memref<256x256xbf16, #tpu.memory_space<vmem>>, vector<256x256xbf16>
    %cst_37 = arith.constant dense<0.000000e+00> : vector<256x256xf32>
    %46 = tpu.matmul %44, %45, %cst_37 {dimension_numbers = #tpu.dot_dimension_numbers<[1], [0], [0], [1], [0, 0, 1, 1], [], []>} : vector<256x256xbf16>, vector<256x256xbf16>, vector<256x256xf32> -> vector<256x256xf32>
    %c0_38 = arith.constant 0 : index
    %c0_39 = arith.constant 0 : index
    %47 = vector.load %arg14[%c0_38, %c0_39] : memref<1x256xf32, #tpu.memory_space<vmem>>, vector<1x256xf32>
    %48 = vector.broadcast %47 : vector<1x256xf32> to vector<256x256xf32>
    %49 = arith.addf %46, %48 : vector<256x256xf32>
    %cst_40 = arith.constant 0.000000e+00 : f32
    %50 = vector.broadcast %cst_40 : f32 to vector<256x256xf32>
    %51 = arith.maximumf %49, %50 : vector<256x256xf32>
    %52 = arith.truncf %51 : vector<256x256xf32> to vector<256x256xbf16>
    %c0_41 = arith.constant 0 : index
    %c0_42 = arith.constant 0 : index
    %53 = vector.load %arg15[%c0_41, %c0_42] : memref<256x256xbf16, #tpu.memory_space<vmem>>, vector<256x256xbf16>
    %cst_43 = arith.constant dense<0.000000e+00> : vector<256x256xf32>
    %54 = tpu.matmul %52, %53, %cst_43 {dimension_numbers = #tpu.dot_dimension_numbers<[1], [0], [0], [1], [0, 0, 1, 1], [], []>} : vector<256x256xbf16>, vector<256x256xbf16>, vector<256x256xf32> -> vector<256x256xf32>
    %c0_44 = arith.constant 0 : index
    %c0_45 = arith.constant 0 : index
    %55 = vector.load %arg16[%c0_44, %c0_45] : memref<1x256xf32, #tpu.memory_space<vmem>>, vector<1x256xf32>
    %56 = vector.broadcast %55 : vector<1x256xf32> to vector<256x256xf32>
    %57 = arith.addf %54, %56 : vector<256x256xf32>
    %cst_46 = arith.constant 0.000000e+00 : f32
    %58 = vector.broadcast %cst_46 : f32 to vector<256x256xf32>
    %59 = arith.maximumf %57, %58 : vector<256x256xf32>
    %60 = arith.truncf %59 : vector<256x256xf32> to vector<256x256xbf16>
    %c0_47 = arith.constant 0 : index
    %c0_48 = arith.constant 0 : index
    %61 = vector.load %arg17[%c0_47, %c0_48] : memref<256x256xbf16, #tpu.memory_space<vmem>>, vector<256x256xbf16>
    %cst_49 = arith.constant dense<0.000000e+00> : vector<256x256xf32>
    %62 = tpu.matmul %60, %61, %cst_49 {dimension_numbers = #tpu.dot_dimension_numbers<[1], [0], [0], [1], [0, 0, 1, 1], [], []>} : vector<256x256xbf16>, vector<256x256xbf16>, vector<256x256xf32> -> vector<256x256xf32>
    %c0_50 = arith.constant 0 : index
    %c0_51 = arith.constant 0 : index
    %63 = vector.load %arg18[%c0_50, %c0_51] : memref<1x256xf32, #tpu.memory_space<vmem>>, vector<1x256xf32>
    %64 = vector.broadcast %63 : vector<1x256xf32> to vector<256x256xf32>
    %65 = arith.addf %62, %64 : vector<256x256xf32>
    %cst_52 = arith.constant 0.000000e+00 : f32
    %66 = vector.broadcast %cst_52 : f32 to vector<256x256xf32>
    %67 = arith.maximumf %65, %66 : vector<256x256xf32>
    %68 = arith.truncf %67 : vector<256x256xf32> to vector<256x256xbf16>
    %c0_53 = arith.constant 0 : index
    %c0_54 = arith.constant 0 : index
    %69 = vector.load %arg19[%c0_53, %c0_54] : memref<256x4xbf16, #tpu.memory_space<vmem>>, vector<256x4xbf16>
    %cst_55 = arith.constant dense<0.000000e+00> : vector<256x4xf32>
    %70 = tpu.matmul %68, %69, %cst_55 {dimension_numbers = #tpu.dot_dimension_numbers<[1], [0], [0], [1], [0, 0, 1, 1], [], []>} : vector<256x256xbf16>, vector<256x4xbf16>, vector<256x4xf32> -> vector<256x4xf32>
    %c0_56 = arith.constant 0 : index
    %c0_57 = arith.constant 0 : index
    %71 = vector.load %arg20[%c0_56, %c0_57] : memref<1x4xf32, #tpu.memory_space<vmem>>, vector<1x4xf32>
    %72 = vector.broadcast %71 : vector<1x4xf32> to vector<256x4xf32>
    %73 = arith.addf %70, %72 : vector<256x4xf32>
    %74 = tpu.iota {dimensions = array<i32: 1>} : vector<256x4xi32>
    %c3_i32 = arith.constant 3 : i32
    %75 = vector.broadcast %c3_i32 : i32 to vector<256x4xi32>
    %76 = arith.cmpi slt, %74, %75 : vector<256x4xi32>
    %77 = arith.negf %73 : vector<256x4xf32>
    %78 = math.exp %77 : vector<256x4xf32>
    %cst_58 = arith.constant 1.000000e+00 : f32
    %79 = vector.broadcast %cst_58 : f32 to vector<256x4xf32>
    %80 = arith.addf %79, %78 : vector<256x4xf32>
    %81 = arith.divf %79, %80 : vector<256x4xf32>
    %cst_59 = arith.constant 0.000000e+00 : f32
    %82 = vector.broadcast %cst_59 : f32 to vector<256x4xf32>
    %83 = arith.maximumf %73, %82 : vector<256x4xf32>
    %84 = arith.select %76, %81, %83 : vector<256x4xi1>, vector<256x4xf32>
    %c0_60 = arith.constant 0 : index
    %c0_61 = arith.constant 0 : index
    %85 = vector.load %arg21[%c0_60, %c0_61] : memref<256x4xf32, #tpu.memory_space<vmem>>, vector<256x4xf32>
    tpu.vector_store %arg21[%c0_60, %c0_61], %84 {strides = array<i32>} : memref<256x4xf32, #tpu.memory_space<vmem>>, vector<256x4xf32>,
    return
  }
  func.func @transform_0(%arg0: i32) -> (i32, i32) {
    %c0_i32 = arith.constant 0 : i32
    %c0_i32_0 = arith.constant 0 : i32
    return %arg0, %c0_i32 : i32, i32
  }
  func.func @transform_1(%arg0: i32) -> (i32, i32) {
    %c0_i32 = arith.constant 0 : i32
    %c0_i32_0 = arith.constant 0 : i32
    %c0_i32_1 = arith.constant 0 : i32
    return %c0_i32, %c0_i32_0 : i32, i32
  }
  func.func @transform_2(%arg0: i32) -> (i32, i32) {
    %c0_i32 = arith.constant 0 : i32
    %c0_i32_0 = arith.constant 0 : i32
    %c0_i32_1 = arith.constant 0 : i32
    return %c0_i32, %c0_i32_0 : i32, i32
  }
  func.func @transform_3(%arg0: i32) -> (i32, i32) {
    %c0_i32 = arith.constant 0 : i32
    %c0_i32_0 = arith.constant 0 : i32
    %c0_i32_1 = arith.constant 0 : i32
    return %c0_i32, %c0_i32_0 : i32, i32
  }
  func.func @transform_4(%arg0: i32) -> (i32, i32) {
    %c0_i32 = arith.constant 0 : i32
    %c0_i32_0 = arith.constant 0 : i32
    %c0_i32_1 = arith.constant 0 : i32
    return %c0_i32, %c0_i32_0 : i32, i32
  }
  func.func @transform_5(%arg0: i32) -> (i32, i32) {
    %c0_i32 = arith.constant 0 : i32
    %c0_i32_0 = arith.constant 0 : i32
    %c0_i32_1 = arith.constant 0 : i32
    return %c0_i32, %c0_i32_0 : i32, i32
  }
  func.func @transform_6(%arg0: i32) -> (i32, i32) {
    %c0_i32 = arith.constant 0 : i32
    %c0_i32_0 = arith.constant 0 : i32
    %c0_i32_1 = arith.constant 0 : i32
    return %c0_i32, %c0_i32_0 : i32, i32
  }
  func.func @transform_7(%arg0: i32) -> (i32, i32) {
    %c0_i32 = arith.constant 0 : i32
    %c0_i32_0 = arith.constant 0 : i32
    %c0_i32_1 = arith.constant 0 : i32
    return %c0_i32, %c0_i32_0 : i32, i32
  }
  func.func @transform_8(%arg0: i32) -> (i32, i32) {
    %c0_i32 = arith.constant 0 : i32
    %c0_i32_0 = arith.constant 0 : i32
    %c0_i32_1 = arith.constant 0 : i32
    return %c0_i32, %c0_i32_0 : i32, i32
  }
  func.func @transform_9(%arg0: i32) -> (i32, i32) {
    %c0_i32 = arith.constant 0 : i32
    %c0_i32_0 = arith.constant 0 : i32
    %c0_i32_1 = arith.constant 0 : i32
    return %c0_i32, %c0_i32_0 : i32, i32
  }
  func.func @transform_10(%arg0: i32) -> (i32, i32) {
    %c0_i32 = arith.constant 0 : i32
    %c0_i32_0 = arith.constant 0 : i32
    %c0_i32_1 = arith.constant 0 : i32
    return %c0_i32, %c0_i32_0 : i32, i32
  }
  func.func @transform_11(%arg0: i32) -> (i32, i32) {
    %c0_i32 = arith.constant 0 : i32
    %c0_i32_0 = arith.constant 0 : i32
    %c0_i32_1 = arith.constant 0 : i32
    return %c0_i32, %c0_i32_0 : i32, i32
  }
  func.func @transform_12(%arg0: i32) -> (i32, i32) {
    %c0_i32 = arith.constant 0 : i32
    %c0_i32_0 = arith.constant 0 : i32
    %c0_i32_1 = arith.constant 0 : i32
    return %c0_i32, %c0_i32_0 : i32, i32
  }
  func.func @transform_13(%arg0: i32) -> (i32, i32) {
    %c0_i32 = arith.constant 0 : i32
    %c0_i32_0 = arith.constant 0 : i32
    %c0_i32_1 = arith.constant 0 : i32
    return %c0_i32, %c0_i32_0 : i32, i32
  }
  func.func @transform_14(%arg0: i32) -> (i32, i32) {
    %c0_i32 = arith.constant 0 : i32
    %c0_i32_0 = arith.constant 0 : i32
    %c0_i32_1 = arith.constant 0 : i32
    return %c0_i32, %c0_i32_0 : i32, i32
  }
  func.func @transform_15(%arg0: i32) -> (i32, i32) {
    %c0_i32 = arith.constant 0 : i32
    %c0_i32_0 = arith.constant 0 : i32
    %c0_i32_1 = arith.constant 0 : i32
    return %c0_i32, %c0_i32_0 : i32, i32
  }
  func.func @transform_16(%arg0: i32) -> (i32, i32) {
    %c0_i32 = arith.constant 0 : i32
    %c0_i32_0 = arith.constant 0 : i32
    %c0_i32_1 = arith.constant 0 : i32
    return %c0_i32, %c0_i32_0 : i32, i32
  }
  func.func @transform_17(%arg0: i32) -> (i32, i32) {
    %c0_i32 = arith.constant 0 : i32
    %c0_i32_0 = arith.constant 0 : i32
    %c0_i32_1 = arith.constant 0 : i32
    return %c0_i32, %c0_i32_0 : i32, i32
  }
  func.func @transform_18(%arg0: i32) -> (i32, i32) {
    %c0_i32 = arith.constant 0 : i32
    %c0_i32_0 = arith.constant 0 : i32
    %c0_i32_1 = arith.constant 0 : i32
    return %c0_i32, %c0_i32_0 : i32, i32
  }
  func.func @transform_19(%arg0: i32) -> (i32, i32) {
    %c0_i32 = arith.constant 0 : i32
    %c0_i32_0 = arith.constant 0 : i32
    %c0_i32_1 = arith.constant 0 : i32
    return %c0_i32, %c0_i32_0 : i32, i32
  }
  func.func @transform_20(%arg0: i32) -> (i32, i32) {
    %c0_i32 = arith.constant 0 : i32
    %c0_i32_0 = arith.constant 0 : i32
    return %arg0, %c0_i32 : i32, i32
  }
}

</mosaic_0001>

<bundles_post_ra>
// kernel: tpu_custom_call.1
= control target key start
LH: loop header
LB: loop body
LE: loop exit
PB: predicated region body
PF: predicated region fallthrough
CT: control target
= control target key end

     0   :  { %s7863_s0 = inlined_call_operand.vmem [shape: bf16[256,39], index: 0, kind: input, shape index: {}]   ;;  %s7864_s1 = inlined_call_operand.vmem [shape: bf16[39,256], index: 1, kind: input, shape index: {}]   ;;  %s7865_s2 = inlined_call_operand.vmem [shape: f32[1,256], index: 2, kind: input, shape index: {}]   ;;  %s7866_s3 = inlined_call_operand.vmem [shape: bf16[256,256], index: 3, kind: input, shape index: {}]   ;;  %s7867_s4 = inlined_call_operand.vmem [shape: f32[1,256], index: 4, kind: input, shape index: {}]   ;;  %s7868_s5 = inlined_call_operand.hbm [shape: bf16[256,256], index: 5, kind: input, shape index: {}]   ;;  %s7869_s6 = inlined_call_operand.vmem [shape: f32[1,256], index: 6, kind: input, shape index: {}]   ;;  %s7870_s7 = inlined_call_operand.hbm [shape: bf16[256,256], index: 7, kind: input, shape index: {}]   ;;  %s7871_s8 = inlined_call_operand.vmem [shape: f32[1,256], index: 8, kind: input, shape index: {}]   ;;  %s7872_s9 = inlined_call_operand.hbm [shape: bf16[256,256], index: 9, kind: input, shape index: {}]   ;;  %s7873_s10 = inlined_call_operand.hbm [shape: bf16[39,256], index: 10, kind: input, shape index: {}]   ;;  %s7874_s11 = inlined_call_operand.vmem [shape: f32[1,256], index: 11, kind: input, shape index: {}]   ;;  %s7875_s12 = inlined_call_operand.hbm [shape: bf16[256,256], index: 12, kind: input, shape index: {}]   ;;  %s7876_s13 = inlined_call_operand.vmem [shape: f32[1,256], index: 13, kind: input, shape index: {}]   ;;  %s7877_s14 = inlined_call_operand.hbm [shape: bf16[256,256], index: 14, kind: input, shape index: {}]   ;;  %s7878_s15 = inlined_call_operand.vmem [shape: f32[1,256], index: 15, kind: input, shape index: {}]   ;;  %s7879_s16 = inlined_call_operand.hbm [shape: bf16[256,256], index: 16, kind: input, shape index: {}]   ;;  %s7880_s17 = inlined_call_operand.vmem [shape: f32[1,256], index: 17, kind: input, shape index: {}]   ;;  %s7881_s18 = inlined_call_operand.vmem [shape: bf16[256,4], index: 18, kind: input, shape index: {}]   ;;  %s7882_s19 = inlined_call_operand.vmem [shape: f32[1,4], index: 19, kind: input, shape index: {}]   ;;  %s7883_s20 = inlined_call_operand.vmem [shape: f32[256,4], index: 20, kind: output, shape index: {}]  }
   0x1   :  { %7887 = sst [smem:[#allocation17_spill]] %s7863_s0 }
   0x2   :  { %7888 = sst [smem:[#allocation18_spill]] %s7864_s1 }
   0x3   :  { %7889 = sst [smem:[#allocation19_spill]] %s7865_s2 }
   0x4   :  { %7890 = sst [smem:[#allocation20_spill]] %s7866_s3 }
   0x5   :  { %7891 = sst [smem:[#allocation21_spill]] %s7867_s4 }
   0x6   :  { %25 = vsyncpa [#allocation3], 0 }
   0x7   :  { %26 = vsyncpa [#allocation5], 0 }
   0x8   :  { %27 = vsyncpa [#allocation8], 0 }
   0x9   :  { %28 = vsyncpa [#allocation11], 0  ;;  %s6167_s1 = smov [#allocation4]   ;;  %s6168_s23 = smov [#allocation7]  }
   0xa   :  { %s58_s22 = sshll.u32 %s6167_s1, 4  ;;  %s84_s24 = sshll.u32 %s6168_s23, 4  ;;  %s59_s22 = int_to_ptr.vmem [resolvable:$true] %s58_s22  ;;  %s85_s24 = int_to_ptr.vmem [resolvable:$true] %s84_s24 }
   0xb   :  { %s6027_s2 = scalar_lea.vmem %s59_s22, 4096  ;;  %p6032_p1 = scmp.lt.s32.totalorder %s59_s22, %s59_s22 }
   0xc   :  { %p6028_p0 = scmp.ne.s32.totalorder %s59_s22, %s6027_s2  ;;  %p6033_p2 = scmp.lt.s32.totalorder %s6027_s2, %s6027_s2 }
   0xe   :  { %p6034_p3 = por %p6033_p2, %p6032_p1 }
  0x10   :  { %p6035_p4 = pnand %p6034_p3, %p6028_p0 }
  0x12   :  { %6038 = shalt.err (!%p6035_p4)
}
  0x13   :  { %s6169_s25 = smov 128   ;;  %s6170_s3 = smov 8  }
  0x14   :  { %64 = dma.hbm_to_vmem [thread:$0]  %s7870_s7, 4096, %s59_s22, [#allocation5], %s6169_s25, %s6169_s25, %s6170_s3  }
  0x15   :  { %s6047_s28 = scalar_lea.vmem %s85_s24, 640  ;;  %p6052_p6 = scmp.lt.s32.totalorder %s85_s24, %s85_s24 }
  0x16   :  { %p6048_p5 = scmp.ne.s32.totalorder %s85_s24, %s6047_s28  ;;  %p6053_p7 = scmp.lt.s32.totalorder %s6047_s28, %s6047_s28 }
  0x18   :  { %p6054_p8 = por %p6053_p7, %p6052_p6 }
  0x1a   :  { %p6055_p9 = pnand %p6054_p8, %p6048_p5 }
  0x1c   :  { %6058 = shalt.err (!%p6055_p9)
}
  0x1d   :  { %90 = dma.hbm_to_vmem [thread:$0]  %s7873_s10, 640, %s85_s24, [#allocation8], %s6169_s25, %s6169_s25, %s6170_s3  }
  0x1e   :  { %s6171_s30 = smov [#allocation10]   ;;  %s6172_s21 = smov [#allocation2]  }
  0x1f   :  { %s112_s0 = sshll.u32 %s6171_s30, 4  ;;  %s44_s1 = sshll.u32 %s6172_s21, 4  ;;  %s113_s0 = int_to_ptr.vmem [resolvable:$true] %s112_s0  ;;  %s45_s1 = int_to_ptr.vmem [resolvable:$true] %s44_s1 }
  0x20   :  { %s6067_s7 = scalar_lea.vmem %s113_s0, 4096  ;;  %p6072_p11 = scmp.lt.s32.totalorder %s113_s0, %s113_s0 }
  0x21   :  { %p6068_p10 = scmp.ne.s32.totalorder %s113_s0, %s6067_s7  ;;  %p6073_p12 = scmp.lt.s32.totalorder %s6067_s7, %s6067_s7 }
  0x23   :  { %p6074_p13 = por %p6073_p12, %p6072_p11 }
  0x25   :  { %p6075_p0 = pnand %p6074_p13, %p6068_p10 }
  0x27   :  { %6078 = shalt.err (!%p6075_p0)
}
  0x28   :  { %118 = dma.hbm_to_vmem [thread:$0]  %s7877_s14, 4096, %s113_s0, [#allocation11], %s6169_s25, %s6169_s25, %s6170_s3  }
  0x29   :  { %s6087_s10 = scalar_lea.vmem %s45_s1, 4096  ;;  %p6092_p2 = scmp.lt.s32.totalorder %s45_s1, %s45_s1 }
  0x2a   :  { %p6088_p1 = scmp.ne.s32.totalorder %s45_s1, %s6087_s10  ;;  %p6093_p3 = scmp.lt.s32.totalorder %s6087_s10, %s6087_s10 }
  0x2c   :  { %p6094_p4 = por %p6093_p3, %p6092_p2 }
  0x2e   :  { %p6095_p5 = pnand %p6094_p4, %p6088_p1 }
  0x30   :  { %6098 = shalt.err (!%p6095_p5)
}
  0x31   :  { %50 = dma.hbm_to_vmem [thread:$0]  %s7868_s5, 4096, %s45_s1, [#allocation3], %s6169_s25, %s6169_s25, %s6170_s3  }
  0x32   :  { %s6173_s26 = smov [#allocation6]   ;;  %s6174_s28 = smov [#allocation9]  }
  0x33   :  { %s72_s27 = sshll.u32 %s6173_s26, 4  ;;  %s98_s4 = sshll.u32 %s6174_s28, 4  ;;  %s73_s27 = int_to_ptr.vmem [resolvable:$true] %s72_s27  ;;  %s99_s4 = int_to_ptr.vmem [resolvable:$true] %s98_s4 }
  0x34   :  { %s6107_s14 = scalar_lea.vmem %s73_s27, 4096  ;;  %p6112_p7 = scmp.lt.s32.totalorder %s73_s27, %s73_s27 }
  0x35   :  { %p6108_p6 = scmp.ne.s32.totalorder %s73_s27, %s6107_s14  ;;  %p6113_p8 = scmp.lt.s32.totalorder %s6107_s14, %s6107_s14 }
  0x37   :  { %p6114_p9 = por %p6113_p8, %p6112_p7 }
  0x39   :  { %p6115_p10 = pnand %p6114_p9, %p6108_p6 }
  0x3b   :  { %6118 = shalt.err (!%p6115_p10)
}
  0x3c   :  { %78 = dma.hbm_to_vmem [thread:$0]  %s7872_s9, 4096, %s73_s27, [#allocation5], %s6169_s25, %s6169_s25, %s6170_s3  }
  0x3d   :  { %s6127_s5 = scalar_lea.vmem %s99_s4, 4096  ;;  %p6132_p12 = scmp.lt.s32.totalorder %s99_s4, %s99_s4 }
  0x3e   :  { %p6128_p11 = scmp.ne.s32.totalorder %s99_s4, %s6127_s5  ;;  %p6133_p13 = scmp.lt.s32.totalorder %s6127_s5, %s6127_s5 }
  0x40   :  { %p6134_p0 = por %p6133_p13, %p6132_p12 }
  0x42   :  { %p6135_p1 = pnand %p6134_p0, %p6128_p11 }
  0x44   :  { %6138 = shalt.err (!%p6135_p1)
}
  0x45   :  { %104 = dma.hbm_to_vmem [thread:$0]  %s7875_s12, 4096, %s99_s4, [#allocation8], %s6169_s25, %s6169_s25, %s6170_s3  }
  0x46   :  { %s6175_s1 = smov [#allocation12]  }
  0x47   :  { %s126_s7 = sshll.u32 %s6175_s1, 4  ;;  %s127_s7 = int_to_ptr.vmem [resolvable:$true] %s126_s7 }
  0x48   :  { %s6147_s22 = scalar_lea.vmem %s127_s7, 4096  ;;  %p6152_p3 = scmp.lt.s32.totalorder %s127_s7, %s127_s7 }
  0x49   :  { %p6148_p2 = scmp.ne.s32.totalorder %s127_s7, %s6147_s22  ;;  %p6153_p4 = scmp.lt.s32.totalorder %s6147_s22, %s6147_s22 }
  0x4b   :  { %p6154_p5 = por %p6153_p4, %p6152_p3 }
  0x4d   :  { %p6155_p6 = pnand %p6154_p5, %p6148_p2 }
  0x4f   :  { %6158 = shalt.err (!%p6155_p6)
}
  0x50   :  { %132 = dma.hbm_to_vmem [thread:$0]  %s7879_s16, 4096, %s127_s7, [#allocation11], %s6169_s25, %s6169_s25, %s6170_s3  }
  0x51   :  { %6159 = dma.done.wait [#allocation3], 4096  }
  0x52   :  { %6160 = vsyncadd [#allocation3], 4294963200 }
  0x53   :  { %6161 = dma.done.wait [#allocation5], 8192  }
  0x54   :  { %6162 = vsyncadd [#allocation5], 4294959104 }
  0x55   :  { %6163 = dma.done.wait [#allocation8], 4736  }
  0x56   :  { %6164 = vsyncadd [#allocation8], 4294962560 }
  0x57   :  { %6165 = dma.done.wait [#allocation11], 8192  }
  0x58   :  { %6166 = vsyncadd [#allocation11], 4294959104  ;;  %vm364_vm0 = vcmask 1042432   ;;  %v6176_v0 = vmov 0   ;;  %vm365_vm1 = vcmask 1043456   ;;  %v6177_v1 = vmov 65535  }
  0x59   :  { %406 = vmatprep.mubr.bf16.mxu0 %v6176_v0  ;;  %v366_v2 = vsel %vm364_vm0, 4294967295, %v6177_v1  ;;  %s7892_s24 = sld [smem:[#allocation18_spill]]  ;;  %vm315_vm2 = vcmask 318464   ;;  %v5563_v61 = vld [vmem:[#allocation2 + $0x70] ss:$8 sps:$4 sm:$0xff]   ;;  %vm4962_vm4 = vcmask 31744  }
  0x5a   :  { %v6329_v4 = vsel %vm365_vm1, %v366_v2, 0  ;;  %s7893_s30 = sld [smem:[#allocation17_spill]]  ;;  %v5565_v62 = vld [vmem:[#allocation2 + $0x74] ss:$8 sps:$4 sm:$0xff]   ;;  %v5566_v63 = vld [vmem:[#allocation2 + $0x60] ss:$8 sps:$4 sm:$0xff]  }
  0x5b   :  { %s7894_s21 = sld [smem:[#allocation20_spill]]  ;;  %v5568_v1 = vld [vmem:[#allocation2 + $0x64] ss:$8 sps:$4 sm:$0xff]   ;;  %v5569_v2 = vld [vmem:[#allocation2 + $0x50] ss:$8 sps:$4 sm:$0xff]  }
  0x5c   :  { %s7895_s27 = sld [smem:[#allocation19_spill]] }
  0x5d   :  { %s7896_s14 = sld [smem:[#allocation21_spill]] }
  0x5f   :  { %v197_v3 = vld [vmem:[%s7892_s24 + $0x20] sm:$0xff]  ;;  %v5493_v9 = vld [vmem:[%s7892_s24 + $0x14] ss:$8 sps:$4 sm:$0xff]   ;;  %v5495_v10 = vld [vmem:[%s7892_s24 + $0x10] ss:$8 sps:$4 sm:$0xff]  }
  0x60   :  { %v5024_v5 = vcombine.high %v197_v3, %v197_v3  ;;  %v5023_v6 = vcombine.low %v197_v3, %v197_v3  ;;  %v5496_v11 = vld [vmem:[%s7892_s24 + $0x4] ss:$8 sps:$4 sm:$0xff]   ;;  %v5498_v12 = vld [vmem:[%s7892_s24] ss:$8 sps:$4 sm:$0xff]   ;;  %v5501_v22 = vld [vmem:[%s7893_s30 + $0x10] sm:$0xff]  }
  0x61   :  { %v5499_v13 = vld [vmem:[%s7893_s30] sm:$0xff]   ;;  %v5515_v14 = vld [vmem:[%s7894_s21 + $0x74] ss:$8 sps:$4 sm:$0xff]   ;;  %v5517_v15 = vld [vmem:[%s7894_s21 + $0x70] ss:$8 sps:$4 sm:$0xff]  }
  0x62   :  { %v372_v7 = vand.u32 %v5024_v5, %v6329_v4  ;;  %v369_v8 = vand.u32 %v5023_v6, %v6329_v4  ;;  %v5500_v16 = vld [vmem:[%s7893_s30 + $0x8] sm:$0xff]   ;;  %867 = vmatprep.subr.bf16.mxu1 %v5515_v14  ;;  %v5521_v19 = vld [vmem:[%s7894_s21 + $0x54] ss:$8 sps:$4 sm:$0xff]   ;;  %v5523_v20 = vld [vmem:[%s7894_s21 + $0x50] ss:$8 sps:$4 sm:$0xff]  }
  0x63   :  { %v5518_v17 = vld [vmem:[%s7894_s21 + $0x64] ss:$8 sps:$4 sm:$0xff]   ;;  %868 = vmatpush1.bf16.msra.mxu1 %v5517_v15  ;;  %v5520_v18 = vld [vmem:[%s7894_s21 + $0x60] ss:$8 sps:$4 sm:$0xff]   ;;  %v5527_v24 = vld [vmem:[%s7894_s21 + $0x34] ss:$8 sps:$4 sm:$0xff]  }
  0x64   :  { %384 = vmatprep.subr.bf16.mxu0 %v372_v7  ;;  %869 = vmatprep.subr.bf16.mxu1 %v5518_v17  ;;  %v5524_v21 = vld [vmem:[%s7894_s21 + $0x44] ss:$8 sps:$4 sm:$0xff]   ;;  %v5526_v23 = vld [vmem:[%s7894_s21 + $0x40] ss:$8 sps:$4 sm:$0xff]   ;;  %v5529_v25 = vld [vmem:[%s7894_s21 + $0x30] ss:$8 sps:$4 sm:$0xff]   ;;  %v200_v7 = vlaneseq }
  0x65   :  { %385 = vmatpush1.bf16.msra.mxu0 %v369_v8  ;;  %v5530_v26 = vld [vmem:[%s7894_s21 + $0x24] ss:$8 sps:$4 sm:$0xff]   ;;  %v5502_v27 = vld [vmem:[%s7893_s30 + $0x18] sm:$0xff]   ;;  %v5532_v28 = vld [vmem:[%s7894_s21 + $0x20] ss:$8 sps:$4 sm:$0xff]  }
  0x66   :  { %386 = vmatprep.subr.bf16.mxu0 %v5493_v9  ;;  %v5533_v29 = vld [vmem:[%s7894_s21 + $0x14] ss:$8 sps:$4 sm:$0xff]   ;;  %v5535_v30 = vld [vmem:[%s7894_s21 + $0x10] ss:$8 sps:$4 sm:$0xff]   ;;  %v5536_v31 = vld [vmem:[%s7894_s21 + $0x4] ss:$8 sps:$4 sm:$0xff]  }
  0x67   :  { %870 = vmatpush1.bf16.msra.mxu1 %v5520_v18  ;;  %v5503_v32 = vld [vmem:[%s7893_s30 + $0x20] sm:$0xff]   ;;  %v5539_v34 = vld [vmem:[%s7894_s21 + $0xf4] ss:$8 sps:$4 sm:$0xff]   ;;  %v5541_v35 = vld [vmem:[%s7894_s21 + $0xf0] ss:$8 sps:$4 sm:$0xff]   ;;  %v201_v8 = vshrl.u32 %v200_v7, 7 }
  0x68   :  { %871 = vmatprep.subr.bf16.mxu1 %v5521_v19  ;;  %v5538_v33 = vld [vmem:[%s7894_s21] ss:$8 sps:$4 sm:$0xff]   ;;  %v5542_v36 = vld [vmem:[%s7894_s21 + $0xe4] ss:$8 sps:$4 sm:$0xff]   ;;  %v5545_v39 = vld [vmem:[%s7894_s21 + $0xd4] ss:$8 sps:$4 sm:$0xff]  }
  0x69   :  { %387 = vmatpush1.bf16.msra.mxu0 %v5495_v10  ;;  %v5504_v37 = vld [vmem:[%s7893_s30 + $0x28] sm:$0xff]   ;;  %v5547_v40 = vld [vmem:[%s7894_s21 + $0xd0] ss:$8 sps:$4 sm:$0xff]   ;;  %v5551_v44 = vld [vmem:[%s7894_s21 + $0xb4] ss:$8 sps:$4 sm:$0xff]   ;;  %v6521_v9 = vsub.s32 1, %v201_v8 }
  0x6a   :  { %388 = vmatprep.subr.bf16.mxu0 %v5496_v11  ;;  %v5544_v38 = vld [vmem:[%s7894_s21 + $0xe0] ss:$8 sps:$4 sm:$0xff]   ;;  %v5548_v41 = vld [vmem:[%s7894_s21 + $0xc4] ss:$8 sps:$4 sm:$0xff]   ;;  %v5505_v42 = vld [vmem:[%s7893_s30 + $0x30] sm:$0xff]  }
  0x6b   :  { %872 = vmatpush1.bf16.msra.mxu1 %v5523_v20  ;;  %v5550_v43 = vld [vmem:[%s7894_s21 + $0xc0] ss:$8 sps:$4 sm:$0xff]   ;;  %v5553_v45 = vld [vmem:[%s7894_s21 + $0xb0] ss:$8 sps:$4 sm:$0xff]   ;;  %v5554_v48 = vld [vmem:[%s7894_s21 + $0xa4] ss:$8 sps:$4 sm:$0xff]  }
  0x6c   :  { %873 = vmatprep.subr.bf16.mxu1 %v5524_v21  ;;  %v5506_v46 = vld [vmem:[%s7893_s30 + $0x38] sm:$0xff]   ;;  %v5507_v47 = vld [vmem:[%s7893_s30 + $0x40] sm:$0xff]   ;;  %v5508_v50 = vld [vmem:[%s7893_s30 + $0x48] sm:$0xff]  }
  0x6d   :  { %389 = vmatpush1.bf16.msra.mxu0 %v5498_v12  ;;  %v5556_v49 = vld [vmem:[%s7894_s21 + $0xa0] ss:$8 sps:$4 sm:$0xff]   ;;  %v5557_v51 = vld [vmem:[%s7894_s21 + $0x94] ss:$8 sps:$4 sm:$0xff]   ;;  %v5559_v52 = vld [vmem:[%s7894_s21 + $0x90] ss:$8 sps:$4 sm:$0xff]  }
  0x6e   :  { %v5560_v53 = vld [vmem:[%s7894_s21 + $0x84] ss:$8 sps:$4 sm:$0xff]   ;;  %v5562_v54 = vld [vmem:[%s7894_s21 + $0x80] ss:$8 sps:$4 sm:$0xff]   ;;  %v5509_v55 = vld [vmem:[%s7893_s30 + $0x50] sm:$0xff]   ;;  %1360 = vmatprep.subr.bf16.mxu0 %v5565_v62  ;;  %v6523_v12 = vsub.s32 0, %v201_v8 }
  0x6f   :  { %874 = vmatpush1.bf16.msra.mxu1 %v5526_v23  ;;  %v5510_v56 = vld [vmem:[%s7893_s30 + $0x58] sm:$0xff]   ;;  %v5511_v57 = vld [vmem:[%s7893_s30 + $0x60] sm:$0xff]   ;;  %v5512_v58 = vld [vmem:[%s7893_s30 + $0x68] sm:$0xff]  }
  0x70   :  { %5025 = vmatmul.mubr.msk.bf16.vlgmr.msra.gmra.mxu0 %vm315_vm2, %v5499_v13  ;;  %875 = vmatprep.subr.bf16.mxu1 %v5527_v24  ;;  %v5513_v59 = vld [vmem:[%s7893_s30 + $0x70] sm:$0xff]   ;;  %v5514_v60 = vld [vmem:[%s7893_s30 + $0x78] sm:$0xff]   ;;  %v5572_v5 = vld [vmem:[#allocation2 + $0x40] ss:$8 sps:$4 sm:$0xff]  }
  0x71   :  { %416 = vmatprep.mubr.bf16.mxu0 %v6176_v0  ;;  %1361 = vmatpush1.bf16.msra.mxu0 %v5563_v61  ;;  %v5571_v3 = vld [vmem:[#allocation2 + $0x54] ss:$8 sps:$4 sm:$0xff]   ;;  %v5574_v6 = vld [vmem:[#allocation2 + $0x44] ss:$8 sps:$4 sm:$0xff]   ;;  %v5575_v10 = vld [vmem:[#allocation2 + $0x30] ss:$8 sps:$4 sm:$0xff]  }
  0x72   :  { %1362 = vmatprep.subr.bf16.mxu0 %v5568_v1  ;;  %v5577_v11 = vld [vmem:[#allocation2 + $0x34] ss:$8 sps:$4 sm:$0xff]   ;;  %v198_v13 = vld [vmem:[%s7895_s27] sm:$0x3]  ;;  %v5580_v17 = vld [vmem:[#allocation2 + $0x24] ss:$8 sps:$4 sm:$0xff]  }
  0x73   :  { %876 = vmatpush1.bf16.msra.mxu1 %v5529_v25  ;;  %v6529_v15 = vrot.slane %v198_v13, %v6521_v9  ;;  %v6532_v18 = vrot.slane %v198_v13, %v6523_v12  ;;  %v5581_v25 = vld [vmem:[#allocation2 + $0x10] ss:$8 sps:$4 sm:$0xff]   ;;  %v5596_v8 = vld [vmem:[#allocation2 + $0xc0] ss:$8 sps:$4 sm:$0xff]   ;;  %v5601_v13 = vld [vmem:[#allocation2 + $0xb4] ss:$8 sps:$4 sm:$0xff]  }
  0x74   :  { %877 = vmatprep.subr.bf16.mxu1 %v5530_v26  ;;  %v5583_v26 = vld [vmem:[#allocation2 + $0x14] ss:$8 sps:$4 sm:$0xff]  }
  0x75   :  { %1363 = vmatpush1.bf16.msra.mxu0 %v5566_v63  ;;  %v5598_v63 = vld [vmem:[#allocation2 + $0xc4] ss:$8 sps:$4 sm:$0xff]  }
  0x76   :  { %1364 = vmatprep.subr.bf16.mxu0 %v5571_v3 }
  0x77   :  { %878 = vmatpush1.bf16.msra.mxu1 %v5532_v28  ;;  %v5586_v28 = vld [vmem:[#allocation2 + $0x4] ss:$8 sps:$4 sm:$0xff]  }
  0x78   :  { %5026 = vmatmul.mubr.msk.bf16.gmra.mxu0 %vm315_vm2, %v5500_v16  ;;  %879 = vmatprep.subr.bf16.mxu1 %v5533_v29  ;;  %v5578_v16 = vld [vmem:[#allocation2 + $0x20] ss:$8 sps:$4 sm:$0xff]  }
  0x79   :  { %426 = vmatprep.mubr.bf16.mxu0 %v6176_v0  ;;  %1365 = vmatpush1.bf16.msra.mxu0 %v5569_v2 }
  0x7a   :  { %1366 = vmatprep.subr.bf16.mxu0 %v5574_v6 }
  0x7b   :  { %880 = vmatpush1.bf16.msra.mxu1 %v5535_v30 }
  0x7c   :  { %881 = vmatprep.subr.bf16.mxu1 %v5536_v31 }
  0x7d   :  { %1367 = vmatpush1.bf16.msra.mxu0 %v5572_v5 }
  0x7e   :  { %1368 = vmatprep.subr.bf16.mxu0 %v5577_v11 }
  0x7f   :  { %882 = vmatpush1.bf16.msra.mxu1 %v5538_v33  ;;  %v5584_v33 = vld [vmem:[#allocation2] ss:$8 sps:$4 sm:$0xff]  }
  0x80   :  { %5027 = vmatmul.mubr.msk.bf16.gmra.mxu0 %vm315_vm2, %v5501_v22  ;;  %883 = vmatprep.subr.bf16.mxu1 %v5539_v34 }
  0x81   :  { %436 = vmatprep.mubr.bf16.mxu0 %v6176_v0  ;;  %1369 = vmatpush1.bf16.msra.mxu0 %v5575_v10 }
  0x82   :  { %1370 = vmatprep.subr.bf16.mxu0 %v5580_v17 }
  0x83   :  { %884 = vmatpush2.bf16.msra.mxu1 %v5541_v35 }
  0x84   :  { %885 = vmatprep.subr.bf16.mxu1 %v5542_v36  ;;  %v5589_v36 = vld [vmem:[#allocation2 + $0xf4] ss:$8 sps:$4 sm:$0xff]  }
  0x85   :  { %1371 = vmatpush1.bf16.msra.mxu0 %v5578_v16 }
  0x86   :  { %1372 = vmatprep.subr.bf16.mxu0 %v5583_v26 }
  0x87   :  { %886 = vmatpush2.bf16.msra.mxu1 %v5544_v38 }
  0x88   :  { %5028 = vmatmul.mubr.msk.bf16.gmra.mxu0 %vm315_vm2, %v5502_v27  ;;  %887 = vmatprep.subr.bf16.mxu1 %v5545_v39 }
  0x89   :  { %446 = vmatprep.mubr.bf16.mxu0 %v6176_v0  ;;  %1373 = vmatpush1.bf16.msra.mxu0 %v5581_v25 }
  0x8a   :  { %1374 = vmatprep.subr.bf16.mxu0 %v5586_v28 }
  0x8b   :  { %888 = vmatpush2.bf16.msra.mxu1 %v5547_v40 }
  0x8c   :  { %889 = vmatprep.subr.bf16.mxu1 %v5548_v41 }
  0x8d   :  { %1375 = vmatpush1.bf16.msra.mxu0 %v5584_v33  ;;  %v5607_v33 = vld [vmem:[#allocation2 + $0x94] ss:$8 sps:$4 sm:$0xff]  }
  0x8e   :  { %1376 = vmatprep.subr.bf16.mxu0 %v5589_v36 }
  0x8f   :  { %890 = vmatpush2.bf16.msra.mxu1 %v5550_v43 }
  0x90   :  { %5029 = vmatmul.mubr.msk.bf16.gmra.mxu0 %vm315_vm2, %v5503_v32  ;;  %891 = vmatprep.subr.bf16.mxu1 %v5551_v44 }
  0x91   :  { %456 = vmatprep.mubr.bf16.mxu0 %v6176_v0 }
  0x93   :  { %892 = vmatpush2.bf16.msra.mxu1 %v5553_v45  ;;  %v5592_v45 = vld [vmem:[#allocation2 + $0xe4] ss:$8 sps:$4 sm:$0xff]  }
  0x94   :  { %893 = vmatprep.subr.bf16.mxu1 %v5554_v48 }
  0x97   :  { %894 = vmatpush2.bf16.msra.mxu1 %v5556_v49 }
  0x98   :  { %5030 = vmatmul.mubr.msk.bf16.gmra.mxu0 %vm315_vm2, %v5504_v37  ;;  %895 = vmatprep.subr.bf16.mxu1 %v5557_v51  ;;  %v5590_v51 = vld [vmem:[#allocation2 + $0xe0] ss:$8 sps:$4 sm:$0xff]  }
  0x99   :  { %466 = vmatprep.mubr.bf16.mxu0 %v6176_v0 }
  0x9b   :  { %896 = vmatpush2.bf16.msra.mxu1 %v5559_v52 }
  0x9c   :  { %897 = vmatprep.subr.bf16.mxu1 %v5560_v53 }
  0x9f   :  { %898 = vmatpush2.bf16.msra.mxu1 %v5562_v54  ;;  %v5595_v54 = vld [vmem:[#allocation2 + $0xd4] ss:$8 sps:$4 sm:$0xff]  }
  0xa0   :  { %5031 = vmatmul.mubr.msk.bf16.gmra.mxu0 %vm315_vm2, %v5505_v42  ;;  %v5587_v42 = vld [vmem:[#allocation2 + $0xf0] ss:$8 sps:$4 sm:$0xff]  }
  0xa1   :  { %476 = vmatprep.mubr.bf16.mxu0 %v6176_v0  ;;  %1377 = vmatpush2.bf16.msra.mxu0 %v5587_v42 }
  0xa2   :  { %1378 = vmatprep.subr.bf16.mxu0 %v5592_v45 }
  0xa5   :  { %1379 = vmatpush2.bf16.msra.mxu0 %v5590_v51 }
  0xa6   :  { %1380 = vmatprep.subr.bf16.mxu0 %v5595_v54 }
  0xa8   :  { %5032 = vmatmul.mubr.msk.bf16.gmra.mxu0 %vm315_vm2, %v5506_v46 }
  0xa9   :  { %486 = vmatprep.mubr.bf16.mxu0 %v6176_v0 }
  0xb0   :  { %5033 = vmatmul.mubr.msk.bf16.gmra.mxu0 %vm315_vm2, %v5507_v47 }
  0xb1   :  { %496 = vmatprep.mubr.bf16.mxu0 %v6176_v0 }
  0xb8   :  { %5034 = vmatmul.mubr.msk.bf16.gmra.mxu0 %vm315_vm2, %v5508_v50 }
  0xb9   :  { %506 = vmatprep.mubr.bf16.mxu0 %v6176_v0 }
  0xc0   :  { %5035 = vmatmul.mubr.msk.bf16.gmra.mxu0 %vm315_vm2, %v5509_v55 }
  0xc1   :  { %516 = vmatprep.mubr.bf16.mxu0 %v6176_v0 }
  0xc8   :  { %5036 = vmatmul.mubr.msk.bf16.gmra.mxu0 %vm315_vm2, %v5510_v56 }
  0xc9   :  { %526 = vmatprep.mubr.bf16.mxu0 %v6176_v0 }
  0xd0   :  { %5037 = vmatmul.mubr.msk.bf16.gmra.mxu0 %vm315_vm2, %v5511_v57 }
  0xd1   :  { %536 = vmatprep.mubr.bf16.mxu0 %v6176_v0 }
  0xd8   :  { %5038 = vmatmul.mubr.msk.bf16.gmra.mxu0 %vm315_vm2, %v5512_v58 }
  0xd9   :  { %546 = vmatprep.mubr.bf16.mxu0 %v6176_v0 }
  0xe0   :  { %5039 = vmatmul.mubr.msk.bf16.gmra.mxu0 %vm315_vm2, %v5513_v59 }
  0xe1   :  { %556 = vmatprep.mubr.bf16.mxu0 %v6176_v0 }
  0xe8   :  { %5040 = vmatmul.mubr.msk.bf16.gmra.mxu0 %vm315_vm2, %v5514_v60  ;;  %v5593_v60 = vld [vmem:[#allocation2 + $0xd0] ss:$8 sps:$4 sm:$0xff]  }
  0xe9   :  { %1381 = vmatpush2.bf16.msra.mxu0 %v5593_v60 }
  0xea   :  { %1382 = vmatprep.subr.bf16.mxu0 %v5598_v63 }
  0xed   :  { %1383 = vmatpush2.bf16.msra.mxu0 %v5596_v8 }
  0xee   :  { %1384 = vmatprep.subr.bf16.mxu0 %v5601_v13 }
 0x130   :  { %v408_v14 = vpop.f32.mrf.mxu0 }
 0x131   :  { %v409_v23 = vadd.f32 %v408_v14, %v6532_v18 }
 0x132   :  { %v410_v19 = vpop.f32.mrf.mxu0 }
 0x133   :  { %v411_v21 = vadd.f32 %v410_v19, %v6529_v15  ;;  %v567_v34 = vmax.f32 %v409_v23, 0.0 }
 0x134   :  { %v412_v20 = vpop.f32.mrf.mxu0 }
 0x135   :  { %v413_v22 = vadd.f32 %v412_v20, %v6532_v18  ;;  %v568_v31 = vmax.f32 %v411_v21, 0.0  ;;  %v5599_v21 = vld [vmem:[#allocation2 + $0xb0] ss:$8 sps:$4 sm:$0xff]  }
 0x136   :  { %v414_v24 = vpop.f32.mrf.mxu0  ;;  %1385 = vmatpush2.bf16.msra.mxu0 %v5599_v21 }
 0x137   :  { %v415_v27 = vadd.f32 %v414_v24, %v6529_v15  ;;  %v569_v29 = vmax.f32 %v413_v22, 0.0  ;;  %v5604_v24 = vld [vmem:[#allocation2 + $0xa4] ss:$8 sps:$4 sm:$0xff]  }
 0x138   :  { %v418_v30 = vpop.f32.mrf.mxu0  ;;  %1386 = vmatprep.subr.bf16.mxu0 %v5604_v24 }
 0x139   :  { %v570_v32 = vmax.f32 %v415_v27, 0.0  ;;  %v631_v38 = vpack.c.bf16 %v569_v29, %v567_v34  ;;  %v419_v43 = vadd.f32 %v418_v30, %v6532_v18  ;;  %v5602_v30 = vld [vmem:[#allocation2 + $0xa0] ss:$8 sps:$4 sm:$0xff]  }
 0x13a   :  { %v420_v35 = vpop.f32.mrf.mxu0  ;;  %1387 = vmatpush2.bf16.msra.mxu0 %v5602_v30 }
 0x13b   :  { %v632_v37 = vpack.c.bf16 %v570_v32, %v568_v31  ;;  %v421_v40 = vadd.f32 %v420_v35, %v6529_v15  ;;  %v571_v52 = vmax.f32 %v419_v43, 0.0  ;;  %1388 = vmatprep.subr.bf16.mxu0 %v5607_v33 }
 0x13c   :  { %v422_v39 = vpop.f32.mrf.mxu0 }
 0x13d   :  { %v423_v41 = vadd.f32 %v422_v39, %v6532_v18  ;;  %899 = vmatprep.mubr.bf16.mxu1 %v632_v37  ;;  %v572_v49 = vmax.f32 %v421_v40, 0.0  ;;  %v5605_v39 = vld [vmem:[#allocation2 + $0x90] ss:$8 sps:$4 sm:$0xff]  }
 0x13e   :  { %v424_v44 = vpop.f32.mrf.mxu0  ;;  %900 = vmatmul.mubr.bf16.vlgmr.msra.gmra.mxu1 %v631_v38  ;;  %1389 = vmatpush2.bf16.msra.mxu0 %v5605_v39 }
 0x13f   :  { %v425_v46 = vadd.f32 %v424_v44, %v6529_v15  ;;  %v573_v47 = vmax.f32 %v423_v41, 0.0 }
 0x140   :  { %v428_v48 = vpop.f32.mrf.mxu0 }
 0x141   :  { %v574_v50 = vmax.f32 %v425_v46, 0.0  ;;  %v633_v56 = vpack.c.bf16 %v573_v47, %v571_v52  ;;  %v429_v61 = vadd.f32 %v428_v48, %v6532_v18 }
 0x142   :  { %v430_v53 = vpop.f32.mrf.mxu0 }
 0x143   :  { %v634_v55 = vpack.c.bf16 %v574_v50, %v572_v49  ;;  %v431_v58 = vadd.f32 %v430_v53, %v6529_v15  ;;  %v575_v10 = vmax.f32 %v429_v61, 0.0 }
 0x144   :  { %v432_v57 = vpop.f32.mrf.mxu0 }
 0x145   :  { %v433_v59 = vadd.f32 %v432_v57, %v6532_v18  ;;  %909 = vmatprep.mubr.bf16.mxu1 %v634_v55  ;;  %v576_v5 = vmax.f32 %v431_v58, 0.0 }
 0x146   :  { %v434_v62 = vpop.f32.mrf.mxu0  ;;  %910 = vmatmul.mubr.bf16.gmra.mxu1 %v633_v56 }
 0x147   :  { %v435_v1 = vadd.f32 %v434_v62, %v6529_v15  ;;  %v577_v2 = vmax.f32 %v433_v59, 0.0 }
 0x148   :  { %v438_v3 = vpop.f32.mrf.mxu0 }
 0x149   :  { %v578_v6 = vmax.f32 %v435_v1, 0.0  ;;  %v635_v16 = vpack.c.bf16 %v577_v2, %v575_v10  ;;  %v439_v22 = vadd.f32 %v438_v3, %v6532_v18 }
 0x14a   :  { %v440_v11 = vpop.f32.mrf.mxu0 }
 0x14b   :  { %v636_v14 = vpack.c.bf16 %v578_v6, %v576_v5  ;;  %v441_v19 = vadd.f32 %v440_v11, %v6529_v15  ;;  %v579_v31 = vmax.f32 %v439_v22, 0.0 }
 0x14c   :  { %v442_v17 = vpop.f32.mrf.mxu0 }
 0x14d   :  { %v443_v20 = vadd.f32 %v442_v17, %v6532_v18  ;;  %919 = vmatprep.mubr.bf16.mxu1 %v636_v14  ;;  %v580_v28 = vmax.f32 %v441_v19, 0.0 }
 0x14e   :  { %v444_v23 = vpop.f32.mrf.mxu0  ;;  %920 = vmatmul.mubr.bf16.gmra.mxu1 %v635_v16 }
 0x14f   :  { %v445_v25 = vadd.f32 %v444_v23, %v6529_v15  ;;  %v581_v26 = vmax.f32 %v443_v20, 0.0 }
 0x150   :  { %v448_v27 = vpop.f32.mrf.mxu0 }
 0x151   :  { %v582_v29 = vmax.f32 %v445_v25, 0.0  ;;  %v637_v35 = vpack.c.bf16 %v581_v26, %v579_v31  ;;  %v449_v40 = vadd.f32 %v448_v27, %v6532_v18 }
 0x152   :  { %v450_v32 = vpop.f32.mrf.mxu0 }
 0x153   :  { %v638_v34 = vpack.c.bf16 %v582_v29, %v580_v28  ;;  %v451_v37 = vadd.f32 %v450_v32, %v6529_v15  ;;  %v583_v47 = vmax.f32 %v449_v40, 0.0 }
 0x154   :  { %v452_v36 = vpop.f32.mrf.mxu0 }
 0x155   :  { %v453_v38 = vadd.f32 %v452_v36, %v6532_v18  ;;  %929 = vmatprep.mubr.bf16.mxu1 %v638_v34  ;;  %v584_v45 = vmax.f32 %v451_v37, 0.0 }
 0x156   :  { %v454_v41 = vpop.f32.mrf.mxu0  ;;  %930 = vmatmul.mubr.bf16.gmra.mxu1 %v637_v35 }
 0x157   :  { %v455_v42 = vadd.f32 %v454_v41, %v6529_v15  ;;  %v585_v43 = vmax.f32 %v453_v38, 0.0 }
 0x158   :  { %v458_v44 = vpop.f32.mrf.mxu0 }
 0x159   :  { %v586_v46 = vmax.f32 %v455_v42, 0.0  ;;  %v639_v50 = vpack.c.bf16 %v585_v43, %v583_v47  ;;  %v459_v54 = vadd.f32 %v458_v44, %v6532_v18 }
 0x15a   :  { %v460_v48 = vpop.f32.mrf.mxu0 }
 0x15b   :  { %v640_v49 = vpack.c.bf16 %v586_v46, %v584_v45  ;;  %v461_v52 = vadd.f32 %v460_v48, %v6529_v15  ;;  %v587_v61 = vmax.f32 %v459_v54, 0.0 }
 0x15c   :  { %v462_v51 = vpop.f32.mrf.mxu0 }
 0x15d   :  { %v463_v53 = vadd.f32 %v462_v51, %v6532_v18  ;;  %939 = vmatprep.mubr.bf16.mxu1 %v640_v49  ;;  %v588_v59 = vmax.f32 %v461_v52, 0.0 }
 0x15e   :  { %v464_v55 = vpop.f32.mrf.mxu0  ;;  %940 = vmatmul.mubr.bf16.gmra.mxu1 %v639_v50 }
 0x15f   :  { %v465_v56 = vadd.f32 %v464_v55, %v6529_v15  ;;  %v589_v57 = vmax.f32 %v463_v53, 0.0 }
 0x160   :  { %v468_v58 = vpop.f32.mrf.mxu0 }
 0x161   :  { %v590_v60 = vmax.f32 %v465_v56, 0.0  ;;  %v641_v1 = vpack.c.bf16 %v589_v57, %v587_v61  ;;  %v469_v6 = vadd.f32 %v468_v58, %v6532_v18 }
 0x162   :  { %v470_v62 = vpop.f32.mrf.mxu0 }
 0x163   :  { %v642_v63 = vpack.c.bf16 %v590_v60, %v588_v59  ;;  %v471_v3 = vadd.f32 %v470_v62, %v6529_v15  ;;  %v591_v17 = vmax.f32 %v469_v6, 0.0 }
 0x164   :  { %v472_v2 = vpop.f32.mrf.mxu0 }
 0x165   :  { %v473_v5 = vadd.f32 %v472_v2, %v6532_v18  ;;  %949 = vmatprep.mubr.bf16.mxu1 %v642_v63  ;;  %v592_v14 = vmax.f32 %v471_v3, 0.0 }
 0x166   :  { %v474_v8 = vpop.f32.mrf.mxu0  ;;  %950 = vmatmul.mubr.bf16.gmra.mxu1 %v641_v1 }
 0x167   :  { %v475_v10 = vadd.f32 %v474_v8, %v6529_v15  ;;  %v593_v11 = vmax.f32 %v473_v5, 0.0  ;;  %v5610_v8 = vld [vmem:[#allocation2 + $0x84] ss:$8 sps:$4 sm:$0xff]  }
 0x168   :  { %v478_v13 = vpop.f32.mrf.mxu0  ;;  %1390 = vmatprep.subr.bf16.mxu0 %v5610_v8 }
 0x169   :  { %v594_v16 = vmax.f32 %v475_v10, 0.0  ;;  %v643_v21 = vpack.c.bf16 %v593_v11, %v591_v17  ;;  %v479_v25 = vadd.f32 %v478_v13, %v6532_v18  ;;  %v5608_v11 = vld [vmem:[#allocation2 + $0x80] ss:$8 sps:$4 sm:$0xff]  }
 0x16a   :  { %v480_v19 = vpop.f32.mrf.mxu0  ;;  %1391 = vmatpush2.bf16.msra.mxu0 %v5608_v11 }
 0x16b   :  { %v644_v20 = vpack.c.bf16 %v594_v16, %v592_v14  ;;  %v481_v23 = vadd.f32 %v480_v19, %v6529_v15  ;;  %v595_v32 = vmax.f32 %v479_v25, 0.0 }
 0x16c   :  { %v482_v22 = vpop.f32.mrf.mxu0 }
 0x16d   :  { %v483_v24 = vadd.f32 %v482_v22, %v6532_v18  ;;  %959 = vmatprep.mubr.bf16.mxu1 %v644_v20  ;;  %v596_v30 = vmax.f32 %v481_v23, 0.0 }
 0x16e   :  { %v484_v26 = vpop.f32.mrf.mxu0  ;;  %960 = vmatmul.mubr.bf16.gmra.mxu1 %v643_v21 }
 0x16f   :  { %v485_v27 = vadd.f32 %v484_v26, %v6529_v15  ;;  %v597_v28 = vmax.f32 %v483_v24, 0.0 }
 0x170   :  { %v488_v29 = vpop.f32.mrf.mxu0 }
 0x171   :  { %v598_v31 = vmax.f32 %v485_v27, 0.0  ;;  %v645_v35 = vpack.c.bf16 %v597_v28, %v595_v32  ;;  %v489_v39 = vadd.f32 %v488_v29, %v6532_v18 }
 0x172   :  { %v490_v33 = vpop.f32.mrf.mxu0 }
 0x173   :  { %v646_v34 = vpack.c.bf16 %v598_v31, %v596_v30  ;;  %v491_v37 = vadd.f32 %v490_v33, %v6529_v15  ;;  %v599_v46 = vmax.f32 %v489_v39, 0.0 }
 0x174   :  { %v492_v36 = vpop.f32.mrf.mxu0 }
 0x175   :  { %v493_v38 = vadd.f32 %v492_v36, %v6532_v18  ;;  %969 = vmatprep.mubr.bf16.mxu1 %v646_v34  ;;  %v600_v44 = vmax.f32 %v491_v37, 0.0 }
 0x176   :  { %v494_v40 = vpop.f32.mrf.mxu0  ;;  %970 = vmatmul.mubr.bf16.gmra.mxu1 %v645_v35 }
 0x177   :  { %v495_v41 = vadd.f32 %v494_v40, %v6529_v15  ;;  %v601_v42 = vmax.f32 %v493_v38, 0.0 }
 0x178   :  { %v498_v43 = vpop.f32.mrf.mxu0 }
 0x179   :  { %v602_v45 = vmax.f32 %v495_v41, 0.0  ;;  %v647_v49 = vpack.c.bf16 %v601_v42, %v599_v46  ;;  %v499_v53 = vadd.f32 %v498_v43, %v6532_v18 }
 0x17a   :  { %v500_v47 = vpop.f32.mrf.mxu0 }
 0x17b   :  { %v648_v48 = vpack.c.bf16 %v602_v45, %v600_v44  ;;  %v501_v51 = vadd.f32 %v500_v47, %v6529_v15  ;;  %v603_v60 = vmax.f32 %v499_v53, 0.0 }
 0x17c   :  { %v502_v50 = vpop.f32.mrf.mxu0 }
 0x17d   :  { %v503_v52 = vadd.f32 %v502_v50, %v6532_v18  ;;  %979 = vmatprep.mubr.bf16.mxu1 %v648_v48  ;;  %v604_v58 = vmax.f32 %v501_v51, 0.0 }
 0x17e   :  { %v504_v54 = vpop.f32.mrf.mxu0  ;;  %980 = vmatmul.mubr.bf16.gmra.mxu1 %v647_v49 }
 0x17f   :  { %v505_v55 = vadd.f32 %v504_v54, %v6529_v15  ;;  %v605_v56 = vmax.f32 %v503_v52, 0.0 }
 0x180   :  { %v508_v57 = vpop.f32.mrf.mxu0 }
 0x181   :  { %v606_v59 = vmax.f32 %v505_v55, 0.0  ;;  %v649_v63 = vpack.c.bf16 %v605_v56, %v603_v60  ;;  %v509_v5 = vadd.f32 %v508_v57, %v6532_v18 }
 0x182   :  { %v510_v61 = vpop.f32.mrf.mxu0 }
 0x183   :  { %v650_v62 = vpack.c.bf16 %v606_v59, %v604_v58  ;;  %v511_v2 = vadd.f32 %v510_v61, %v6529_v15  ;;  %v607_v19 = vmax.f32 %v509_v5, 0.0 }
 0x184   :  { %v512_v1 = vpop.f32.mrf.mxu0 }
 0x185   :  { %v513_v3 = vadd.f32 %v512_v1, %v6532_v18  ;;  %989 = vmatprep.mubr.bf16.mxu1 %v650_v62  ;;  %v608_v16 = vmax.f32 %v511_v2, 0.0 }
 0x186   :  { %v514_v6 = vpop.f32.mrf.mxu0  ;;  %990 = vmatmul.mubr.bf16.gmra.mxu1 %v649_v63 }
 0x187   :  { %v515_v10 = vadd.f32 %v514_v6, %v6529_v15  ;;  %v609_v13 = vmax.f32 %v513_v3, 0.0 }
 0x188   :  { %v518_v14 = vpop.f32.mrf.mxu0 }
 0x189   :  { %v610_v17 = vmax.f32 %v515_v10, 0.0  ;;  %v651_v22 = vpack.c.bf16 %v609_v13, %v607_v19  ;;  %v519_v26 = vadd.f32 %v518_v14, %v6532_v18 }
 0x18a   :  { %v520_v20 = vpop.f32.mrf.mxu0 }
 0x18b   :  { %v652_v21 = vpack.c.bf16 %v610_v17, %v608_v16  ;;  %v521_v24 = vadd.f32 %v520_v20, %v6529_v15  ;;  %v611_v33 = vmax.f32 %v519_v26, 0.0 }
 0x18c   :  { %v522_v23 = vpop.f32.mrf.mxu0 }
 0x18d   :  { %v523_v25 = vadd.f32 %v522_v23, %v6532_v18  ;;  %999 = vmatprep.mubr.bf16.mxu1 %v652_v21  ;;  %v612_v31 = vmax.f32 %v521_v24, 0.0 }
 0x18e   :  { %v524_v27 = vpop.f32.mrf.mxu0  ;;  %1000 = vmatmul.mubr.bf16.gmra.mxu1 %v651_v22 }
 0x18f   :  { %v525_v28 = vadd.f32 %v524_v27, %v6529_v15  ;;  %v613_v29 = vmax.f32 %v523_v25, 0.0 }
 0x190   :  { %v528_v30 = vpop.f32.mrf.mxu0 }
 0x191   :  { %v614_v32 = vmax.f32 %v525_v28, 0.0  ;;  %v653_v36 = vpack.c.bf16 %v613_v29, %v611_v33  ;;  %v529_v40 = vadd.f32 %v528_v30, %v6532_v18 }
 0x192   :  { %v530_v34 = vpop.f32.mrf.mxu0 }
 0x193   :  { %v654_v35 = vpack.c.bf16 %v614_v32, %v612_v31  ;;  %v531_v38 = vadd.f32 %v530_v34, %v6529_v15  ;;  %v615_v47 = vmax.f32 %v529_v40, 0.0  ;;  %v5613_v34 = vld [vmem:[#allocation4 + $0x74] ss:$8 sps:$4 sm:$0xff]  }
 0x194   :  { %v532_v37 = vpop.f32.mrf.mxu0  ;;  %1853 = vmatprep.subr.bf16.mxu0 %v5613_v34  ;;  %5448 = vmatprep.subr.bf16.mxu1 %v5613_v34  ;;  %v6613_v40 = vld [vmem:[#allocation4 + $0x34] ss:$8 sps:$4 sm:$0xff]  }
 0x195   :  { %v533_v39 = vadd.f32 %v532_v37, %v6532_v18  ;;  %1009 = vmatprep.mubr.bf16.mxu1 %v654_v35  ;;  %v616_v45 = vmax.f32 %v531_v38, 0.0  ;;  %v5611_v35 = vld [vmem:[#allocation4 + $0x70] ss:$8 sps:$4 sm:$0xff]   ;;  %v6598_v37 = vld [vmem:[#allocation4 + $0x60] ss:$8 sps:$4 sm:$0xff]  }
 0x196   :  { %v534_v41 = vpop.f32.mrf.mxu0  ;;  %1010 = vmatmul.mubr.bf16.gmra.mxu1 %v653_v36  ;;  %v5616_v36 = vld [vmem:[#allocation4 + $0x64] ss:$8 sps:$4 sm:$0xff]  }
 0x197   :  { %v535_v42 = vadd.f32 %v534_v41, %v6529_v15  ;;  %v617_v43 = vmax.f32 %v533_v39, 0.0  ;;  %5464 = vmatpush1.bf16.msra.mxu1 %v5611_v35  ;;  %v6607_v38 = vld [vmem:[#allocation4 + $0x44] ss:$8 sps:$4 sm:$0xff]   ;;  %v6609_v39 = vld [vmem:[#allocation4 + $0x40] ss:$8 sps:$4 sm:$0xff]  }
 0x198   :  { %v538_v44 = vpop.f32.mrf.mxu0  ;;  %5449 = vmatprep.subr.bf16.mxu1 %v5616_v36  ;;  %v6615_v41 = vld [vmem:[#allocation4 + $0x30] ss:$8 sps:$4 sm:$0xff]  }
 0x199   :  { %v618_v46 = vmax.f32 %v535_v42, 0.0  ;;  %v655_v50 = vpack.c.bf16 %v617_v43, %v615_v47  ;;  %v539_v54 = vadd.f32 %v538_v44, %v6532_v18  ;;  %v695_v42 = vld [vmem:[%s7896_s14] sm:$0x3] }
 0x19a   :  { %v540_v48 = vpop.f32.mrf.mxu0  ;;  %v6623_v44 = vrot.slane %v695_v42, %v6521_v9 }
 0x19b   :  { %v656_v49 = vpack.c.bf16 %v618_v46, %v616_v45  ;;  %v541_v52 = vadd.f32 %v540_v48, %v6529_v15  ;;  %v619_v61 = vmax.f32 %v539_v54, 0.0  ;;  %5465 = vmatpush1.bf16.msra.mxu1 %v6598_v37  ;;  %v6625_v45 = vld [vmem:[#allocation4 + $0x24] ss:$8 sps:$4 sm:$0xff]   ;;  %v6628_v46 = vrot.slane %v695_v42, %v6523_v12  ;;  %v6630_v48 = vld [vmem:[#allocation4 + $0x20] ss:$8 sps:$4 sm:$0xff]  }
 0x19c   :  { %v542_v51 = vpop.f32.mrf.mxu0  ;;  %v6637_v54 = vld [vmem:[#allocation4 + $0x14] ss:$8 sps:$4 sm:$0xff]  }
 0x19d   :  { %v543_v53 = vadd.f32 %v542_v51, %v6532_v18  ;;  %1019 = vmatprep.mubr.bf16.mxu1 %v656_v49  ;;  %v620_v59 = vmax.f32 %v541_v52, 0.0 }
 0x19e   :  { %v544_v55 = vpop.f32.mrf.mxu0  ;;  %1020 = vmatmul.mubr.bf16.gmra.mxu1 %v655_v50 }
 0x19f   :  { %v545_v56 = vadd.f32 %v544_v55, %v6529_v15  ;;  %v621_v57 = vmax.f32 %v543_v53, 0.0 }
 0x1a0   :  { %v548_v58 = vpop.f32.mrf.mxu0 }
 0x1a1   :  { %v622_v60 = vmax.f32 %v545_v56, 0.0  ;;  %v657_v1 = vpack.c.bf16 %v621_v57, %v619_v61  ;;  %v549_v6 = vadd.f32 %v548_v58, %v6532_v18  ;;  %v6640_v56 = vld [vmem:[#allocation4 + $0x10] ss:$8 sps:$4 sm:$0xff]  }
 0x1a2   :  { %v550_v62 = vpop.f32.mrf.mxu0 }
 0x1a3   :  { %v658_v63 = vpack.c.bf16 %v622_v60, %v620_v59  ;;  %v551_v3 = vadd.f32 %v550_v62, %v6529_v15  ;;  %v623_v17 = vmax.f32 %v549_v6, 0.0  ;;  %v6642_v59 = vld [vmem:[#allocation4 + $0x4] ss:$8 sps:$4 sm:$0xff]   ;;  %v6649_v6 = vld [vmem:[#allocation4 + $0xf4] ss:$8 sps:$4 sm:$0xff]  }
 0x1a4   :  { %v552_v2 = vpop.f32.mrf.mxu0 }
 0x1a5   :  { %v553_v5 = vadd.f32 %v552_v2, %v6532_v18  ;;  %1029 = vmatprep.mubr.bf16.mxu1 %v658_v63  ;;  %v624_v14 = vmax.f32 %v551_v3, 0.0  ;;  %v6647_v2 = vld [vmem:[#allocation4] ss:$8 sps:$4 sm:$0xff]  }
 0x1a6   :  { %v554_v8 = vpop.f32.mrf.mxu0  ;;  %1030 = vmatmul.mubr.bf16.gmra.mxu1 %v657_v1 }
 0x1a7   :  { %v555_v10 = vadd.f32 %v554_v8, %v6529_v15  ;;  %v625_v11 = vmax.f32 %v553_v5, 0.0 }
 0x1a8   :  { %v558_v13 = vpop.f32.mrf.mxu0 }
 0x1a9   :  { %v626_v16 = vmax.f32 %v555_v10, 0.0  ;;  %v659_v21 = vpack.c.bf16 %v625_v11, %v623_v17  ;;  %v559_v25 = vadd.f32 %v558_v13, %v6532_v18 }
 0x1aa   :  { %v560_v19 = vpop.f32.mrf.mxu0 }
 0x1ab   :  { %v660_v20 = vpack.c.bf16 %v626_v16, %v624_v14  ;;  %v561_v23 = vadd.f32 %v560_v19, %v6529_v15  ;;  %v627_v31 = vmax.f32 %v559_v25, 0.0  ;;  %v6657_v16 = vld [vmem:[#allocation4 + $0xf0] ss:$8 sps:$4 sm:$0xff]  }
 0x1ac   :  { %v562_v22 = vpop.f32.mrf.mxu0 }
 0x1ad   :  { %v563_v24 = vadd.f32 %v562_v22, %v6532_v18  ;;  %1039 = vmatprep.mubr.bf16.mxu1 %v660_v20  ;;  %v628_v29 = vmax.f32 %v561_v23, 0.0  ;;  %v6603_v18 = vld [vmem:[#allocation4 + $0x50] ss:$8 sps:$4 sm:$0xff]   ;;  %v6659_v20 = vld [vmem:[#allocation4 + $0xe4] ss:$8 sps:$4 sm:$0xff]  }
 0x1ae   :  { %v564_v26 = vpop.f32.mrf.mxu0  ;;  %1040 = vmatmul.mubr.bf16.gmra.mxu1 %v659_v21 }
 0x1af   :  { %v565_v27 = vadd.f32 %v564_v26, %v6529_v15  ;;  %v629_v28 = vmax.f32 %v563_v24, 0.0  ;;  %v6601_v15 = vld [vmem:[#allocation4 + $0x54] ss:$8 sps:$4 sm:$0xff]   ;;  %v6664_v26 = vld [vmem:[#allocation4 + $0xe0] ss:$8 sps:$4 sm:$0xff]  }
 0x1b0   :  { %5450 = vmatprep.subr.bf16.mxu1 %v6601_v15 }
 0x1b1   :  { %v630_v30 = vmax.f32 %v565_v27, 0.0  ;;  %v661_v33 = vpack.c.bf16 %v629_v28, %v627_v31  ;;  %5466 = vmatpush1.bf16.msra.mxu1 %v6603_v18 }
 0x1b2   :  { %5451 = vmatprep.subr.bf16.mxu1 %v6607_v38 }
 0x1b3   :  { %v662_v32 = vpack.c.bf16 %v630_v30, %v628_v29  ;;  %v6667_v29 = vld [vmem:[#allocation4 + $0xd4] ss:$8 sps:$4 sm:$0xff]  }
 0x1b5   :  { %1049 = vmatprep.mubr.bf16.mxu1 %v662_v32  ;;  %5467 = vmatpush1.bf16.msra.mxu1 %v6609_v39 }
 0x1b6   :  { %1050 = vmatmul.mubr.bf16.gmra.mxu1 %v661_v33  ;;  %5452 = vmatprep.subr.bf16.mxu1 %v6613_v40 }
 0x1b9   :  { %5468 = vmatpush1.bf16.msra.mxu1 %v6615_v41 }
 0x1ba   :  { %5453 = vmatprep.subr.bf16.mxu1 %v6625_v45 }
 0x1bd   :  { %5469 = vmatpush1.bf16.msra.mxu1 %v6630_v48 }
 0x1be   :  { %5454 = vmatprep.subr.bf16.mxu1 %v6637_v54 }
 0x1c1   :  { %5470 = vmatpush1.bf16.msra.mxu1 %v6640_v56 }
 0x1c2   :  { %5455 = vmatprep.subr.bf16.mxu1 %v6642_v59 }
 0x1c5   :  { %5471 = vmatpush1.bf16.msra.mxu1 %v6647_v2 }
 0x1c6   :  { %5456 = vmatprep.subr.bf16.mxu1 %v6649_v6 }
 0x1c9   :  { %5472 = vmatpush2.bf16.msra.mxu1 %v6657_v16 }
 0x1ca   :  { %5457 = vmatprep.subr.bf16.mxu1 %v6659_v20 }
 0x1cd   :  { %5473 = vmatpush2.bf16.msra.mxu1 %v6664_v26 }
 0x1ce   :  { %5458 = vmatprep.subr.bf16.mxu1 %v6667_v29 }
 0x1fe   :  { %v901_v43 = vpop.f32.mrf.mxu1 }
 0x1ff   :  { %v902_v52 = vadd.f32 %v901_v43, %v6628_v46 }
 0x200   :  { %v903_v47 = vpop.f32.mrf.mxu1 }
 0x201   :  { %v904_v50 = vadd.f32 %v903_v47, %v6623_v44  ;;  %v1060_v62 = vmax.f32 %v902_v52, 0.0 }
 0x202   :  { %v905_v49 = vpop.f32.mrf.mxu1 }
 0x203   :  { %v906_v51 = vadd.f32 %v905_v49, %v6628_v46  ;;  %v1061_v60 = vmax.f32 %v904_v50, 0.0 }
 0x204   :  { %v907_v53 = vpop.f32.mrf.mxu1 }
 0x205   :  { %v908_v55 = vadd.f32 %v907_v53, %v6623_v44  ;;  %v1062_v57 = vmax.f32 %v906_v51, 0.0 }
 0x206   :  { %v911_v58 = vpop.f32.mrf.mxu1 }
 0x207   :  { %v1063_v61 = vmax.f32 %v908_v55, 0.0  ;;  %v1124_v3 = vpack.c.bf16 %v1062_v57, %v1060_v62  ;;  %v912_v11 = vadd.f32 %v911_v58, %v6628_v46  ;;  %v6699_v62 = vld [vmem:[#allocation4 + $0xa4] ss:$8 sps:$4 sm:$0xff]  }
 0x208   :  { %v913_v63 = vpop.f32.mrf.mxu1 }
 0x209   :  { %v1125_v1 = vpack.c.bf16 %v1063_v61, %v1061_v60  ;;  %v914_v8 = vadd.f32 %v913_v63, %v6623_v44  ;;  %v1064_v23 = vmax.f32 %v912_v11, 0.0 }
 0x20a   :  { %v915_v5 = vpop.f32.mrf.mxu1 }
 0x20b   :  { %v916_v10 = vadd.f32 %v915_v5, %v6628_v46  ;;  %1392 = vmatprep.mubr.bf16.mxu0 %v1125_v1  ;;  %v1065_v21 = vmax.f32 %v914_v8, 0.0 }
 0x20c   :  { %v917_v13 = vpop.f32.mrf.mxu1  ;;  %1393 = vmatmul.mubr.bf16.vlgmr.msra.gmra.mxu0 %v1124_v3 }
 0x20d   :  { %v918_v14 = vadd.f32 %v917_v13, %v6623_v44  ;;  %1854 = vmatpush1.bf16.msra.mxu0 %v5611_v35  ;;  %v1066_v17 = vmax.f32 %v916_v10, 0.0  ;;  %v6676_v35 = vld [vmem:[#allocation4 + $0xd0] ss:$8 sps:$4 sm:$0xff]  }
 0x20e   :  { %v921_v19 = vpop.f32.mrf.mxu1  ;;  %1855 = vmatprep.subr.bf16.mxu0 %v5616_v36  ;;  %5474 = vmatpush2.bf16.msra.mxu1 %v6676_v35 }
 0x20f   :  { %v1067_v22 = vmax.f32 %v918_v14, 0.0  ;;  %v1126_v27 = vpack.c.bf16 %v1066_v17, %v1064_v23  ;;  %v922_v32 = vadd.f32 %v921_v19, %v6628_v46 }
 0x210   :  { %v923_v24 = vpop.f32.mrf.mxu1 }
 0x211   :  { %v1127_v25 = vpack.c.bf16 %v1067_v22, %v1065_v21  ;;  %1856 = vmatpush1.bf16.msra.mxu0 %v6598_v37  ;;  %v924_v30 = vadd.f32 %v923_v24, %v6623_v44  ;;  %v1068_v47 = vmax.f32 %v922_v32, 0.0 }
 0x212   :  { %v925_v28 = vpop.f32.mrf.mxu1  ;;  %1857 = vmatprep.subr.bf16.mxu0 %v6601_v15  ;;  %v6679_v15 = vld [vmem:[#allocation4 + $0xc4] ss:$8 sps:$4 sm:$0xff]  }
 0x213   :  { %v926_v31 = vadd.f32 %v925_v28, %v6628_v46  ;;  %1402 = vmatprep.mubr.bf16.mxu0 %v1127_v25  ;;  %v1069_v42 = vmax.f32 %v924_v30, 0.0  ;;  %5459 = vmatprep.subr.bf16.mxu1 %v6679_v15 }
 0x214   :  { %v927_v33 = vpop.f32.mrf.mxu1  ;;  %1403 = vmatmul.mubr.bf16.gmra.mxu0 %v1126_v27 }
 0x215   :  { %v928_v34 = vadd.f32 %v927_v33, %v6623_v44  ;;  %1858 = vmatpush1.bf16.msra.mxu0 %v6603_v18  ;;  %v1070_v36 = vmax.f32 %v926_v31, 0.0  ;;  %v6684_v18 = vld [vmem:[#allocation4 + $0xc0] ss:$8 sps:$4 sm:$0xff]  }
 0x216   :  { %v931_v37 = vpop.f32.mrf.mxu1  ;;  %1859 = vmatprep.subr.bf16.mxu0 %v6607_v38  ;;  %v6687_v38 = vld [vmem:[#allocation4 + $0xb4] ss:$8 sps:$4 sm:$0xff]   ;;  %5475 = vmatpush2.bf16.msra.mxu1 %v6684_v18 }
 0x217   :  { %v1071_v43 = vmax.f32 %v928_v34, 0.0  ;;  %v1128_v51 = vpack.c.bf16 %v1070_v36, %v1068_v47  ;;  %v932_v57 = vadd.f32 %v931_v37, %v6628_v46  ;;  %5460 = vmatprep.subr.bf16.mxu1 %v6687_v38 }
 0x218   :  { %v933_v49 = vpop.f32.mrf.mxu1 }
 0x219   :  { %v1129_v50 = vpack.c.bf16 %v1071_v43, %v1069_v42  ;;  %1860 = vmatpush1.bf16.msra.mxu0 %v6609_v39  ;;  %v934_v53 = vadd.f32 %v933_v49, %v6623_v44  ;;  %v1072_v3 = vmax.f32 %v932_v57, 0.0 }
 0x21a   :  { %v935_v52 = vpop.f32.mrf.mxu1  ;;  %1861 = vmatprep.subr.bf16.mxu0 %v6613_v40  ;;  %v6696_v40 = vld [vmem:[#allocation4 + $0xb0] ss:$8 sps:$4 sm:$0xff]  }
 0x21b   :  { %v936_v55 = vadd.f32 %v935_v52, %v6628_v46  ;;  %1412 = vmatprep.mubr.bf16.mxu0 %v1129_v50  ;;  %v1073_v63 = vmax.f32 %v934_v53, 0.0  ;;  %5476 = vmatpush2.bf16.msra.mxu1 %v6696_v40 }
 0x21c   :  { %v937_v58 = vpop.f32.mrf.mxu1  ;;  %1413 = vmatmul.mubr.bf16.gmra.mxu0 %v1128_v51  ;;  %5461 = vmatprep.subr.bf16.mxu1 %v6699_v62 }
 0x21d   :  { %v938_v39 = vadd.f32 %v937_v58, %v6623_v44  ;;  %1862 = vmatpush1.bf16.msra.mxu0 %v6615_v41  ;;  %v1074_v60 = vmax.f32 %v936_v55, 0.0  ;;  %v6704_v41 = vld [vmem:[#allocation4 + $0xa0] ss:$8 sps:$4 sm:$0xff]  }
 0x21e   :  { %v941_v61 = vpop.f32.mrf.mxu1  ;;  %1863 = vmatprep.subr.bf16.mxu0 %v6625_v45  ;;  %v6707_v45 = vld [vmem:[#allocation4 + $0x94] ss:$8 sps:$4 sm:$0xff]  }
 0x21f   :  { %v1075_v1 = vmax.f32 %v938_v39, 0.0  ;;  %v1130_v10 = vpack.c.bf16 %v1074_v60, %v1072_v3  ;;  %5477 = vmatpush2.bf16.msra.mxu1 %v6704_v41  ;;  %v942_v17 = vadd.f32 %v941_v61, %v6628_v46 }
 0x220   :  { %v943_v5 = vpop.f32.mrf.mxu1  ;;  %5462 = vmatprep.subr.bf16.mxu1 %v6707_v45 }
 0x221   :  { %v1131_v8 = vpack.c.bf16 %v1075_v1, %v1073_v63  ;;  %1864 = vmatpush1.bf16.msra.mxu0 %v6630_v48  ;;  %v944_v13 = vadd.f32 %v943_v5, %v6623_v44  ;;  %v1076_v25 = vmax.f32 %v942_v17, 0.0 }
 0x222   :  { %v945_v11 = vpop.f32.mrf.mxu1  ;;  %1865 = vmatprep.subr.bf16.mxu0 %v6637_v54  ;;  %v6716_v54 = vld [vmem:[#allocation4 + $0x90] ss:$8 sps:$4 sm:$0xff]  }
 0x223   :  { %v946_v14 = vadd.f32 %v945_v11, %v6628_v46  ;;  %1422 = vmatprep.mubr.bf16.mxu0 %v1131_v8  ;;  %v1077_v23 = vmax.f32 %v944_v13, 0.0  ;;  %5478 = vmatpush2.bf16.msra.mxu1 %v6716_v54 }
 0x224   :  { %v947_v19 = vpop.f32.mrf.mxu1  ;;  %1423 = vmatmul.mubr.bf16.gmra.mxu0 %v1130_v10 }
 0x225   :  { %v948_v48 = vadd.f32 %v947_v19, %v6623_v44  ;;  %1866 = vmatpush1.bf16.msra.mxu0 %v6640_v56  ;;  %v1078_v21 = vmax.f32 %v946_v14, 0.0 }
 0x226   :  { %v951_v22 = vpop.f32.mrf.mxu1  ;;  %1867 = vmatprep.subr.bf16.mxu0 %v6642_v59 }
 0x227   :  { %v1079_v24 = vmax.f32 %v948_v48, 0.0  ;;  %v1132_v30 = vpack.c.bf16 %v1078_v21, %v1076_v25  ;;  %v952_v59 = vadd.f32 %v951_v22, %v6628_v46 }
 0x228   :  { %v953_v27 = vpop.f32.mrf.mxu1 }
 0x229   :  { %v1133_v28 = vpack.c.bf16 %v1079_v24, %v1077_v23  ;;  %1868 = vmatpush1.bf16.msra.mxu0 %v6647_v2  ;;  %v954_v56 = vadd.f32 %v953_v27, %v6623_v44 }
 0x22a   :  { %v955_v31 = vpop.f32.mrf.mxu1  ;;  %1869 = vmatprep.subr.bf16.mxu0 %v6649_v6  ;;  %v1080_v6 = vmax.f32 %v952_v59, 0.0 }
 0x22b   :  { %v956_v32 = vadd.f32 %v955_v31, %v6628_v46  ;;  %1432 = vmatprep.mubr.bf16.mxu0 %v1133_v28  ;;  %v1081_v2 = vmax.f32 %v954_v56, 0.0 }
 0x22c   :  { %v957_v33 = vpop.f32.mrf.mxu1  ;;  %1433 = vmatmul.mubr.bf16.gmra.mxu0 %v1132_v30 }
 0x22d   :  { %v958_v34 = vadd.f32 %v957_v33, %v6623_v44  ;;  %1870 = vmatpush2.bf16.msra.mxu0 %v6657_v16  ;;  %v1082_v36 = vmax.f32 %v956_v32, 0.0 }
 0x22e   :  { %v961_v37 = vpop.f32.mrf.mxu1  ;;  %1871 = vmatprep.subr.bf16.mxu0 %v6659_v20 }
 0x22f   :  { %v1083_v42 = vmax.f32 %v958_v34, 0.0  ;;  %v1134_v49 = vpack.c.bf16 %v1082_v36, %v1080_v6  ;;  %v962_v16 = vadd.f32 %v961_v37, %v6628_v46 }
 0x230   :  { %v963_v43 = vpop.f32.mrf.mxu1 }
 0x231   :  { %v1135_v47 = vpack.c.bf16 %v1083_v42, %v1081_v2  ;;  %1872 = vmatpush2.bf16.msra.mxu0 %v6664_v26  ;;  %v964_v51 = vadd.f32 %v963_v43, %v6623_v44 }
 0x232   :  { %v965_v50 = vpop.f32.mrf.mxu1  ;;  %1873 = vmatprep.subr.bf16.mxu0 %v6667_v29  ;;  %v1084_v29 = vmax.f32 %v962_v16, 0.0 }
 0x233   :  { %v966_v52 = vadd.f32 %v965_v50, %v6628_v46  ;;  %1442 = vmatprep.mubr.bf16.mxu0 %v1135_v47  ;;  %v1085_v26 = vmax.f32 %v964_v51, 0.0 }
 0x234   :  { %v967_v53 = vpop.f32.mrf.mxu1  ;;  %1443 = vmatmul.mubr.bf16.gmra.mxu0 %v1134_v49 }
 0x235   :  { %v968_v20 = vadd.f32 %v967_v53, %v6623_v44  ;;  %1874 = vmatpush2.bf16.msra.mxu0 %v6676_v35  ;;  %v1086_v55 = vmax.f32 %v966_v52, 0.0  ;;  %v5658_v53 = vld [vmem:[#allocation4 + $0x84] ss:$8 sps:$4 sm:$0xff]  }
 0x236   :  { %v971_v57 = vpop.f32.mrf.mxu1  ;;  %1875 = vmatprep.subr.bf16.mxu0 %v6679_v15  ;;  %5463 = vmatprep.subr.bf16.mxu1 %v5658_v53 }
 0x237   :  { %v1087_v58 = vmax.f32 %v968_v20, 0.0  ;;  %v1136_v61 = vpack.c.bf16 %v1086_v55, %v1084_v29  ;;  %v972_v35 = vadd.f32 %v971_v57, %v6628_v46  ;;  %v5656_v55 = vld [vmem:[#allocation4 + $0x80] ss:$8 sps:$4 sm:$0xff]  }
 0x238   :  { %v973_v39 = vpop.f32.mrf.mxu1  ;;  %5479 = vmatpush2.bf16.msra.mxu1 %v5656_v55 }
 0x239   :  { %v1137_v60 = vpack.c.bf16 %v1087_v58, %v1085_v26  ;;  %1876 = vmatpush2.bf16.msra.mxu0 %v6684_v18  ;;  %v974_v1 = vadd.f32 %v973_v39, %v6623_v44 }
 0x23a   :  { %v975_v63 = vpop.f32.mrf.mxu1  ;;  %1877 = vmatprep.subr.bf16.mxu0 %v6687_v38  ;;  %v1088_v38 = vmax.f32 %v972_v35, 0.0 }
 0x23b   :  { %v976_v3 = vadd.f32 %v975_v63, %v6628_v46  ;;  %1452 = vmatprep.mubr.bf16.mxu0 %v1137_v60  ;;  %v1089_v18 = vmax.f32 %v974_v1, 0.0 }
 0x23c   :  { %v977_v5 = vpop.f32.mrf.mxu1  ;;  %1453 = vmatmul.mubr.bf16.gmra.mxu0 %v1136_v61 }
 0x23d   :  { %v978_v15 = vadd.f32 %v977_v5, %v6623_v44  ;;  %1878 = vmatpush2.bf16.msra.mxu0 %v6696_v40  ;;  %v1090_v8 = vmax.f32 %v976_v3, 0.0 }
 0x23e   :  { %v981_v10 = vpop.f32.mrf.mxu1  ;;  %1879 = vmatprep.subr.bf16.mxu0 %v6699_v62 }
 0x23f   :  { %v1091_v11 = vmax.f32 %v978_v15, 0.0  ;;  %v1138_v17 = vpack.c.bf16 %v1090_v8, %v1088_v38  ;;  %v982_v40 = vadd.f32 %v981_v10, %v6628_v46 }
 0x240   :  { %v983_v13 = vpop.f32.mrf.mxu1 }
 0x241   :  { %v1139_v14 = vpack.c.bf16 %v1091_v11, %v1089_v18  ;;  %1880 = vmatpush2.bf16.msra.mxu0 %v6704_v41  ;;  %v984_v48 = vadd.f32 %v983_v13, %v6623_v44  ;;  %v1092_v27 = vmax.f32 %v982_v40, 0.0 }
 0x242   :  { %v985_v19 = vpop.f32.mrf.mxu1  ;;  %1881 = vmatprep.subr.bf16.mxu0 %v6707_v45 }
 0x243   :  { %v986_v21 = vadd.f32 %v985_v19, %v6628_v46  ;;  %1462 = vmatprep.mubr.bf16.mxu0 %v1139_v14  ;;  %v1093_v41 = vmax.f32 %v984_v48, 0.0 }
 0x244   :  { %v987_v22 = vpop.f32.mrf.mxu1  ;;  %1463 = vmatmul.mubr.bf16.gmra.mxu0 %v1138_v17 }
 0x245   :  { %v988_v62 = vadd.f32 %v987_v22, %v6623_v44  ;;  %1882 = vmatpush2.bf16.msra.mxu0 %v6716_v54  ;;  %v1094_v23 = vmax.f32 %v986_v21, 0.0 }
 0x246   :  { %v991_v24 = vpop.f32.mrf.mxu1  ;;  %1883 = vmatprep.subr.bf16.mxu0 %v5658_v53 }
 0x247   :  { %v1095_v25 = vmax.f32 %v988_v62, 0.0  ;;  %v1140_v30 = vpack.c.bf16 %v1094_v23, %v1092_v27  ;;  %v992_v59 = vadd.f32 %v991_v24, %v6628_v46 }
 0x248   :  { %v993_v28 = vpop.f32.mrf.mxu1 }
 0x249   :  { %v1141_v45 = vpack.c.bf16 %v1095_v25, %v1093_v41  ;;  %v994_v56 = vadd.f32 %v993_v28, %v6623_v44  ;;  %v1096_v42 = vmax.f32 %v992_v59, 0.0  ;;  %1884 = vmatpush2.bf16.msra.mxu0 %v5656_v55 }
 0x24a   :  { %v995_v31 = vpop.f32.mrf.mxu1 }
 0x24b   :  { %v996_v32 = vadd.f32 %v995_v31, %v6628_v46  ;;  %1472 = vmatprep.mubr.bf16.mxu0 %v1141_v45  ;;  %v1097_v37 = vmax.f32 %v994_v56, 0.0 }
 0x24c   :  { %v997_v33 = vpop.f32.mrf.mxu1  ;;  %1473 = vmatmul.mubr.bf16.gmra.mxu0 %v1140_v30 }
 0x24d   :  { %v998_v54 = vadd.f32 %v997_v33, %v6623_v44  ;;  %v1098_v34 = vmax.f32 %v996_v32, 0.0 }
 0x24e   :  { %v1001_v36 = vpop.f32.mrf.mxu1 }
 0x24f   :  { %v1099_v2 = vmax.f32 %v998_v54, 0.0  ;;  %v1142_v47 = vpack.c.bf16 %v1098_v34, %v1096_v42  ;;  %v1002_v52 = vadd.f32 %v1001_v36, %v6628_v46 }
 0x250   :  { %v1003_v6 = vpop.f32.mrf.mxu1 }
 0x251   :  { %v1143_v43 = vpack.c.bf16 %v1099_v2, %v1097_v37  ;;  %v1004_v50 = vadd.f32 %v1003_v6, %v6623_v44  ;;  %v1100_v39 = vmax.f32 %v1002_v52, 0.0 }
 0x252   :  { %v1005_v49 = vpop.f32.mrf.mxu1 }
 0x253   :  { %v1006_v51 = vadd.f32 %v1005_v49, %v6628_v46  ;;  %1482 = vmatprep.mubr.bf16.mxu0 %v1143_v43  ;;  %v1101_v58 = vmax.f32 %v1004_v50, 0.0 }
 0x254   :  { %v1007_v16 = vpop.f32.mrf.mxu1  ;;  %1483 = vmatmul.mubr.bf16.gmra.mxu0 %v1142_v47 }
 0x255   :  { %v1008_v20 = vadd.f32 %v1007_v16, %v6623_v44  ;;  %v1102_v57 = vmax.f32 %v1006_v51, 0.0 }
 0x256   :  { %v1011_v26 = vpop.f32.mrf.mxu1 }
 0x257   :  { %v1103_v29 = vmax.f32 %v1008_v20, 0.0  ;;  %v1144_v63 = vpack.c.bf16 %v1102_v57, %v1100_v39  ;;  %v1012_v5 = vadd.f32 %v1011_v26, %v6628_v46 }
 0x258   :  { %v1013_v60 = vpop.f32.mrf.mxu1 }
 0x259   :  { %v1145_v61 = vpack.c.bf16 %v1103_v29, %v1101_v58  ;;  %v1014_v3 = vadd.f32 %v1013_v60, %v6623_v44  ;;  %v1104_v13 = vmax.f32 %v1012_v5, 0.0 }
 0x25a   :  { %v1015_v1 = vpop.f32.mrf.mxu1 }
 0x25b   :  { %v1016_v35 = vadd.f32 %v1015_v1, %v6628_v46  ;;  %1492 = vmatprep.mubr.bf16.mxu0 %v1145_v61  ;;  %v1105_v11 = vmax.f32 %v1014_v3, 0.0 }
 0x25c   :  { %v1017_v15 = vpop.f32.mrf.mxu1  ;;  %1493 = vmatmul.mubr.bf16.gmra.mxu0 %v1144_v63 }
 0x25d   :  { %v1018_v8 = vadd.f32 %v1017_v15, %v6623_v44  ;;  %v1106_v10 = vmax.f32 %v1016_v35, 0.0 }
 0x25e   :  { %v1021_v18 = vpop.f32.mrf.mxu1 }
 0x25f   :  { %v1107_v38 = vmax.f32 %v1018_v8, 0.0  ;;  %v1146_v19 = vpack.c.bf16 %v1106_v10, %v1104_v13  ;;  %v1022_v22 = vadd.f32 %v1021_v18, %v6628_v46 }
 0x260   :  { %v1023_v14 = vpop.f32.mrf.mxu1 }
 0x261   :  { %v1147_v17 = vpack.c.bf16 %v1107_v38, %v1105_v11  ;;  %v1024_v21 = vadd.f32 %v1023_v14, %v6623_v44  ;;  %v1108_v28 = vmax.f32 %v1022_v22, 0.0  ;;  %v5661_v14 = vld [vmem:[#allocation6 + $0x74] ss:$8 sps:$4 sm:$0xff]  }
 0x262   :  { %v1025_v48 = vpop.f32.mrf.mxu1  ;;  %2563 = vmatprep.subr.bf16.mxu1 %v5661_v14 }
 0x263   :  { %v1026_v40 = vadd.f32 %v1025_v48, %v6628_v46  ;;  %1502 = vmatprep.mubr.bf16.mxu0 %v1147_v17  ;;  %v1109_v25 = vmax.f32 %v1024_v21, 0.0  ;;  %v1188_v17 = vld [vmem:[%s7869_s6] sm:$0x3] }
 0x264   :  { %v1027_v62 = vpop.f32.mrf.mxu1  ;;  %1503 = vmatmul.mubr.bf16.gmra.mxu0 %v1146_v19 }
 0x265   :  { %v1028_v23 = vadd.f32 %v1027_v62, %v6623_v44  ;;  %v1110_v24 = vmax.f32 %v1026_v40, 0.0 }
 0x266   :  { %v1031_v41 = vpop.f32.mrf.mxu1 }
 0x267   :  { %v1111_v27 = vmax.f32 %v1028_v23, 0.0  ;;  %v1148_v31 = vpack.c.bf16 %v1110_v24, %v1108_v28  ;;  %v1032_v33 = vadd.f32 %v1031_v41, %v6628_v46  ;;  %v2178_v41 = vld [vmem:[#allocation7 + $0x20] sm:$0xff] }
 0x268   :  { %v1033_v45 = vpop.f32.mrf.mxu1  ;;  %v5141_v28 = vcombine.low %v2178_v41, %v2178_v41 }
 0x269   :  { %v1149_v30 = vpack.c.bf16 %v1111_v27, %v1109_v25  ;;  %v1034_v32 = vadd.f32 %v1033_v45, %v6623_v44  ;;  %v1112_v6 = vmax.f32 %v1032_v33, 0.0  ;;  %v5142_v45 = vcombine.high %v2178_v41, %v2178_v41 }
 0x26a   :  { %v1035_v56 = vpop.f32.mrf.mxu1 }
 0x26b   :  { %v1036_v59 = vadd.f32 %v1035_v56, %v6628_v46  ;;  %1512 = vmatprep.mubr.bf16.mxu0 %v1149_v30  ;;  %v1113_v2 = vmax.f32 %v1034_v32, 0.0 }
 0x26c   :  { %v1037_v54 = vpop.f32.mrf.mxu1  ;;  %1513 = vmatmul.mubr.bf16.gmra.mxu0 %v1148_v31 }
 0x26d   :  { %v1038_v34 = vadd.f32 %v1037_v54, %v6623_v44  ;;  %v1114_v36 = vmax.f32 %v1036_v59, 0.0  ;;  %v2208_v59 = vand.u32 %v5142_v45, %v6329_v4  ;;  %v2205_v54 = vand.u32 %v5141_v28, %v6329_v4 }
 0x26e   :  { %v1041_v37 = vpop.f32.mrf.mxu1 }
 0x26f   :  { %v1115_v42 = vmax.f32 %v1038_v34, 0.0  ;;  %v1150_v49 = vpack.c.bf16 %v1114_v36, %v1112_v6  ;;  %v1042_v16 = vadd.f32 %v1041_v37, %v6628_v46  ;;  %2220 = vmatprep.subr.bf16.mxu0 %v2208_v59 }
 0x270   :  { %v1043_v43 = vpop.f32.mrf.mxu1 }
 0x271   :  { %v1151_v47 = vpack.c.bf16 %v1115_v42, %v1113_v2  ;;  %v1044_v51 = vadd.f32 %v1043_v43, %v6623_v44  ;;  %v1116_v29 = vmax.f32 %v1042_v16, 0.0 }
 0x272   :  { %v1045_v50 = vpop.f32.mrf.mxu1 }
 0x273   :  { %v1046_v52 = vadd.f32 %v1045_v50, %v6628_v46  ;;  %1522 = vmatprep.mubr.bf16.mxu0 %v1151_v47  ;;  %v1117_v26 = vmax.f32 %v1044_v51, 0.0  ;;  %v5703_v47 = vld [vmem:[#allocation7 + $0x10] ss:$8 sps:$4 sm:$0xff]  }
 0x274   :  { %v1047_v53 = vpop.f32.mrf.mxu1  ;;  %1523 = vmatmul.mubr.bf16.gmra.mxu0 %v1150_v49  ;;  %v5705_v49 = vld [vmem:[#allocation7 + $0x14] ss:$8 sps:$4 sm:$0xff]  }
 0x275   :  { %v1048_v20 = vadd.f32 %v1047_v53, %v6623_v44  ;;  %v1118_v55 = vmax.f32 %v1046_v52, 0.0 }
 0x276   :  { %v1051_v57 = vpop.f32.mrf.mxu1 }
 0x277   :  { %v1119_v58 = vmax.f32 %v1048_v20, 0.0  ;;  %v1152_v61 = vpack.c.bf16 %v1118_v55, %v1116_v29  ;;  %v1052_v35 = vadd.f32 %v1051_v57, %v6628_v46 }
 0x278   :  { %v1053_v39 = vpop.f32.mrf.mxu1 }
 0x279   :  { %v1153_v60 = vpack.c.bf16 %v1119_v58, %v1117_v26  ;;  %v1054_v1 = vadd.f32 %v1053_v39, %v6623_v44  ;;  %v1120_v11 = vmax.f32 %v1052_v35, 0.0 }
 0x27a   :  { %v1055_v63 = vpop.f32.mrf.mxu1 }
 0x27b   :  { %v1056_v3 = vadd.f32 %v1055_v63, %v6628_v46  ;;  %1532 = vmatprep.mubr.bf16.mxu0 %v1153_v60  ;;  %v1121_v10 = vmax.f32 %v1054_v1, 0.0  ;;  %v6783_v46 = vrot.slane %v1188_v17, %v6521_v9 }
 0x27c   :  { %v1057_v5 = vpop.f32.mrf.mxu1  ;;  %1533 = vmatmul.mubr.bf16.gmra.mxu0 %v1152_v61 }
 0x27d   :  { %v1058_v15 = vadd.f32 %v1057_v5, %v6623_v44  ;;  %v1122_v8 = vmax.f32 %v1056_v3, 0.0  ;;  %v6786_v44 = vrot.slane %v1188_v17, %v6523_v12 }
 0x27f   :  { %v1123_v18 = vmax.f32 %v1058_v15, 0.0  ;;  %v1154_v13 = vpack.c.bf16 %v1122_v8, %v1120_v11 }
 0x281   :  { %v1155_v38 = vpack.c.bf16 %v1123_v18, %v1121_v10 }
 0x283   :  { %1542 = vmatprep.mubr.bf16.mxu0 %v1155_v38 }
 0x284   :  { %1543 = vmatmul.mubr.bf16.gmra.mxu0 %v1154_v13 }
 0x2cc   :  { %v1394_v19 = vpop.f32.mrf.mxu0 }
 0x2cd   :  { %v1395_v62 = vadd.f32 %v1394_v19, %v6786_v44 }
 0x2ce   :  { %v1396_v48 = vpop.f32.mrf.mxu0 }
 0x2cf   :  { %v1397_v40 = vadd.f32 %v1396_v48, %v6783_v46  ;;  %v1553_v56 = vmax.f32 %v1395_v62, 0.0 }
 0x2d0   :  { %v1398_v21 = vpop.f32.mrf.mxu0 }
 0x2d1   :  { %v1399_v22 = vadd.f32 %v1398_v21, %v6786_v44  ;;  %v1554_v30 = vmax.f32 %v1397_v40, 0.0 }
 0x2d2   :  { %v1400_v23 = vpop.f32.mrf.mxu0 }
 0x2d3   :  { %v1401_v24 = vadd.f32 %v1400_v23, %v6783_v46  ;;  %v1555_v25 = vmax.f32 %v1399_v22, 0.0  ;;  %v5659_v23 = vld [vmem:[#allocation6 + $0x70] ss:$8 sps:$4 sm:$0xff]  }
 0x2d4   :  { %v1404_v27 = vpop.f32.mrf.mxu0 }
 0x2d5   :  { %v1556_v31 = vmax.f32 %v1401_v24, 0.0  ;;  %v1617_v34 = vpack.c.bf16 %v1555_v25, %v1553_v56  ;;  %v1405_v42 = vadd.f32 %v1404_v27, %v6786_v44  ;;  %v5664_v25 = vld [vmem:[#allocation6 + $0x64] ss:$8 sps:$4 sm:$0xff]   ;;  %v5662_v56 = vld [vmem:[#allocation6 + $0x60] ss:$8 sps:$4 sm:$0xff]  }
 0x2d6   :  { %v1406_v32 = vpop.f32.mrf.mxu0 }
 0x2d7   :  { %v1618_v33 = vpack.c.bf16 %v1556_v31, %v1554_v30  ;;  %v1407_v37 = vadd.f32 %v1406_v32, %v6783_v46  ;;  %v1557_v16 = vmax.f32 %v1405_v42, 0.0  ;;  %v5665_v42 = vld [vmem:[#allocation6 + $0x50] ss:$8 sps:$4 sm:$0xff]  }
 0x2d8   :  { %v1408_v36 = vpop.f32.mrf.mxu0 }
 0x2d9   :  { %v1409_v2 = vadd.f32 %v1408_v36, %v6786_v44  ;;  %1885 = vmatprep.mubr.bf16.mxu0 %v1618_v33  ;;  %v1558_v4 = vmax.f32 %v1407_v37, 0.0  ;;  %v5667_v33 = vld [vmem:[#allocation6 + $0x54] ss:$8 sps:$4 sm:$0xff]  }
 0x2da   :  { %v1410_v6 = vpop.f32.mrf.mxu0  ;;  %1886 = vmatmul.mubr.bf16.vlgmr.msra.gmra.mxu0 %v1617_v34 }
 0x2db   :  { %v1411_v43 = vadd.f32 %v1410_v6, %v6783_v46  ;;  %2221 = vmatpush1.bf16.msra.mxu0 %v2205_v54  ;;  %v1559_v50 = vmax.f32 %v1409_v2, 0.0 }
 0x2dc   :  { %v1414_v51 = vpop.f32.mrf.mxu0  ;;  %2222 = vmatprep.subr.bf16.mxu0 %v5705_v49 }
 0x2dd   :  { %v1560_v52 = vmax.f32 %v1411_v43, 0.0  ;;  %v1619_v55 = vpack.c.bf16 %v1559_v50, %v1557_v16  ;;  %v1415_v29 = vadd.f32 %v1414_v51, %v6786_v44  ;;  %v5668_v16 = vld [vmem:[#allocation6 + $0x40] ss:$8 sps:$4 sm:$0xff]  }
 0x2de   :  { %v1416_v53 = vpop.f32.mrf.mxu0 }
 0x2df   :  { %v1620_v20 = vpack.c.bf16 %v1560_v52, %v1558_v4  ;;  %2223 = vmatpush1.bf16.msra.mxu0 %v5703_v47  ;;  %v1417_v26 = vadd.f32 %v1416_v53, %v6783_v46  ;;  %v1561_v35 = vmax.f32 %v1415_v29, 0.0  ;;  %v5670_v47 = vld [vmem:[#allocation6 + $0x44] ss:$8 sps:$4 sm:$0xff]  }
 0x2e0   :  { %v1418_v57 = vpop.f32.mrf.mxu0 }
 0x2e1   :  { %v1419_v58 = vadd.f32 %v1418_v57, %v6786_v44  ;;  %1895 = vmatprep.mubr.bf16.mxu0 %v1620_v20  ;;  %v1562_v1 = vmax.f32 %v1417_v26, 0.0 }
 0x2e2   :  { %v1420_v39 = vpop.f32.mrf.mxu0  ;;  %1896 = vmatmul.mubr.bf16.gmra.mxu0 %v1619_v55  ;;  %v5673_v55 = vld [vmem:[#allocation6 + $0x34] ss:$8 sps:$4 sm:$0xff]  }
 0x2e3   :  { %v1421_v60 = vadd.f32 %v1420_v39, %v6783_v46  ;;  %v1563_v61 = vmax.f32 %v1419_v58, 0.0 }
 0x2e4   :  { %v1424_v63 = vpop.f32.mrf.mxu0 }
 0x2e5   :  { %v1564_v3 = vmax.f32 %v1421_v60, 0.0  ;;  %v1621_v8 = vpack.c.bf16 %v1563_v61, %v1561_v35  ;;  %v1425_v38 = vadd.f32 %v1424_v63, %v6786_v44  ;;  %v5671_v60 = vld [vmem:[#allocation6 + $0x30] ss:$8 sps:$4 sm:$0xff]  }
 0x2e6   :  { %v1426_v5 = vpop.f32.mrf.mxu0 }
 0x2e7   :  { %v1622_v15 = vpack.c.bf16 %v1564_v3, %v1562_v1  ;;  %v1427_v18 = vadd.f32 %v1426_v5, %v6783_v46  ;;  %v1565_v40 = vmax.f32 %v1425_v38, 0.0  ;;  %v5676_v1 = vld [vmem:[#allocation6 + $0x24] ss:$8 sps:$4 sm:$0xff]   ;;  %v5679_v38 = vld [vmem:[#allocation6 + $0x14] ss:$8 sps:$4 sm:$0xff]  }
 0x2e8   :  { %v1428_v10 = vpop.f32.mrf.mxu0 }
 0x2e9   :  { %v1429_v11 = vadd.f32 %v1428_v10, %v6786_v44  ;;  %1905 = vmatprep.mubr.bf16.mxu0 %v1622_v15  ;;  %v1566_v48 = vmax.f32 %v1427_v18, 0.0  ;;  %v5674_v10 = vld [vmem:[#allocation6 + $0x20] ss:$8 sps:$4 sm:$0xff]  }
 0x2ea   :  { %v1430_v13 = vpop.f32.mrf.mxu0  ;;  %1906 = vmatmul.mubr.bf16.gmra.mxu0 %v1621_v8 }
 0x2eb   :  { %v1431_v14 = vadd.f32 %v1430_v13, %v6783_v46  ;;  %2242 = vmatprep.mubr.bf16.mxu0 %v6176_v0  ;;  %v1567_v17 = vmax.f32 %v1429_v11, 0.0 }
 0x2ec   :  { %v1434_v19 = vpop.f32.mrf.mxu0 }
 0x2ed   :  { %v1568_v21 = vmax.f32 %v1431_v14, 0.0  ;;  %v1623_v24 = vpack.c.bf16 %v1567_v17, %v1565_v40  ;;  %v1435_v45 = vadd.f32 %v1434_v19, %v6786_v44 }
 0x2ee   :  { %v1436_v22 = vpop.f32.mrf.mxu0 }
 0x2ef   :  { %v1624_v62 = vpack.c.bf16 %v1568_v21, %v1566_v48  ;;  %v1437_v27 = vadd.f32 %v1436_v22, %v6783_v46  ;;  %v1569_v36 = vmax.f32 %v1435_v45, 0.0  ;;  %v5677_v21 = vld [vmem:[#allocation6 + $0x10] ss:$8 sps:$4 sm:$0xff]  }
 0x2f0   :  { %v1438_v41 = vpop.f32.mrf.mxu0 }
 0x2f1   :  { %v1439_v28 = vadd.f32 %v1438_v41, %v6786_v44  ;;  %1915 = vmatprep.mubr.bf16.mxu1 %v1624_v62  ;;  %v1570_v54 = vmax.f32 %v1437_v27, 0.0  ;;  %v5682_v62 = vld [vmem:[#allocation6 + $0x4] ss:$8 sps:$4 sm:$0xff]  }
 0x2f2   :  { %v1440_v30 = vpop.f32.mrf.mxu0  ;;  %1916 = vmatmul.mubr.bf16.vlgmr.msra.gmra.mxu1 %v1623_v24 }
 0x2f3   :  { %v1441_v31 = vadd.f32 %v1440_v30, %v6783_v46  ;;  %2564 = vmatpush1.bf16.msra.mxu1 %v5659_v23  ;;  %v1571_v32 = vmax.f32 %v1439_v28, 0.0  ;;  %v5680_v28 = vld [vmem:[#allocation6] ss:$8 sps:$4 sm:$0xff]  }
 0x2f4   :  { %v1444_v59 = vpop.f32.mrf.mxu0  ;;  %2565 = vmatprep.subr.bf16.mxu1 %v5664_v25 }
 0x2f5   :  { %v1572_v34 = vmax.f32 %v1441_v31, 0.0  ;;  %v1625_v6 = vpack.c.bf16 %v1571_v32, %v1569_v36  ;;  %v1445_v51 = vadd.f32 %v1444_v59, %v6786_v44  ;;  %v5685_v31 = vld [vmem:[#allocation6 + $0xf4] ss:$8 sps:$4 sm:$0xff]  }
 0x2f6   :  { %v1446_v37 = vpop.f32.mrf.mxu0 }
 0x2f7   :  { %v1626_v2 = vpack.c.bf16 %v1572_v34, %v1570_v54  ;;  %2566 = vmatpush1.bf16.msra.mxu1 %v5662_v56  ;;  %v1447_v49 = vadd.f32 %v1446_v37, %v6783_v46  ;;  %v1573_v58 = vmax.f32 %v1445_v51, 0.0  ;;  %v5683_v34 = vld [vmem:[#allocation6 + $0xf0] ss:$8 sps:$4 sm:$0xff]  }
 0x2f8   :  { %v1448_v43 = vpop.f32.mrf.mxu0  ;;  %2567 = vmatprep.subr.bf16.mxu1 %v5667_v33 }
 0x2f9   :  { %v1449_v50 = vadd.f32 %v1448_v43, %v6786_v44  ;;  %1925 = vmatprep.mubr.bf16.mxu1 %v1626_v2  ;;  %v1574_v57 = vmax.f32 %v1447_v49, 0.0  ;;  %v5688_v2 = vld [vmem:[#allocation6 + $0xe4] ss:$8 sps:$4 sm:$0xff]  }
 0x2fa   :  { %v1450_v4 = vpop.f32.mrf.mxu0  ;;  %1926 = vmatmul.mubr.bf16.gmra.mxu1 %v1625_v6 }
 0x2fb   :  { %v1451_v52 = vadd.f32 %v1450_v4, %v6783_v46  ;;  %2568 = vmatpush1.bf16.msra.mxu1 %v5665_v42  ;;  %v1575_v53 = vmax.f32 %v1449_v50, 0.0  ;;  %v5686_v50 = vld [vmem:[#allocation6 + $0xe0] ss:$8 sps:$4 sm:$0xff]  }
 0x2fc   :  { %v1454_v20 = vpop.f32.mrf.mxu0  ;;  %2569 = vmatprep.subr.bf16.mxu1 %v5670_v47 }
 0x2fd   :  { %v1576_v26 = vmax.f32 %v1451_v52, 0.0  ;;  %v1627_v61 = vpack.c.bf16 %v1575_v53, %v1573_v58  ;;  %v1455_v5 = vadd.f32 %v1454_v20, %v6786_v44  ;;  %v5691_v52 = vld [vmem:[#allocation6 + $0xd4] ss:$8 sps:$4 sm:$0xff]  }
 0x2fe   :  { %v1456_v29 = vpop.f32.mrf.mxu0 }
 0x2ff   :  { %v1628_v39 = vpack.c.bf16 %v1576_v26, %v1574_v57  ;;  %2570 = vmatpush1.bf16.msra.mxu1 %v5668_v16  ;;  %v1457_v3 = vadd.f32 %v1456_v29, %v6783_v46  ;;  %v1577_v17 = vmax.f32 %v1455_v5, 0.0  ;;  %v5689_v26 = vld [vmem:[#allocation6 + $0xd0] ss:$8 sps:$4 sm:$0xff]  }
 0x300   :  { %v1458_v63 = vpop.f32.mrf.mxu0  ;;  %2571 = vmatprep.subr.bf16.mxu1 %v5673_v55 }
 0x301   :  { %v1459_v35 = vadd.f32 %v1458_v63, %v6786_v44  ;;  %1935 = vmatprep.mubr.bf16.mxu1 %v1628_v39  ;;  %v1578_v13 = vmax.f32 %v1457_v3, 0.0  ;;  %v5694_v39 = vld [vmem:[#allocation6 + $0xc4] ss:$8 sps:$4 sm:$0xff]  }
 0x302   :  { %v1460_v15 = vpop.f32.mrf.mxu0  ;;  %1936 = vmatmul.mubr.bf16.gmra.mxu1 %v1627_v61 }
 0x303   :  { %v1461_v8 = vadd.f32 %v1460_v15, %v6783_v46  ;;  %2572 = vmatpush1.bf16.msra.mxu1 %v5671_v60  ;;  %v1579_v18 = vmax.f32 %v1459_v35, 0.0  ;;  %v5692_v35 = vld [vmem:[#allocation6 + $0xc0] ss:$8 sps:$4 sm:$0xff]  }
 0x304   :  { %v1464_v11 = vpop.f32.mrf.mxu0  ;;  %2573 = vmatprep.subr.bf16.mxu1 %v5676_v1 }
 0x305   :  { %v1580_v14 = vmax.f32 %v1461_v8, 0.0  ;;  %v1629_v40 = vpack.c.bf16 %v1579_v18, %v1577_v17  ;;  %v1465_v41 = vadd.f32 %v1464_v11, %v6786_v44  ;;  %v5697_v8 = vld [vmem:[#allocation6 + $0xb4] ss:$8 sps:$4 sm:$0xff]  }
 0x306   :  { %v1466_v19 = vpop.f32.mrf.mxu0 }
 0x307   :  { %v1630_v48 = vpack.c.bf16 %v1580_v14, %v1578_v13  ;;  %2574 = vmatpush1.bf16.msra.mxu1 %v5674_v10  ;;  %v1467_v23 = vadd.f32 %v1466_v19, %v6783_v46  ;;  %v1581_v59 = vmax.f32 %v1465_v41, 0.0  ;;  %v5711_v10 = vld [vmem:[#allocation7 + $0x4] ss:$8 sps:$4 sm:$0xff]   ;;  %v5709_v14 = vld [vmem:[#allocation7] ss:$8 sps:$4 sm:$0xff]  }
 0x308   :  { %v1468_v22 = vpop.f32.mrf.mxu0  ;;  %2575 = vmatprep.subr.bf16.mxu1 %v5679_v38  ;;  %2224 = vmatprep.subr.bf16.mxu0 %v5711_v10  ;;  %v5695_v19 = vld [vmem:[#allocation6 + $0xb0] ss:$8 sps:$4 sm:$0xff]  }
 0x309   :  { %v1469_v24 = vadd.f32 %v1468_v22, %v6786_v44  ;;  %1945 = vmatprep.mubr.bf16.mxu1 %v1630_v48  ;;  %v1582_v56 = vmax.f32 %v1467_v23, 0.0  ;;  %2225 = vmatpush1.bf16.msra.mxu0 %v5709_v14 }
 0x30a   :  { %v1470_v25 = vpop.f32.mrf.mxu0  ;;  %1946 = vmatmul.mubr.bf16.gmra.mxu1 %v1629_v40  ;;  %v5702_v40 = vld [vmem:[#allocation6 + $0xa4] ss:$8 sps:$4 sm:$0xff]  }
 0x30b   :  { %v1471_v27 = vadd.f32 %v1470_v25, %v6783_v46  ;;  %2576 = vmatpush1.bf16.msra.mxu1 %v5677_v21  ;;  %v1583_v45 = vmax.f32 %v1469_v24, 0.0  ;;  %v5700_v25 = vld [vmem:[#allocation6 + $0xa0] ss:$8 sps:$4 sm:$0xff]  }
 0x30c   :  { %v1474_v30 = vpop.f32.mrf.mxu0  ;;  %2577 = vmatprep.subr.bf16.mxu1 %v5682_v62 }
 0x30d   :  { %v1584_v32 = vmax.f32 %v1471_v27, 0.0  ;;  %v1631_v36 = vpack.c.bf16 %v1583_v45, %v1581_v59  ;;  %v1475_v43 = vadd.f32 %v1474_v30, %v6786_v44  ;;  %v6003_v27 = vld [vmem:[%s7893_s30] sm:$0xff]   ;;  %v5708_v30 = vld [vmem:[#allocation6 + $0x94] ss:$8 sps:$4 sm:$0xff]  }
 0x30e   :  { %v1476_v33 = vpop.f32.mrf.mxu0  ;;  %5143 = vmatmul.mubr.msk.bf16.vlgmr.msra.gmra.mxu0 %vm315_vm2, %v6003_v27 }
 0x30f   :  { %v1632_v54 = vpack.c.bf16 %v1584_v32, %v1582_v56  ;;  %2578 = vmatpush1.bf16.msra.mxu1 %v5680_v28  ;;  %v1477_v42 = vadd.f32 %v1476_v33, %v6783_v46  ;;  %v1585_v20 = vmax.f32 %v1475_v43, 0.0  ;;  %2252 = vmatprep.mubr.bf16.mxu0 %v6176_v0 }
 0x310   :  { %v1478_v37 = vpop.f32.mrf.mxu0  ;;  %2579 = vmatprep.subr.bf16.mxu1 %v5685_v31 }
 0x311   :  { %v1479_v6 = vadd.f32 %v1478_v37, %v6786_v44  ;;  %1955 = vmatprep.mubr.bf16.mxu1 %v1632_v54  ;;  %v1586_v16 = vmax.f32 %v1477_v42, 0.0  ;;  %v5706_v54 = vld [vmem:[#allocation6 + $0x90] ss:$8 sps:$4 sm:$0xff]   ;;  %v5714_v37 = vld [vmem:[#allocation6 + $0x84] ss:$8 sps:$4 sm:$0xff]  }
 0x312   :  { %v1480_v47 = vpop.f32.mrf.mxu0  ;;  %1956 = vmatmul.mubr.bf16.gmra.mxu1 %v1631_v36 }
 0x313   :  { %v1481_v49 = vadd.f32 %v1480_v47, %v6783_v46  ;;  %2580 = vmatpush2.bf16.msra.mxu1 %v5683_v34  ;;  %v1587_v51 = vmax.f32 %v1479_v6, 0.0 }
 0x314   :  { %v1484_v4 = vpop.f32.mrf.mxu0  ;;  %2581 = vmatprep.subr.bf16.mxu1 %v5688_v2 }
 0x315   :  { %v1588_v53 = vmax.f32 %v1481_v49, 0.0  ;;  %v1633_v58 = vpack.c.bf16 %v1587_v51, %v1585_v20  ;;  %v1485_v63 = vadd.f32 %v1484_v4, %v6786_v44  ;;  %v5712_v49 = vld [vmem:[#allocation6 + $0x80] ss:$8 sps:$4 sm:$0xff]  }
 0x316   :  { %v1486_v55 = vpop.f32.mrf.mxu0 }
 0x317   :  { %v1634_v57 = vpack.c.bf16 %v1588_v53, %v1586_v16  ;;  %2582 = vmatpush2.bf16.msra.mxu1 %v5686_v50  ;;  %v1487_v60 = vadd.f32 %v1486_v55, %v6783_v46  ;;  %v1589_v38 = vmax.f32 %v1485_v63, 0.0  ;;  %v6004_v50 = vld [vmem:[%s7893_s30 + $0x8] sm:$0xff]   ;;  %v6005_v63 = vld [vmem:[%s7893_s30 + $0x10] sm:$0xff]  }
 0x318   :  { %v1488_v29 = vpop.f32.mrf.mxu0  ;;  %2583 = vmatprep.subr.bf16.mxu1 %v5691_v52  ;;  %5144 = vmatmul.mubr.msk.bf16.gmra.mxu0 %vm315_vm2, %v6004_v50 }
 0x319   :  { %v1489_v61 = vadd.f32 %v1488_v29, %v6786_v44  ;;  %1965 = vmatprep.mubr.bf16.mxu1 %v1634_v57  ;;  %v1590_v18 = vmax.f32 %v1487_v60, 0.0  ;;  %2262 = vmatprep.mubr.bf16.mxu0 %v6176_v0 }
 0x31a   :  { %v1490_v1 = vpop.f32.mrf.mxu0  ;;  %1966 = vmatmul.mubr.bf16.gmra.mxu1 %v1633_v58 }
 0x31b   :  { %v1491_v3 = vadd.f32 %v1490_v1, %v6783_v46  ;;  %2584 = vmatpush2.bf16.msra.mxu1 %v5689_v26  ;;  %v1591_v5 = vmax.f32 %v1489_v61, 0.0 }
 0x31c   :  { %v1494_v15 = vpop.f32.mrf.mxu0  ;;  %2585 = vmatprep.subr.bf16.mxu1 %v5694_v39 }
 0x31d   :  { %v1592_v11 = vmax.f32 %v1491_v3, 0.0  ;;  %v1635_v48 = vpack.c.bf16 %v1591_v5, %v1589_v38  ;;  %v1495_v23 = vadd.f32 %v1494_v15, %v6786_v44 }
 0x31e   :  { %v1496_v13 = vpop.f32.mrf.mxu0 }
 0x31f   :  { %v1636_v17 = vpack.c.bf16 %v1592_v11, %v1590_v18  ;;  %2586 = vmatpush2.bf16.msra.mxu1 %v5692_v35  ;;  %v1497_v22 = vadd.f32 %v1496_v13, %v6783_v46  ;;  %v1593_v32 = vmax.f32 %v1495_v23, 0.0 }
 0x320   :  { %v1498_v21 = vpop.f32.mrf.mxu0  ;;  %2587 = vmatprep.subr.bf16.mxu1 %v5697_v8  ;;  %5145 = vmatmul.mubr.msk.bf16.gmra.mxu0 %vm315_vm2, %v6005_v63  ;;  %v5718_v63 = vld [vmem:[#allocation9 + $0x60] ss:$8 sps:$4 sm:$0xff]  }
 0x321   :  { %v1499_v62 = vadd.f32 %v1498_v21, %v6786_v44  ;;  %1975 = vmatprep.mubr.bf16.mxu1 %v1636_v17  ;;  %v1594_v31 = vmax.f32 %v1497_v22, 0.0  ;;  %2272 = vmatprep.mubr.bf16.mxu0 %v6176_v0 }
 0x322   :  { %v1500_v24 = vpop.f32.mrf.mxu0  ;;  %1976 = vmatmul.mubr.bf16.gmra.mxu1 %v1635_v48  ;;  %v6006_v48 = vld [vmem:[%s7893_s30 + $0x18] sm:$0xff]  }
 0x323   :  { %v1501_v41 = vadd.f32 %v1500_v24, %v6783_v46  ;;  %2588 = vmatpush2.bf16.msra.mxu1 %v5695_v19  ;;  %v1595_v28 = vmax.f32 %v1499_v62, 0.0 }
 0x324   :  { %v1504_v45 = vpop.f32.mrf.mxu0  ;;  %2589 = vmatprep.subr.bf16.mxu1 %v5702_v40 }
 0x325   :  { %v1596_v56 = vmax.f32 %v1501_v41, 0.0  ;;  %v1637_v34 = vpack.c.bf16 %v1595_v28, %v1593_v32  ;;  %v1505_v6 = vadd.f32 %v1504_v45, %v6786_v44  ;;  %v6007_v32 = vld [vmem:[%s7893_s30 + $0x20] sm:$0xff]  }
 0x326   :  { %v1506_v59 = vpop.f32.mrf.mxu0 }
 0x327   :  { %v1638_v33 = vpack.c.bf16 %v1596_v56, %v1594_v31  ;;  %2590 = vmatpush2.bf16.msra.mxu1 %v5700_v25  ;;  %v1507_v2 = vadd.f32 %v1506_v59, %v6783_v46  ;;  %v1597_v53 = vmax.f32 %v1505_v6, 0.0 }
 0x328   :  { %v1508_v36 = vpop.f32.mrf.mxu0  ;;  %2591 = vmatprep.subr.bf16.mxu1 %v5708_v30  ;;  %5146 = vmatmul.mubr.msk.bf16.gmra.mxu0 %vm315_vm2, %v6006_v48 }
 0x329   :  { %v1509_v42 = vadd.f32 %v1508_v36, %v6786_v44  ;;  %1985 = vmatprep.mubr.bf16.mxu1 %v1638_v33  ;;  %v1598_v52 = vmax.f32 %v1507_v2, 0.0  ;;  %2282 = vmatprep.mubr.bf16.mxu0 %v6176_v0 }
 0x32a   :  { %v1510_v43 = vpop.f32.mrf.mxu0  ;;  %1986 = vmatmul.mubr.bf16.gmra.mxu1 %v1637_v34 }
 0x32b   :  { %v1511_v47 = vadd.f32 %v1510_v43, %v6783_v46  ;;  %2592 = vmatpush2.bf16.msra.mxu1 %v5706_v54  ;;  %v1599_v51 = vmax.f32 %v1509_v42, 0.0 }
 0x32c   :  { %v1514_v4 = vpop.f32.mrf.mxu0  ;;  %2593 = vmatprep.subr.bf16.mxu1 %v5714_v37 }
 0x32d   :  { %v1600_v16 = vmax.f32 %v1511_v47, 0.0  ;;  %v1639_v57 = vpack.c.bf16 %v1599_v51, %v1597_v53  ;;  %v1515_v39 = vadd.f32 %v1514_v4, %v6786_v44  ;;  %v6008_v4 = vld [vmem:[%s7893_s30 + $0x28] sm:$0xff]  }
 0x32e   :  { %v1516_v20 = vpop.f32.mrf.mxu0 }
 0x32f   :  { %v1640_v55 = vpack.c.bf16 %v1600_v16, %v1598_v52  ;;  %2594 = vmatpush2.bf16.msra.mxu1 %v5712_v49  ;;  %v1517_v58 = vadd.f32 %v1516_v20, %v6783_v46  ;;  %v1601_v15 = vmax.f32 %v1515_v39, 0.0  ;;  %v5715_v39 = vld [vmem:[#allocation9 + $0x70] ss:$8 sps:$4 sm:$0xff]  }
 0x330   :  { %v1518_v26 = vpop.f32.mrf.mxu0  ;;  %5147 = vmatmul.mubr.msk.bf16.gmra.mxu0 %vm315_vm2, %v6007_v32  ;;  %v5738_v32 = vld [vmem:[#allocation9 + $0x4] ss:$8 sps:$4 sm:$0xff]  }
 0x331   :  { %v1519_v29 = vadd.f32 %v1518_v26, %v6786_v44  ;;  %1995 = vmatprep.mubr.bf16.mxu1 %v1640_v55  ;;  %v1602_v35 = vmax.f32 %v1517_v58, 0.0  ;;  %2292 = vmatprep.mubr.bf16.mxu0 %v6176_v0  ;;  %v6011_v26 = vld [vmem:[%s7893_s30 + $0x40] sm:$0xff]   ;;  %v6012_v58 = vld [vmem:[%s7893_s30 + $0x48] sm:$0xff]  }
 0x332   :  { %v1520_v60 = vpop.f32.mrf.mxu0  ;;  %1996 = vmatmul.mubr.bf16.gmra.mxu1 %v1639_v57 }
 0x333   :  { %v1521_v61 = vadd.f32 %v1520_v60, %v6783_v46  ;;  %v1603_v1 = vmax.f32 %v1519_v29, 0.0  ;;  %v6013_v29 = vld [vmem:[%s7893_s30 + $0x50] sm:$0xff]   ;;  %v5717_v60 = vld [vmem:[#allocation9 + $0x74] ss:$8 sps:$4 sm:$0xff]  }
 0x334   :  { %v1524_v3 = vpop.f32.mrf.mxu0  ;;  %3132 = vmatprep.subr.bf16.mxu0 %v5717_v60 }
 0x335   :  { %v1604_v5 = vmax.f32 %v1521_v61, 0.0  ;;  %v1641_v18 = vpack.c.bf16 %v1603_v1, %v1601_v15  ;;  %v1525_v14 = vadd.f32 %v1524_v3, %v6786_v44  ;;  %v6014_v61 = vld [vmem:[%s7893_s30 + $0x58] sm:$0xff]   ;;  %3133 = vmatpush1.bf16.msra.mxu0 %v5715_v39  ;;  %v5720_v1 = vld [vmem:[#allocation9 + $0x64] ss:$8 sps:$4 sm:$0xff]   ;;  %v6015_v3 = vld [vmem:[%s7893_s30 + $0x60] sm:$0xff]  }
 0x336   :  { %v1526_v8 = vpop.f32.mrf.mxu0  ;;  %3134 = vmatprep.subr.bf16.mxu0 %v5720_v1  ;;  %v6016_v15 = vld [vmem:[%s7893_s30 + $0x68] sm:$0xff]   ;;  %v5747_v39 = vld [vmem:[#allocation9 + $0xd4] ss:$8 sps:$4 sm:$0xff]  }
 0x337   :  { %v1642_v10 = vpack.c.bf16 %v1604_v5, %v1602_v35  ;;  %v1527_v38 = vadd.f32 %v1526_v8, %v6783_v46  ;;  %v1605_v23 = vmax.f32 %v1525_v14, 0.0  ;;  %v5721_v35 = vld [vmem:[#allocation9 + $0x50] ss:$8 sps:$4 sm:$0xff]   ;;  %v5723_v5 = vld [vmem:[#allocation9 + $0x54] ss:$8 sps:$4 sm:$0xff]  }
 0x338   :  { %v1528_v11 = vpop.f32.mrf.mxu0  ;;  %5148 = vmatmul.mubr.msk.bf16.gmra.mxu0 %vm315_vm2, %v6008_v4  ;;  %v5724_v8 = vld [vmem:[#allocation9 + $0x40] ss:$8 sps:$4 sm:$0xff]   ;;  %v5727_v14 = vld [vmem:[#allocation9 + $0x30] ss:$8 sps:$4 sm:$0xff]  }
 0x339   :  { %v1529_v13 = vadd.f32 %v1528_v11, %v6786_v44  ;;  %2005 = vmatprep.mubr.bf16.mxu1 %v1642_v10  ;;  %v1606_v22 = vmax.f32 %v1527_v38, 0.0  ;;  %2302 = vmatprep.mubr.bf16.mxu0 %v6176_v0  ;;  %v5726_v10 = vld [vmem:[#allocation9 + $0x44] ss:$8 sps:$4 sm:$0xff]   ;;  %v1681_v11 = vld [vmem:[%s7871_s8] sm:$0x3] }
 0x33a   :  { %v1530_v17 = vpop.f32.mrf.mxu0  ;;  %2006 = vmatmul.mubr.bf16.gmra.mxu1 %v1641_v18  ;;  %3135 = vmatpush1.bf16.msra.mxu0 %v5718_v63  ;;  %v6017_v18 = vld [vmem:[%s7893_s30 + $0x70] sm:$0xff]   ;;  %v5739_v4 = vld [vmem:[#allocation9 + $0xf0] ss:$8 sps:$4 sm:$0xff]  }
 0x33b   :  { %v1531_v19 = vadd.f32 %v1530_v17, %v6783_v46  ;;  %v1607_v21 = vmax.f32 %v1529_v13, 0.0  ;;  %3136 = vmatprep.subr.bf16.mxu0 %v5723_v5  ;;  %v6934_v13 = vrot.slane %v1681_v11, %v6521_v9  ;;  %v5729_v17 = vld [vmem:[#allocation9 + $0x34] ss:$8 sps:$4 sm:$0xff]  }
 0x33c   :  { %v1534_v40 = vpop.f32.mrf.mxu0 }
 0x33d   :  { %v1608_v62 = vmax.f32 %v1531_v19, 0.0  ;;  %v1643_v25 = vpack.c.bf16 %v1607_v21, %v1605_v23  ;;  %v1535_v30 = vadd.f32 %v1534_v40, %v6786_v44  ;;  %v6018_v19 = vld [vmem:[%s7893_s30 + $0x78] sm:$0xff]   ;;  %v5732_v23 = vld [vmem:[#allocation9 + $0x24] ss:$8 sps:$4 sm:$0xff]  }
 0x33e   :  { %v1536_v24 = vpop.f32.mrf.mxu0  ;;  %3137 = vmatpush1.bf16.msra.mxu0 %v5721_v35  ;;  %v5745_v35 = vld [vmem:[#allocation9 + $0xd0] ss:$8 sps:$4 sm:$0xff]  }
 0x33f   :  { %v1644_v41 = vpack.c.bf16 %v1608_v62, %v1606_v22  ;;  %v1537_v28 = vadd.f32 %v1536_v24, %v6783_v46  ;;  %v1609_v36 = vmax.f32 %v1535_v30, 0.0  ;;  %3138 = vmatprep.subr.bf16.mxu0 %v5726_v10  ;;  %v5730_v62 = vld [vmem:[#allocation9 + $0x20] ss:$8 sps:$4 sm:$0xff]   ;;  %v5733_v30 = vld [vmem:[#allocation9 + $0x10] ss:$8 sps:$4 sm:$0xff]  }
 0x340   :  { %v1538_v27 = vpop.f32.mrf.mxu0 }
 0x341   :  { %v1539_v45 = vadd.f32 %v1538_v27, %v6786_v44  ;;  %2015 = vmatprep.mubr.bf16.mxu1 %v1644_v41  ;;  %v1610_v54 = vmax.f32 %v1537_v28, 0.0 }
 0x342   :  { %v1540_v31 = vpop.f32.mrf.mxu0  ;;  %2016 = vmatmul.mubr.bf16.gmra.mxu1 %v1643_v25  ;;  %3139 = vmatpush1.bf16.msra.mxu0 %v5724_v8  ;;  %v5735_v25 = vld [vmem:[#allocation9 + $0x14] ss:$8 sps:$4 sm:$0xff]   ;;  %v5750_v8 = vld [vmem:[#allocation9 + $0xc4] ss:$8 sps:$4 sm:$0xff]  }
 0x343   :  { %v1541_v56 = vadd.f32 %v1540_v31, %v6783_v46  ;;  %v1611_v59 = vmax.f32 %v1539_v45, 0.0  ;;  %3140 = vmatprep.subr.bf16.mxu0 %v5729_v17  ;;  %v5748_v17 = vld [vmem:[#allocation9 + $0xc0] ss:$8 sps:$4 sm:$0xff]  }
 0x344   :  { %v1544_v33 = vpop.f32.mrf.mxu0 }
 0x345   :  { %v1612_v34 = vmax.f32 %v1541_v56, 0.0  ;;  %v1645_v42 = vpack.c.bf16 %v1611_v59, %v1609_v36  ;;  %v1545_v49 = vadd.f32 %v1544_v33, %v6786_v44 }
 0x346   :  { %v1546_v37 = vpop.f32.mrf.mxu0  ;;  %3141 = vmatpush1.bf16.msra.mxu0 %v5727_v14 }
 0x347   :  { %v1646_v2 = vpack.c.bf16 %v1612_v34, %v1610_v54  ;;  %v1547_v43 = vadd.f32 %v1546_v37, %v6783_v46  ;;  %v1613_v20 = vmax.f32 %v1545_v49, 0.0  ;;  %3142 = vmatprep.subr.bf16.mxu0 %v5732_v23  ;;  %v5736_v37 = vld [vmem:[#allocation9] ss:$8 sps:$4 sm:$0xff]  }
 0x348   :  { %v1548_v6 = vpop.f32.mrf.mxu0 }
 0x349   :  { %v1549_v47 = vadd.f32 %v1548_v6, %v6786_v44  ;;  %2025 = vmatprep.mubr.bf16.mxu1 %v1646_v2  ;;  %v1614_v16 = vmax.f32 %v1547_v43, 0.0  ;;  %v6010_v44 = vld [vmem:[%s7893_s30 + $0x38] sm:$0xff]  }
 0x34a   :  { %v1550_v50 = vpop.f32.mrf.mxu0  ;;  %2026 = vmatmul.mubr.bf16.gmra.mxu1 %v1645_v42  ;;  %3143 = vmatpush1.bf16.msra.mxu0 %v5730_v62  ;;  %v5741_v6 = vld [vmem:[#allocation9 + $0xf4] ss:$8 sps:$4 sm:$0xff]  }
 0x34b   :  { %v1551_v51 = vadd.f32 %v1550_v50, %v6783_v46  ;;  %v1615_v52 = vmax.f32 %v1549_v47, 0.0  ;;  %v6009_v46 = vld [vmem:[%s7893_s30 + $0x30] sm:$0xff]   ;;  %3144 = vmatprep.subr.bf16.mxu0 %v5735_v25 }
 0x34c   :  { %5149 = vmatmul.mubr.msk.bf16.gmra.mxu0 %vm315_vm2, %v6009_v46 }
 0x34d   :  { %v1616_v53 = vmax.f32 %v1551_v51, 0.0  ;;  %v1647_v57 = vpack.c.bf16 %v1615_v52, %v1613_v20  ;;  %2312 = vmatprep.mubr.bf16.mxu0 %v6176_v0 }
 0x34e   :  { %3145 = vmatpush1.bf16.msra.mxu0 %v5733_v30 }
 0x34f   :  { %v1648_v55 = vpack.c.bf16 %v1616_v53, %v1614_v16  ;;  %3146 = vmatprep.subr.bf16.mxu0 %v5738_v32  ;;  %v5744_v53 = vld [vmem:[#allocation9 + $0xe4] ss:$8 sps:$4 sm:$0xff]  }
 0x351   :  { %2035 = vmatprep.mubr.bf16.mxu1 %v1648_v55 }
 0x352   :  { %2036 = vmatmul.mubr.bf16.gmra.mxu1 %v1647_v57  ;;  %3147 = vmatpush1.bf16.msra.mxu0 %v5736_v37 }
 0x353   :  { %3148 = vmatprep.subr.bf16.mxu0 %v5741_v6 }
 0x354   :  { %5150 = vmatmul.mubr.msk.bf16.gmra.mxu0 %vm315_vm2, %v6010_v44 }
 0x355   :  { %2322 = vmatprep.mubr.bf16.mxu0 %v6176_v0 }
 0x356   :  { %3149 = vmatpush2.bf16.msra.mxu0 %v5739_v4 }
 0x357   :  { %3150 = vmatprep.subr.bf16.mxu0 %v5744_v53 }
 0x35c   :  { %5151 = vmatmul.mubr.msk.bf16.gmra.mxu0 %vm315_vm2, %v6011_v26  ;;  %v5742_v26 = vld [vmem:[#allocation9 + $0xe0] ss:$8 sps:$4 sm:$0xff]  }
 0x35d   :  { %2332 = vmatprep.mubr.bf16.mxu0 %v6176_v0  ;;  %3151 = vmatpush2.bf16.msra.mxu0 %v5742_v26 }
 0x35e   :  { %3152 = vmatprep.subr.bf16.mxu0 %v5747_v39 }
 0x361   :  { %3153 = vmatpush2.bf16.msra.mxu0 %v5745_v35 }
 0x362   :  { %3154 = vmatprep.subr.bf16.mxu0 %v5750_v8 }
 0x364   :  { %5152 = vmatmul.mubr.msk.bf16.gmra.mxu0 %vm315_vm2, %v6012_v58 }
 0x365   :  { %2342 = vmatprep.mubr.bf16.mxu0 %v6176_v0  ;;  %3155 = vmatpush2.bf16.msra.mxu0 %v5748_v17 }
 0x36c   :  { %5153 = vmatmul.mubr.msk.bf16.gmra.mxu0 %vm315_vm2, %v6013_v29 }
 0x36d   :  { %2352 = vmatprep.mubr.bf16.mxu0 %v6176_v0 }
 0x374   :  { %5154 = vmatmul.mubr.msk.bf16.gmra.mxu0 %vm315_vm2, %v6014_v61 }
 0x375   :  { %2362 = vmatprep.mubr.bf16.mxu0 %v6176_v0 }
 0x37c   :  { %5155 = vmatmul.mubr.msk.bf16.gmra.mxu0 %vm315_vm2, %v6015_v3 }
 0x37d   :  { %2372 = vmatprep.mubr.bf16.mxu0 %v6176_v0 }
 0x384   :  { %5156 = vmatmul.mubr.msk.bf16.gmra.mxu0 %vm315_vm2, %v6016_v15 }
 0x385   :  { %2382 = vmatprep.mubr.bf16.mxu0 %v6176_v0 }
 0x38c   :  { %5157 = vmatmul.mubr.msk.bf16.gmra.mxu0 %vm315_vm2, %v6017_v18 }
 0x38d   :  { %2392 = vmatprep.mubr.bf16.mxu0 %v6176_v0  ;;  %v6941_v0 = vrot.slane %v1681_v11, %v6523_v12 }
 0x394   :  { %5158 = vmatmul.mubr.msk.bf16.gmra.mxu0 %vm315_vm2, %v6018_v19 }
 0x39a   :  { %v1887_v38 = vpop.f32.mrf.mxu0 }
 0x39b   :  { %v1888_v24 = vadd.f32 %v1887_v38, %v6941_v0 }
 0x39c   :  { %v1889_v48 = vpop.f32.mrf.mxu0 }
 0x39d   :  { %v1890_v40 = vadd.f32 %v1889_v48, %v6934_v13  ;;  %v2046_v59 = vmax.f32 %v1888_v24, 0.0 }
 0x39e   :  { %v1891_v21 = vpop.f32.mrf.mxu0 }
 0x39f   :  { %v1892_v22 = vadd.f32 %v1891_v21, %v6941_v0  ;;  %v2047_v31 = vmax.f32 %v1890_v40, 0.0  ;;  %v5753_v21 = vld [vmem:[#allocation9 + $0xb4] ss:$8 sps:$4 sm:$0xff]  }
 0x3a0   :  { %v1893_v41 = vpop.f32.mrf.mxu0  ;;  %3156 = vmatprep.subr.bf16.mxu0 %v5753_v21 }
 0x3a1   :  { %v1894_v27 = vadd.f32 %v1893_v41, %v6934_v13  ;;  %v2048_v28 = vmax.f32 %v1892_v22, 0.0  ;;  %v5751_v41 = vld [vmem:[#allocation9 + $0xb0] ss:$8 sps:$4 sm:$0xff]  }
 0x3a2   :  { %v1897_v45 = vpop.f32.mrf.mxu0  ;;  %3157 = vmatpush2.bf16.msra.mxu0 %v5751_v41 }
 0x3a3   :  { %v2049_v56 = vmax.f32 %v1894_v27, 0.0  ;;  %v2110_v34 = vpack.c.bf16 %v2048_v28, %v2046_v59  ;;  %v1898_v43 = vadd.f32 %v1897_v45, %v6941_v0  ;;  %v5756_v28 = vld [vmem:[#allocation9 + $0xa4] ss:$8 sps:$4 sm:$0xff]   ;;  %v5754_v59 = vld [vmem:[#allocation9 + $0xa0] ss:$8 sps:$4 sm:$0xff]  }
 0x3a4   :  { %v1899_v33 = vpop.f32.mrf.mxu0  ;;  %3158 = vmatprep.subr.bf16.mxu0 %v5756_v28 }
 0x3a5   :  { %v2111_v54 = vpack.c.bf16 %v2049_v56, %v2047_v31  ;;  %v1900_v2 = vadd.f32 %v1899_v33, %v6934_v13  ;;  %v2050_v20 = vmax.f32 %v1898_v43, 0.0  ;;  %v5757_v43 = vld [vmem:[#allocation9 + $0x90] ss:$8 sps:$4 sm:$0xff]  }
 0x3a6   :  { %v1901_v36 = vpop.f32.mrf.mxu0  ;;  %3159 = vmatpush2.bf16.msra.mxu0 %v5754_v59 }
 0x3a7   :  { %v1902_v42 = vadd.f32 %v1901_v36, %v6941_v0  ;;  %2595 = vmatprep.mubr.bf16.mxu1 %v2111_v54  ;;  %v2051_v52 = vmax.f32 %v1900_v2, 0.0 }
 0x3a8   :  { %v1903_v47 = vpop.f32.mrf.mxu0  ;;  %2596 = vmatmul.mubr.bf16.vlgmr.msra.gmra.mxu1 %v2110_v34  ;;  %v5759_v34 = vld [vmem:[#allocation9 + $0x94] ss:$8 sps:$4 sm:$0xff]  }
 0x3a9   :  { %v1904_v49 = vadd.f32 %v1903_v47, %v6934_v13  ;;  %v2052_v50 = vmax.f32 %v1902_v42, 0.0  ;;  %3160 = vmatprep.subr.bf16.mxu0 %v5759_v34 }
 0x3aa   :  { %v1907_v51 = vpop.f32.mrf.mxu0  ;;  %3161 = vmatpush2.bf16.msra.mxu0 %v5757_v43 }
 0x3ab   :  { %v2053_v16 = vmax.f32 %v1904_v49, 0.0  ;;  %v2112_v46 = vpack.c.bf16 %v2052_v50, %v2050_v20  ;;  %v1908_v60 = vadd.f32 %v1907_v51, %v6941_v0 }
 0x3ac   :  { %v1909_v55 = vpop.f32.mrf.mxu0 }
 0x3ad   :  { %v2113_v57 = vpack.c.bf16 %v2053_v16, %v2051_v52  ;;  %v1910_v58 = vadd.f32 %v1909_v55, %v6934_v13  ;;  %v2054_v10 = vmax.f32 %v1908_v60, 0.0 }
 0x3ae   :  { %v1911_v44 = vpop.f32.mrf.mxu0 }
 0x3af   :  { %v1912_v29 = vadd.f32 %v1911_v44, %v6941_v0  ;;  %2605 = vmatprep.mubr.bf16.mxu1 %v2113_v57  ;;  %v2055_v5 = vmax.f32 %v1910_v58, 0.0 }
 0x3b0   :  { %v1913_v61 = vpop.f32.mrf.mxu0  ;;  %2606 = vmatmul.mubr.bf16.gmra.mxu1 %v2112_v46 }
 0x3b1   :  { %v1914_v63 = vadd.f32 %v1913_v61, %v6934_v13  ;;  %v2056_v1 = vmax.f32 %v1912_v29, 0.0 }
 0x3b2   :  { %v1917_v3 = vpop.f32.mrf.mxu1 }
 0x3b3   :  { %v2057_v15 = vmax.f32 %v1914_v63, 0.0  ;;  %v2114_v38 = vpack.c.bf16 %v2056_v1, %v2054_v10  ;;  %v1918_v40 = vadd.f32 %v1917_v3, %v6941_v0 }
 0x3b4   :  { %v1919_v18 = vpop.f32.mrf.mxu1 }
 0x3b5   :  { %v2115_v11 = vpack.c.bf16 %v2057_v15, %v2055_v5  ;;  %v1920_v19 = vadd.f32 %v1919_v18, %v6934_v13  ;;  %v2058_v45 = vmax.f32 %v1918_v40, 0.0 }
 0x3b6   :  { %v1921_v14 = vpop.f32.mrf.mxu1 }
 0x3b7   :  { %v1922_v48 = vadd.f32 %v1921_v14, %v6941_v0  ;;  %2615 = vmatprep.mubr.bf16.mxu1 %v2115_v11  ;;  %v2059_v25 = vmax.f32 %v1920_v19, 0.0 }
 0x3b8   :  { %v1923_v22 = vpop.f32.mrf.mxu1  ;;  %2616 = vmatmul.mubr.bf16.gmra.mxu1 %v2114_v38 }
 0x3b9   :  { %v1924_v62 = vadd.f32 %v1923_v22, %v6934_v13  ;;  %v2060_v23 = vmax.f32 %v1922_v48, 0.0 }
 0x3ba   :  { %v1927_v24 = vpop.f32.mrf.mxu1 }
 0x3bb   :  { %v2061_v27 = vmax.f32 %v1924_v62, 0.0  ;;  %v2116_v56 = vpack.c.bf16 %v2060_v23, %v2058_v45  ;;  %v1928_v36 = vadd.f32 %v1927_v24, %v6941_v0 }
 0x3bc   :  { %v1929_v30 = vpop.f32.mrf.mxu1 }
 0x3bd   :  { %v2117_v31 = vpack.c.bf16 %v2061_v27, %v2059_v25  ;;  %v1930_v33 = vadd.f32 %v1929_v30, %v6934_v13  ;;  %v2062_v50 = vmax.f32 %v1928_v36, 0.0 }
 0x3be   :  { %v1931_v32 = vpop.f32.mrf.mxu1 }
 0x3bf   :  { %v1932_v54 = vadd.f32 %v1931_v32, %v6941_v0  ;;  %2625 = vmatprep.mubr.bf16.mxu1 %v2117_v31  ;;  %v2063_v47 = vmax.f32 %v1930_v33, 0.0 }
 0x3c0   :  { %v1933_v37 = vpop.f32.mrf.mxu1  ;;  %2626 = vmatmul.mubr.bf16.gmra.mxu1 %v2116_v56 }
 0x3c1   :  { %v1934_v2 = vadd.f32 %v1933_v37, %v6934_v13  ;;  %v2064_v42 = vmax.f32 %v1932_v54, 0.0 }
 0x3c2   :  { %v1937_v6 = vpop.f32.mrf.mxu1 }
 0x3c3   :  { %v2065_v49 = vmax.f32 %v1934_v2, 0.0  ;;  %v2118_v52 = vpack.c.bf16 %v2064_v42, %v2062_v50  ;;  %v1938_v55 = vadd.f32 %v1937_v6, %v6941_v0 }
 0x3c4   :  { %v1939_v51 = vpop.f32.mrf.mxu1 }
 0x3c5   :  { %v2119_v4 = vpack.c.bf16 %v2065_v49, %v2063_v47  ;;  %v1940_v53 = vadd.f32 %v1939_v51, %v6934_v13  ;;  %v2066_v39 = vmax.f32 %v1938_v55, 0.0 }
 0x3c6   :  { %v1941_v16 = vpop.f32.mrf.mxu1 }
 0x3c7   :  { %v1942_v20 = vadd.f32 %v1941_v16, %v6941_v0  ;;  %2635 = vmatprep.mubr.bf16.mxu1 %v2119_v4  ;;  %v2067_v58 = vmax.f32 %v1940_v53, 0.0 }
 0x3c8   :  { %v1943_v57 = vpop.f32.mrf.mxu1  ;;  %2636 = vmatmul.mubr.bf16.gmra.mxu1 %v2118_v52 }
 0x3c9   :  { %v1944_v46 = vadd.f32 %v1943_v57, %v6934_v13  ;;  %v2068_v44 = vmax.f32 %v1942_v20, 0.0 }
 0x3ca   :  { %v1947_v26 = vpop.f32.mrf.mxu1 }
 0x3cb   :  { %v2069_v29 = vmax.f32 %v1944_v46, 0.0  ;;  %v2120_v63 = vpack.c.bf16 %v2068_v44, %v2066_v39  ;;  %v1948_v5 = vadd.f32 %v1947_v26, %v6941_v0 }
 0x3cc   :  { %v1949_v60 = vpop.f32.mrf.mxu1 }
 0x3cd   :  { %v2121_v61 = vpack.c.bf16 %v2069_v29, %v2067_v58  ;;  %v1950_v3 = vadd.f32 %v1949_v60, %v6934_v13  ;;  %v2070_v14 = vmax.f32 %v1948_v5, 0.0 }
 0x3ce   :  { %v1951_v1 = vpop.f32.mrf.mxu1  ;;  %v6983_v46 = vpop.f32.mrf.mxu0 }
 0x3cf   :  { %v1952_v35 = vadd.f32 %v1951_v1, %v6941_v0  ;;  %2645 = vmatprep.mubr.bf16.mxu1 %v2121_v61  ;;  %v2071_v11 = vmax.f32 %v1950_v3, 0.0 }
 0x3d0   :  { %v1953_v15 = vpop.f32.mrf.mxu1  ;;  %2646 = vmatmul.mubr.bf16.gmra.mxu1 %v2120_v63  ;;  %v6985_v63 = vpop.f32.mrf.mxu0 }
 0x3d1   :  { %v1954_v8 = vadd.f32 %v1953_v15, %v6934_v13  ;;  %v2072_v10 = vmax.f32 %v1952_v35, 0.0 }
 0x3d2   :  { %v1957_v18 = vpop.f32.mrf.mxu1 }
 0x3d3   :  { %v2073_v38 = vmax.f32 %v1954_v8, 0.0  ;;  %v2122_v48 = vpack.c.bf16 %v2072_v10, %v2070_v14  ;;  %v1958_v62 = vadd.f32 %v1957_v18, %v6941_v0  ;;  %v6991_v18 = vpop.f32.mrf.mxu0 }
 0x3d4   :  { %v1959_v17 = vpop.f32.mrf.mxu1 }
 0x3d5   :  { %v2123_v19 = vpack.c.bf16 %v2073_v38, %v2071_v11  ;;  %v1960_v40 = vadd.f32 %v1959_v17, %v6934_v13  ;;  %v2074_v45 = vmax.f32 %v1958_v62, 0.0  ;;  %v5762_v11 = vld [vmem:[#allocation9 + $0x84] ss:$8 sps:$4 sm:$0xff]   ;;  %v5760_v17 = vld [vmem:[#allocation9 + $0x80] ss:$8 sps:$4 sm:$0xff]   ;;  %v6993_v62 = vpop.f32.mrf.mxu0 }
 0x3d6   :  { %v1961_v21 = vpop.f32.mrf.mxu1  ;;  %3162 = vmatprep.subr.bf16.mxu0 %v5762_v11 }
 0x3d7   :  { %v1962_v22 = vadd.f32 %v1961_v21, %v6941_v0  ;;  %2655 = vmatprep.mubr.bf16.mxu1 %v2123_v19  ;;  %v2075_v27 = vmax.f32 %v1960_v40, 0.0  ;;  %3163 = vmatpush2.bf16.msra.mxu0 %v5760_v17 }
 0x3d8   :  { %v1963_v23 = vpop.f32.mrf.mxu1  ;;  %2656 = vmatmul.mubr.bf16.gmra.mxu1 %v2122_v48 }
 0x3d9   :  { %v1964_v24 = vadd.f32 %v1963_v23, %v6934_v13  ;;  %v2076_v41 = vmax.f32 %v1962_v22, 0.0 }
 0x3da   :  { %v1967_v25 = vpop.f32.mrf.mxu1 }
 0x3db   :  { %v2077_v28 = vmax.f32 %v1964_v24, 0.0  ;;  %v2124_v56 = vpack.c.bf16 %v2076_v41, %v2074_v45  ;;  %v1968_v54 = vadd.f32 %v1967_v25, %v6941_v0 }
 0x3dc   :  { %v1969_v30 = vpop.f32.mrf.mxu1 }
 0x3dd   :  { %v2125_v31 = vpack.c.bf16 %v2077_v28, %v2075_v27  ;;  %v1970_v59 = vadd.f32 %v1969_v30, %v6934_v13  ;;  %v2078_v43 = vmax.f32 %v1968_v54, 0.0  ;;  %v6999_v30 = vpop.f32.mrf.mxu0 }
 0x3de   :  { %v1971_v32 = vpop.f32.mrf.mxu1 }
 0x3df   :  { %v1972_v33 = vadd.f32 %v1971_v32, %v6941_v0  ;;  %2665 = vmatprep.mubr.bf16.mxu1 %v2125_v31  ;;  %v2079_v42 = vmax.f32 %v1970_v59, 0.0 }
 0x3e0   :  { %v1973_v34 = vpop.f32.mrf.mxu1  ;;  %2666 = vmatmul.mubr.bf16.gmra.mxu1 %v2124_v56 }
 0x3e1   :  { %v1974_v36 = vadd.f32 %v1973_v34, %v6934_v13  ;;  %v2080_v37 = vmax.f32 %v1972_v33, 0.0 }
 0x3e2   :  { %v1977_v2 = vpop.f32.mrf.mxu1 }
 0x3e3   :  { %v2081_v6 = vmax.f32 %v1974_v36, 0.0  ;;  %v2126_v50 = vpack.c.bf16 %v2080_v37, %v2078_v43  ;;  %v1978_v16 = vadd.f32 %v1977_v2, %v6941_v0  ;;  %v7001_v36 = vpop.f32.mrf.mxu0 }
 0x3e4   :  { %v1979_v47 = vpop.f32.mrf.mxu1 }
 0x3e5   :  { %v2127_v49 = vpack.c.bf16 %v2081_v6, %v2079_v42  ;;  %v1980_v4 = vadd.f32 %v1979_v47, %v6934_v13  ;;  %v2082_v58 = vmax.f32 %v1978_v16, 0.0 }
 0x3e6   :  { %v1981_v51 = vpop.f32.mrf.mxu1 }
 0x3e7   :  { %v1982_v52 = vadd.f32 %v1981_v51, %v6941_v0  ;;  %2675 = vmatprep.mubr.bf16.mxu1 %v2127_v49  ;;  %v2083_v44 = vmax.f32 %v1980_v4, 0.0 }
 0x3e8   :  { %v1983_v53 = vpop.f32.mrf.mxu1  ;;  %2676 = vmatmul.mubr.bf16.gmra.mxu1 %v2126_v50  ;;  %v7007_v50 = vpop.f32.mrf.mxu0 }
 0x3e9   :  { %v1984_v20 = vadd.f32 %v1983_v53, %v6934_v13  ;;  %v2084_v55 = vmax.f32 %v1982_v52, 0.0 }
 0x3ea   :  { %v1987_v57 = vpop.f32.mrf.mxu1 }
 0x3eb   :  { %v2085_v26 = vmax.f32 %v1984_v20, 0.0  ;;  %v2128_v60 = vpack.c.bf16 %v2084_v55, %v2082_v58  ;;  %v1988_v35 = vadd.f32 %v1987_v57, %v6941_v0  ;;  %v7009_v57 = vpop.f32.mrf.mxu0 }
 0x3ec   :  { %v1989_v29 = vpop.f32.mrf.mxu1 }
 0x3ed   :  { %v2129_v39 = vpack.c.bf16 %v2085_v26, %v2083_v44  ;;  %v1990_v1 = vadd.f32 %v1989_v29, %v6934_v13  ;;  %v2086_v19 = vmax.f32 %v1988_v35, 0.0 }
 0x3ee   :  { %v1991_v61 = vpop.f32.mrf.mxu1 }
 0x3ef   :  { %v1992_v3 = vadd.f32 %v1991_v61, %v6941_v0  ;;  %2685 = vmatprep.mubr.bf16.mxu1 %v2129_v39  ;;  %v2087_v38 = vmax.f32 %v1990_v1, 0.0  ;;  %v7015_v1 = vpop.f32.mrf.mxu0 }
 0x3f0   :  { %v1993_v5 = vpop.f32.mrf.mxu1  ;;  %2686 = vmatmul.mubr.bf16.gmra.mxu1 %v2128_v60 }
 0x3f1   :  { %v1994_v15 = vadd.f32 %v1993_v5, %v6934_v13  ;;  %v2088_v8 = vmax.f32 %v1992_v3, 0.0 }
 0x3f2   :  { %v1997_v10 = vpop.f32.mrf.mxu1 }
 0x3f3   :  { %v2089_v14 = vmax.f32 %v1994_v15, 0.0  ;;  %v2130_v40 = vpack.c.bf16 %v2088_v8, %v2086_v19  ;;  %v1998_v41 = vadd.f32 %v1997_v10, %v6941_v0 }
 0x3f4   :  { %v1999_v48 = vpop.f32.mrf.mxu1 }
 0x3f5   :  { %v2131_v21 = vpack.c.bf16 %v2089_v14, %v2087_v38  ;;  %v2000_v23 = vadd.f32 %v1999_v48, %v6934_v13  ;;  %v2090_v32 = vmax.f32 %v1998_v41, 0.0  ;;  %v7017_v38 = vpop.f32.mrf.mxu0 }
 0x3f6   :  { %v2001_v22 = vpop.f32.mrf.mxu1 }
 0x3f7   :  { %v2002_v24 = vadd.f32 %v2001_v22, %v6941_v0  ;;  %2695 = vmatprep.mubr.bf16.mxu1 %v2131_v21  ;;  %v2091_v31 = vmax.f32 %v2000_v23, 0.0  ;;  %v7023_v23 = vpop.f32.mrf.mxu0 }
 0x3f8   :  { %v2003_v25 = vpop.f32.mrf.mxu1  ;;  %2696 = vmatmul.mubr.bf16.gmra.mxu1 %v2130_v40 }
 0x3f9   :  { %v2004_v27 = vadd.f32 %v2003_v25, %v6934_v13  ;;  %v2092_v28 = vmax.f32 %v2002_v24, 0.0 }
 0x3fa   :  { %v2007_v45 = vpop.f32.mrf.mxu1 }
 0x3fb   :  { %v2093_v56 = vmax.f32 %v2004_v27, 0.0  ;;  %v2132_v54 = vpack.c.bf16 %v2092_v28, %v2090_v32  ;;  %v2008_v42 = vadd.f32 %v2007_v45, %v6941_v0 }
 0x3fc   :  { %v2009_v59 = vpop.f32.mrf.mxu1 }
 0x3fd   :  { %v2133_v33 = vpack.c.bf16 %v2093_v56, %v2091_v31  ;;  %v2010_v37 = vadd.f32 %v2009_v59, %v6934_v13  ;;  %v2094_v52 = vmax.f32 %v2008_v42, 0.0  ;;  %v7025_v56 = vpop.f32.mrf.mxu0 }
 0x3fe   :  { %v2011_v34 = vpop.f32.mrf.mxu1 }
 0x3ff   :  { %v2012_v2 = vadd.f32 %v2011_v34, %v6941_v0  ;;  %2705 = vmatprep.mubr.bf16.mxu1 %v2133_v33  ;;  %v2095_v51 = vmax.f32 %v2010_v37, 0.0 }
 0x400   :  { %v2013_v6 = vpop.f32.mrf.mxu1  ;;  %2706 = vmatmul.mubr.bf16.gmra.mxu1 %v2132_v54 }
 0x401   :  { %v2014_v43 = vadd.f32 %v2013_v6, %v6934_v13  ;;  %v2096_v47 = vmax.f32 %v2012_v2, 0.0  ;;  %v7031_v2 = vpop.f32.mrf.mxu0 }
 0x402   :  { %v2017_v49 = vpop.f32.mrf.mxu1 }
 0x403   :  { %v2097_v4 = vmax.f32 %v2014_v43, 0.0  ;;  %v2134_v20 = vpack.c.bf16 %v2096_v47, %v2094_v52  ;;  %v2018_v58 = vadd.f32 %v2017_v49, %v6941_v0 }
 0x404   :  { %v2019_v16 = vpop.f32.mrf.mxu1 }
 0x405   :  { %v2135_v53 = vpack.c.bf16 %v2097_v4, %v2095_v51  ;;  %v2020_v44 = vadd.f32 %v2019_v16, %v6934_v13  ;;  %v2098_v5 = vmax.f32 %v2018_v58, 0.0  ;;  %v7033_v51 = vpop.f32.mrf.mxu0 }
 0x406   :  { %v2021_v55 = vpop.f32.mrf.mxu1 }
 0x407   :  { %v2022_v26 = vadd.f32 %v2021_v55, %v6941_v0  ;;  %2715 = vmatprep.mubr.bf16.mxu1 %v2135_v53  ;;  %v2099_v3 = vmax.f32 %v2020_v44, 0.0  ;;  %v7035_v4 = vpop.f32.mrf.mxu0 }
 0x408   :  { %v2023_v29 = vpop.f32.mrf.mxu1  ;;  %2716 = vmatmul.mubr.bf16.gmra.mxu1 %v2134_v20 }
 0x409   :  { %v2024_v39 = vadd.f32 %v2023_v29, %v6934_v13  ;;  %v2100_v60 = vmax.f32 %v2022_v26, 0.0  ;;  %v7037_v52 = vpop.f32.mrf.mxu0  ;;  %v5763_v29 = vld [vmem:[#allocation10 + $0x70] ss:$8 sps:$4 sm:$0xff]  }
 0x40a   :  { %v2027_v61 = vpop.f32.mrf.mxu1 }
 0x40b   :  { %v2101_v35 = vmax.f32 %v2024_v39, 0.0  ;;  %v2136_v10 = vpack.c.bf16 %v2100_v60, %v2098_v5  ;;  %v2028_v19 = vadd.f32 %v2027_v61, %v6941_v0  ;;  %v5765_v39 = vld [vmem:[#allocation10 + $0x74] ss:$8 sps:$4 sm:$0xff]  }
 0x40c   :  { %v2029_v15 = vpop.f32.mrf.mxu1  ;;  %3625 = vmatprep.subr.bf16.mxu1 %v5765_v39 }
 0x40d   :  { %v2137_v8 = vpack.c.bf16 %v2101_v35, %v2099_v3  ;;  %v2030_v14 = vadd.f32 %v2029_v15, %v6934_v13  ;;  %v2102_v25 = vmax.f32 %v2028_v19, 0.0  ;;  %3626 = vmatpush1.bf16.msra.mxu1 %v5763_v29  ;;  %v5766_v3 = vld [vmem:[#allocation10 + $0x60] ss:$8 sps:$4 sm:$0xff]   ;;  %v5768_v35 = vld [vmem:[#allocation10 + $0x64] ss:$8 sps:$4 sm:$0xff]  }
 0x40e   :  { %v2031_v11 = vpop.f32.mrf.mxu1  ;;  %3627 = vmatprep.subr.bf16.mxu1 %v5768_v35  ;;  %v5774_v19 = vld [vmem:[#allocation10 + $0x44] ss:$8 sps:$4 sm:$0xff]  }
 0x40f   :  { %v2032_v17 = vadd.f32 %v2031_v11, %v6941_v0  ;;  %2725 = vmatprep.mubr.bf16.mxu1 %v2137_v8  ;;  %v2103_v24 = vmax.f32 %v2030_v14, 0.0  ;;  %v5769_v8 = vld [vmem:[#allocation10 + $0x50] ss:$8 sps:$4 sm:$0xff]  }
 0x410   :  { %v2033_v48 = vpop.f32.mrf.mxu1  ;;  %2726 = vmatmul.mubr.bf16.gmra.mxu1 %v2136_v10  ;;  %v5771_v10 = vld [vmem:[#allocation10 + $0x54] ss:$8 sps:$4 sm:$0xff]  }
 0x411   :  { %v2034_v21 = vadd.f32 %v2033_v48, %v6934_v13  ;;  %v2104_v40 = vmax.f32 %v2032_v17, 0.0  ;;  %3628 = vmatpush1.bf16.msra.mxu1 %v5766_v3  ;;  %v5772_v17 = vld [vmem:[#allocation10 + $0x40] ss:$8 sps:$4 sm:$0xff]   ;;  %v5781_v3 = vld [vmem:[#allocation10 + $0x10] ss:$8 sps:$4 sm:$0xff]  }
 0x412   :  { %v2037_v22 = vpop.f32.mrf.mxu1  ;;  %3629 = vmatprep.subr.bf16.mxu1 %v5771_v10 }
 0x413   :  { %v2105_v41 = vmax.f32 %v2034_v21, 0.0  ;;  %v2138_v45 = vpack.c.bf16 %v2104_v40, %v2102_v25  ;;  %v2038_v33 = vadd.f32 %v2037_v22, %v6941_v0  ;;  %v2756_v40 = vld [vmem:[%s7874_s11] sm:$0x3] }
 0x414   :  { %v2039_v27 = vpop.f32.mrf.mxu1  ;;  %v7078_v25 = vrot.slane %v2756_v40, %v6521_v9 }
 0x415   :  { %v2139_v28 = vpack.c.bf16 %v2105_v41, %v2103_v24  ;;  %v2040_v32 = vadd.f32 %v2039_v27, %v6934_v13  ;;  %v2106_v43 = vmax.f32 %v2038_v33, 0.0  ;;  %3630 = vmatpush1.bf16.msra.mxu1 %v5769_v8  ;;  %v5775_v27 = vld [vmem:[#allocation10 + $0x30] ss:$8 sps:$4 sm:$0xff]  }
 0x416   :  { %v2041_v31 = vpop.f32.mrf.mxu1  ;;  %3631 = vmatprep.subr.bf16.mxu1 %v5774_v19 }
 0x417   :  { %v2042_v59 = vadd.f32 %v2041_v31, %v6941_v0  ;;  %2735 = vmatprep.mubr.bf16.mxu1 %v2139_v28  ;;  %v2107_v42 = vmax.f32 %v2040_v32, 0.0  ;;  %v7039_v0 = vpop.f32.mrf.mxu0  ;;  %v5777_v28 = vld [vmem:[#allocation10 + $0x34] ss:$8 sps:$4 sm:$0xff]   ;;  %v7082_v31 = vrot.slane %v2756_v40, %v6523_v12 }
 0x418   :  { %v2043_v54 = vpop.f32.mrf.mxu1  ;;  %2736 = vmatmul.mubr.bf16.gmra.mxu1 %v2138_v45 }
 0x419   :  { %v2044_v34 = vadd.f32 %v2043_v54, %v6934_v13  ;;  %v2108_v37 = vmax.f32 %v2042_v59, 0.0  ;;  %v7041_v16 = vpop.f32.mrf.mxu0  ;;  %3632 = vmatpush1.bf16.msra.mxu1 %v5772_v17  ;;  %v5780_v59 = vld [vmem:[#allocation10 + $0x24] ss:$8 sps:$4 sm:$0xff]  }
 0x41a   :  { %3633 = vmatprep.subr.bf16.mxu1 %v5777_v28  ;;  %v5786_v17 = vld [vmem:[#allocation10 + $0x4] ss:$8 sps:$4 sm:$0xff]  }
 0x41b   :  { %v2109_v6 = vmax.f32 %v2044_v34, 0.0  ;;  %v2140_v49 = vpack.c.bf16 %v2108_v37, %v2106_v43  ;;  %v7043_v13 = vpop.f32.mrf.mxu0 }
 0x41d   :  { %v2141_v47 = vpack.c.bf16 %v2109_v6, %v2107_v42  ;;  %v7045_v53 = vpop.f32.mrf.mxu0  ;;  %3634 = vmatpush1.bf16.msra.mxu1 %v5775_v27 }
 0x41e   :  { %3635 = vmatprep.subr.bf16.mxu1 %v5780_v59 }
 0x41f   :  { %2745 = vmatprep.mubr.bf16.mxu1 %v2141_v47  ;;  %v7047_v20 = vpop.f32.mrf.mxu0  ;;  %v5783_v47 = vld [vmem:[#allocation10 + $0x14] ss:$8 sps:$4 sm:$0xff]  }
 0x420   :  { %2746 = vmatmul.mubr.bf16.gmra.mxu1 %v2140_v49 }
 0x421   :  { %v7049_v55 = vpop.f32.mrf.mxu0 }
 0x423   :  { %v7051_v44 = vpop.f32.mrf.mxu0 }
 0x425   :  { %v7053_v26 = vpop.f32.mrf.mxu0 }
 0x427   :  { %v7055_v58 = vpop.f32.mrf.mxu0 }
 0x429   :  { %v7057_v60 = vpop.f32.mrf.mxu0 }
 0x42b   :  { %v7059_v61 = vpop.f32.mrf.mxu0 }
 0x42d   :  { %v7061_v5 = vpop.f32.mrf.mxu0 }
 0x42f   :  { %v7063_v15 = vpop.f32.mrf.mxu0 }
 0x431   :  { %v7065_v11 = vpop.f32.mrf.mxu0 }
 0x433   :  { %v7067_v14 = vpop.f32.mrf.mxu0 }
 0x435   :  { %v7069_v48 = vpop.f32.mrf.mxu0 }
 0x437   :  { %v7074_v24 = vpop.f32.mrf.mxu0 }
 0x439   :  { %v7085_v34 = vpop.f32.mrf.mxu0 }
 0x43b   :  { %v7092_v39 = vpop.f32.mrf.mxu0 }
 0x43d   :  { %v7097_v28 = vpop.f32.mrf.mxu0 }
 0x468   :  { %v2597_v21 = vpop.f32.mrf.mxu1 }
 0x469   :  { %v2598_v45 = vadd.f32 %v2597_v21, %v6983_v46 }
 0x46a   :  { %v2599_v22 = vpop.f32.mrf.mxu1 }
 0x46b   :  { %v2600_v41 = vadd.f32 %v2599_v22, %v6985_v63  ;;  %v5778_v63 = vld [vmem:[#allocation10 + $0x20] ss:$8 sps:$4 sm:$0xff]   ;;  %v2768_v46 = vadd.f32 %v7082_v31, %v2598_v45 }
 0x46c   :  { %v2601_v32 = vpop.f32.mrf.mxu1  ;;  %3636 = vmatpush1.bf16.msra.mxu1 %v5778_v63  ;;  %v5784_v45 = vld [vmem:[#allocation10] ss:$8 sps:$4 sm:$0xff]  }
 0x46d   :  { %v2602_v33 = vadd.f32 %v2601_v32, %v6991_v18  ;;  %v2769_v37 = vadd.f32 %v7078_v25, %v2600_v41  ;;  %3637 = vmatprep.subr.bf16.mxu1 %v5783_v47 }
 0x46e   :  { %v2603_v54 = vpop.f32.mrf.mxu1 }
 0x46f   :  { %v2770_v42 = vadd.f32 %v7082_v31, %v2602_v33  ;;  %v2604_v6 = vadd.f32 %v2603_v54, %v6993_v62  ;;  %v2833_v35 = vmax.f32 %v2769_v37, 0.0  ;;  %v2832_v62 = vmax.f32 %v2768_v46, 0.0  ;;  %v5789_v33 = vld [vmem:[#allocation10 + $0xf4] ss:$8 sps:$4 sm:$0xff]  }
 0x470   :  { %v2607_v43 = vpop.f32.mrf.mxu1  ;;  %3638 = vmatpush1.bf16.msra.mxu1 %v5781_v3 }
 0x471   :  { %v2771_v49 = vadd.f32 %v7078_v25, %v2604_v6  ;;  %v2834_v18 = vmax.f32 %v2770_v42, 0.0  ;;  %v2608_v19 = vadd.f32 %v2607_v43, %v6999_v30  ;;  %3639 = vmatprep.subr.bf16.mxu1 %v5786_v17  ;;  %v7104_v42 = vpop.f32.mrf.mxu0  ;;  %v5787_v6 = vld [vmem:[#allocation10 + $0xf0] ss:$8 sps:$4 sm:$0xff]  }
 0x472   :  { %v2609_v29 = vpop.f32.mrf.mxu1 }
 0x473   :  { %v2835_v8 = vmax.f32 %v2771_v49, 0.0  ;;  %v2610_v10 = vadd.f32 %v2609_v29, %v7001_v36  ;;  %v2896_v41 = vpack.c.bf16 %v2834_v18, %v2832_v62  ;;  %v2772_v30 = vadd.f32 %v7082_v31, %v2608_v19  ;;  %v7109_v17 = vpop.f32.mrf.mxu0  ;;  %v5790_v62 = vld [vmem:[#allocation10 + $0xe0] ss:$8 sps:$4 sm:$0xff]  }
 0x474   :  { %v2611_v21 = vpop.f32.mrf.mxu1  ;;  %3640 = vmatpush1.bf16.msra.mxu1 %v5784_v45 }
 0x475   :  { %v2612_v40 = vadd.f32 %v2611_v21, %v7007_v50  ;;  %v2897_v22 = vpack.c.bf16 %v2835_v8, %v2833_v35  ;;  %v2773_v32 = vadd.f32 %v7078_v25, %v2610_v10  ;;  %3641 = vmatprep.subr.bf16.mxu1 %v5789_v33  ;;  %v2836_v49 = vmax.f32 %v2772_v30, 0.0  ;;  %v7116_v45 = vpop.f32.mrf.mxu0 }
 0x476   :  { %v2613_v27 = vpop.f32.mrf.mxu1 }
 0x477   :  { %v2774_v59 = vadd.f32 %v7082_v31, %v2612_v40  ;;  %v2614_v36 = vadd.f32 %v2613_v27, %v7009_v57  ;;  %3164 = vmatprep.mubr.bf16.mxu0 %v2897_v22  ;;  %v2837_v46 = vmax.f32 %v2773_v32, 0.0  ;;  %v5792_v57 = vld [vmem:[#allocation10 + $0xe4] ss:$8 sps:$4 sm:$0xff]   ;;  %v5795_v40 = vld [vmem:[#allocation10 + $0xd4] ss:$8 sps:$4 sm:$0xff]  }
 0x478   :  { %v2617_v54 = vpop.f32.mrf.mxu1  ;;  %3165 = vmatmul.mubr.bf16.vlgmr.msra.gmra.mxu0 %v2896_v41  ;;  %3642 = vmatpush2.bf16.msra.mxu1 %v5787_v6  ;;  %v5793_v32 = vld [vmem:[#allocation10 + $0xd0] ss:$8 sps:$4 sm:$0xff]  }
 0x479   :  { %v2775_v50 = vadd.f32 %v7078_v25, %v2614_v36  ;;  %v2838_v63 = vmax.f32 %v2774_v59, 0.0  ;;  %v2618_v18 = vadd.f32 %v2617_v54, %v7015_v1  ;;  %3643 = vmatprep.subr.bf16.mxu1 %v5792_v57 }
 0x47a   :  { %v2619_v37 = vpop.f32.mrf.mxu1 }
 0x47b   :  { %v2839_v43 = vmax.f32 %v2775_v50, 0.0  ;;  %v2620_v47 = vadd.f32 %v2619_v37, %v7017_v38  ;;  %v2898_v8 = vpack.c.bf16 %v2838_v63, %v2836_v49  ;;  %v2776_v1 = vadd.f32 %v7082_v31, %v2618_v18  ;;  %v5801_v18 = vld [vmem:[#allocation10 + $0xb4] ss:$8 sps:$4 sm:$0xff]  }
 0x47c   :  { %v2621_v29 = vpop.f32.mrf.mxu1  ;;  %3644 = vmatpush2.bf16.msra.mxu1 %v5790_v62 }
 0x47d   :  { %v2622_v3 = vadd.f32 %v2621_v29, %v7023_v23  ;;  %v2899_v35 = vpack.c.bf16 %v2839_v43, %v2837_v46  ;;  %v2777_v19 = vadd.f32 %v7078_v25, %v2620_v47  ;;  %3645 = vmatprep.subr.bf16.mxu1 %v5795_v40  ;;  %v2840_v30 = vmax.f32 %v2776_v1, 0.0  ;;  %v7121_v43 = vpop.f32.mrf.mxu0  ;;  %v5796_v47 = vld [vmem:[#allocation10 + $0xc0] ss:$8 sps:$4 sm:$0xff]  }
 0x47e   :  { %v2623_v10 = vpop.f32.mrf.mxu1 }
 0x47f   :  { %v2778_v21 = vadd.f32 %v7082_v31, %v2622_v3  ;;  %v2624_v38 = vadd.f32 %v2623_v10, %v7025_v56  ;;  %3174 = vmatprep.mubr.bf16.mxu0 %v2899_v35  ;;  %v2841_v59 = vmax.f32 %v2777_v19, 0.0  ;;  %v5798_v56 = vld [vmem:[#allocation10 + $0xc4] ss:$8 sps:$4 sm:$0xff]   ;;  %v5799_v10 = vld [vmem:[#allocation10 + $0xb0] ss:$8 sps:$4 sm:$0xff]  }
 0x480   :  { %v2627_v22 = vpop.f32.mrf.mxu1  ;;  %3175 = vmatmul.mubr.bf16.gmra.mxu0 %v2898_v8  ;;  %3646 = vmatpush2.bf16.msra.mxu1 %v5793_v32  ;;  %v7128_v8 = vpop.f32.mrf.mxu0 }
 0x481   :  { %v2779_v23 = vadd.f32 %v7078_v25, %v2624_v38  ;;  %v2842_v41 = vmax.f32 %v2778_v21, 0.0  ;;  %v2628_v54 = vadd.f32 %v2627_v22, %v7031_v2  ;;  %3647 = vmatprep.subr.bf16.mxu1 %v5798_v56  ;;  %v5807_v56 = vld [vmem:[#allocation10 + $0x94] ss:$8 sps:$4 sm:$0xff]  }
 0x482   :  { %v2629_v27 = vpop.f32.mrf.mxu1  ;;  %v7133_v32 = vpop.f32.mrf.mxu0 }
 0x483   :  { %v2843_v36 = vmax.f32 %v2779_v23, 0.0  ;;  %v2630_v33 = vadd.f32 %v2629_v27, %v7033_v51  ;;  %v2900_v6 = vpack.c.bf16 %v2842_v41, %v2840_v30  ;;  %v2780_v2 = vadd.f32 %v7082_v31, %v2628_v54 }
 0x484   :  { %v2631_v50 = vpop.f32.mrf.mxu1  ;;  %3648 = vmatpush2.bf16.msra.mxu1 %v5796_v47 }
 0x485   :  { %v2632_v63 = vadd.f32 %v2631_v50, %v7035_v4  ;;  %v2901_v37 = vpack.c.bf16 %v2843_v36, %v2841_v59  ;;  %v2781_v57 = vadd.f32 %v7078_v25, %v2630_v33  ;;  %3649 = vmatprep.subr.bf16.mxu1 %v5801_v18  ;;  %v2844_v38 = vmax.f32 %v2780_v2, 0.0  ;;  %v5802_v59 = vld [vmem:[#allocation10 + $0xa0] ss:$8 sps:$4 sm:$0xff]  }
 0x486   :  { %v2633_v46 = vpop.f32.mrf.mxu1 }
 0x487   :  { %v2782_v49 = vadd.f32 %v7082_v31, %v2632_v63  ;;  %v2634_v51 = vadd.f32 %v2633_v46, %v7037_v52  ;;  %3184 = vmatprep.mubr.bf16.mxu0 %v2901_v37  ;;  %v2845_v62 = vmax.f32 %v2781_v57, 0.0  ;;  %v5804_v52 = vld [vmem:[#allocation10 + $0xa4] ss:$8 sps:$4 sm:$0xff]   ;;  %v7140_v63 = vpop.f32.mrf.mxu0  ;;  %v5805_v37 = vld [vmem:[#allocation10 + $0x90] ss:$8 sps:$4 sm:$0xff]  }
 0x488   :  { %v2637_v29 = vpop.f32.mrf.mxu1  ;;  %3185 = vmatmul.mubr.bf16.gmra.mxu0 %v2900_v6  ;;  %3650 = vmatpush2.bf16.msra.mxu1 %v5799_v10 }
 0x489   :  { %v2783_v4 = vadd.f32 %v7078_v25, %v2634_v51  ;;  %v2846_v3 = vmax.f32 %v2782_v49, 0.0  ;;  %v2638_v40 = vadd.f32 %v2637_v29, %v7039_v0  ;;  %3651 = vmatprep.subr.bf16.mxu1 %v5804_v52 }
 0x48a   :  { %v2639_v35 = vpop.f32.mrf.mxu1 }
 0x48b   :  { %v2847_v19 = vmax.f32 %v2783_v4, 0.0  ;;  %v2640_v21 = vadd.f32 %v2639_v35, %v7041_v16  ;;  %v2902_v41 = vpack.c.bf16 %v2846_v3, %v2844_v38  ;;  %v2784_v0 = vadd.f32 %v7082_v31, %v2638_v40  ;;  %v7145_v4 = vpop.f32.mrf.mxu0 }
 0x48c   :  { %v2641_v1 = vpop.f32.mrf.mxu1  ;;  %3652 = vmatpush2.bf16.msra.mxu1 %v5802_v59 }
 0x48d   :  { %v2642_v22 = vadd.f32 %v2641_v1, %v7043_v13  ;;  %v2903_v23 = vpack.c.bf16 %v2847_v19, %v2845_v62  ;;  %v2785_v36 = vadd.f32 %v7078_v25, %v2640_v21  ;;  %3653 = vmatprep.subr.bf16.mxu1 %v5807_v56  ;;  %v7152_v21 = vpop.f32.mrf.mxu0 }
 0x48e   :  { %v2643_v27 = vpop.f32.mrf.mxu1 }
 0x48f   :  { %v2786_v33 = vadd.f32 %v7082_v31, %v2642_v22  ;;  %v2644_v16 = vadd.f32 %v2643_v27, %v7045_v53  ;;  %3194 = vmatprep.mubr.bf16.mxu0 %v2903_v23  ;;  %v2849_v6 = vmax.f32 %v2785_v36, 0.0  ;;  %v2848_v53 = vmax.f32 %v2784_v0, 0.0  ;;  %v7157_v36 = vpop.f32.mrf.mxu0 }
 0x490   :  { %v2647_v30 = vpop.f32.mrf.mxu1  ;;  %3195 = vmatmul.mubr.bf16.gmra.mxu0 %v2902_v41  ;;  %3654 = vmatpush2.bf16.msra.mxu1 %v5805_v37 }
 0x491   :  { %v2787_v13 = vadd.f32 %v7078_v25, %v2644_v16  ;;  %v2850_v54 = vmax.f32 %v2786_v33, 0.0  ;;  %v2648_v57 = vadd.f32 %v2647_v30, %v7047_v20 }
 0x492   :  { %v2649_v50 = vpop.f32.mrf.mxu1 }
 0x493   :  { %v2851_v46 = vmax.f32 %v2787_v13, 0.0  ;;  %v2650_v47 = vadd.f32 %v2649_v50, %v7049_v55  ;;  %v2904_v2 = vpack.c.bf16 %v2850_v54, %v2848_v53  ;;  %v2788_v55 = vadd.f32 %v7082_v31, %v2648_v57  ;;  %v7164_v13 = vpop.f32.mrf.mxu0 }
 0x494   :  { %v2651_v49 = vpop.f32.mrf.mxu1 }
 0x495   :  { %v2652_v51 = vadd.f32 %v2651_v49, %v7051_v44  ;;  %v2905_v18 = vpack.c.bf16 %v2851_v46, %v2849_v6  ;;  %v2789_v3 = vadd.f32 %v7078_v25, %v2650_v47  ;;  %v2852_v1 = vmax.f32 %v2788_v55, 0.0 }
 0x496   :  { %v2653_v29 = vpop.f32.mrf.mxu1 }
 0x497   :  { %v2790_v35 = vadd.f32 %v7082_v31, %v2652_v51  ;;  %v2654_v10 = vadd.f32 %v2653_v29, %v7053_v26  ;;  %3204 = vmatprep.mubr.bf16.mxu0 %v2905_v18  ;;  %v2853_v52 = vmax.f32 %v2789_v3, 0.0  ;;  %v7169_v51 = vpop.f32.mrf.mxu0 }
 0x498   :  { %v2657_v62 = vpop.f32.mrf.mxu1  ;;  %3205 = vmatmul.mubr.bf16.gmra.mxu0 %v2904_v2 }
 0x499   :  { %v2791_v20 = vadd.f32 %v7078_v25, %v2654_v10  ;;  %v2854_v44 = vmax.f32 %v2790_v35, 0.0  ;;  %v2658_v22 = vadd.f32 %v2657_v62, %v7055_v58  ;;  %v7176_v10 = vpop.f32.mrf.mxu0 }
 0x49a   :  { %v2659_v19 = vpop.f32.mrf.mxu1 }
 0x49b   :  { %v2855_v38 = vmax.f32 %v2791_v20, 0.0  ;;  %v2660_v40 = vadd.f32 %v2659_v19, %v7057_v60  ;;  %v2906_v27 = vpack.c.bf16 %v2854_v44, %v2852_v1  ;;  %v2792_v60 = vadd.f32 %v7082_v31, %v2658_v22  ;;  %v7181_v22 = vpop.f32.mrf.mxu0 }
 0x49c   :  { %v2661_v23 = vpop.f32.mrf.mxu1 }
 0x49d   :  { %v2662_v26 = vadd.f32 %v2661_v23, %v7059_v61  ;;  %v2907_v41 = vpack.c.bf16 %v2855_v38, %v2853_v52  ;;  %v2793_v33 = vadd.f32 %v7078_v25, %v2660_v40  ;;  %v2856_v6 = vmax.f32 %v2792_v60, 0.0 }
 0x49e   :  { %v2663_v59 = vpop.f32.mrf.mxu1 }
 0x49f   :  { %v2794_v16 = vadd.f32 %v7082_v31, %v2662_v26  ;;  %v2664_v56 = vadd.f32 %v2663_v59, %v7061_v5  ;;  %3214 = vmatprep.mubr.bf16.mxu0 %v2907_v41  ;;  %v2857_v54 = vmax.f32 %v2793_v33, 0.0  ;;  %v7188_v33 = vpop.f32.mrf.mxu0 }
 0x4a0   :  { %v2667_v0 = vpop.f32.mrf.mxu1  ;;  %3215 = vmatmul.mubr.bf16.gmra.mxu0 %v2906_v27 }
 0x4a1   :  { %v2795_v58 = vadd.f32 %v7078_v25, %v2664_v56  ;;  %v2858_v30 = vmax.f32 %v2794_v16, 0.0  ;;  %v2668_v46 = vadd.f32 %v2667_v0, %v7063_v15 }
 0x4a2   :  { %v2669_v61 = vpop.f32.mrf.mxu1 }
 0x4a3   :  { %v2859_v50 = vmax.f32 %v2795_v58, 0.0  ;;  %v2670_v37 = vadd.f32 %v2669_v61, %v7065_v11  ;;  %v2908_v57 = vpack.c.bf16 %v2858_v30, %v2856_v6  ;;  %v2796_v11 = vadd.f32 %v7082_v31, %v2668_v46 }
 0x4a4   :  { %v2671_v47 = vpop.f32.mrf.mxu1 }
 0x4a5   :  { %v2672_v5 = vadd.f32 %v2671_v47, %v7067_v14  ;;  %v2909_v53 = vpack.c.bf16 %v2859_v50, %v2857_v54  ;;  %v2797_v18 = vadd.f32 %v7078_v25, %v2670_v37  ;;  %v2860_v44 = vmax.f32 %v2796_v11, 0.0  ;;  %v7193_v37 = vpop.f32.mrf.mxu0 }
 0x4a6   :  { %v2673_v49 = vpop.f32.mrf.mxu1 }
 0x4a7   :  { %v2798_v2 = vadd.f32 %v7082_v31, %v2672_v5  ;;  %v2674_v29 = vadd.f32 %v2673_v49, %v7069_v48  ;;  %3224 = vmatprep.mubr.bf16.mxu0 %v2909_v53  ;;  %v2861_v55 = vmax.f32 %v2797_v18, 0.0 }
 0x4a8   :  { %v2677_v3 = vpop.f32.mrf.mxu1  ;;  %3225 = vmatmul.mubr.bf16.gmra.mxu0 %v2908_v57  ;;  %v7200_v57 = vpop.f32.mrf.mxu0 }
 0x4a9   :  { %v2799_v15 = vadd.f32 %v7078_v25, %v2674_v29  ;;  %v2862_v35 = vmax.f32 %v2798_v2, 0.0  ;;  %v2678_v19 = vadd.f32 %v2677_v3, %v7074_v24 }
 0x4aa   :  { %v2679_v14 = vpop.f32.mrf.mxu1 }
 0x4ab   :  { %v2863_v62 = vmax.f32 %v2799_v15, 0.0  ;;  %v2680_v20 = vadd.f32 %v2679_v14, %v7085_v34  ;;  %v2910_v40 = vpack.c.bf16 %v2862_v35, %v2860_v44  ;;  %v2800_v34 = vadd.f32 %v7082_v31, %v2678_v19 }
 0x4ac   :  { %v2681_v52 = vpop.f32.mrf.mxu1 }
 0x4ad   :  { %v2682_v48 = vadd.f32 %v2681_v52, %v7092_v39  ;;  %v2911_v38 = vpack.c.bf16 %v2863_v62, %v2861_v55  ;;  %v2801_v23 = vadd.f32 %v7078_v25, %v2680_v20  ;;  %v2864_v0 = vmax.f32 %v2800_v34, 0.0  ;;  %v2376_v55 = vpop.f32.mrf.mxu0  ;;  %v5810_v52 = vld [vmem:[#allocation10 + $0x84] ss:$8 sps:$4 sm:$0xff]  }
 0x4ae   :  { %v2683_v1 = vpop.f32.mrf.mxu1  ;;  %3655 = vmatprep.subr.bf16.mxu1 %v5810_v52 }
 0x4af   :  { %v2802_v26 = vadd.f32 %v7082_v31, %v2682_v48  ;;  %v2684_v41 = vadd.f32 %v2683_v1, %v7097_v28  ;;  %3234 = vmatprep.mubr.bf16.mxu0 %v2911_v38  ;;  %v2865_v16 = vmax.f32 %v2801_v23, 0.0  ;;  %v5808_v48 = vld [vmem:[#allocation10 + $0x80] ss:$8 sps:$4 sm:$0xff]  }
 0x4b0   :  { %v2687_v27 = vpop.f32.mrf.mxu1  ;;  %3235 = vmatmul.mubr.bf16.gmra.mxu0 %v2910_v40  ;;  %v2378_v40 = vpop.f32.mrf.mxu0  ;;  %3656 = vmatpush2.bf16.msra.mxu1 %v5808_v48 }
 0x4b1   :  { %v2803_v24 = vadd.f32 %v7078_v25, %v2684_v41  ;;  %v2866_v59 = vmax.f32 %v2802_v26, 0.0  ;;  %v2688_v58 = vadd.f32 %v2687_v27, %v7104_v42 }
 0x4b2   :  { %v2689_v39 = vpop.f32.mrf.mxu1 }
 0x4b3   :  { %v2867_v56 = vmax.f32 %v2803_v24, 0.0  ;;  %v2690_v60 = vadd.f32 %v2689_v39, %v7109_v17  ;;  %v2912_v54 = vpack.c.bf16 %v2866_v59, %v2864_v0  ;;  %v2804_v17 = vadd.f32 %v7082_v31, %v2688_v58 }
 0x4b4   :  { %v2691_v30 = vpop.f32.mrf.mxu1 }
 0x4b5   :  { %v2692_v28 = vadd.f32 %v2691_v30, %v7116_v45  ;;  %v2913_v61 = vpack.c.bf16 %v2867_v56, %v2865_v16  ;;  %v2805_v6 = vadd.f32 %v7078_v25, %v2690_v60  ;;  %v2868_v29 = vmax.f32 %v2804_v17, 0.0  ;;  %v2380_v16 = vpop.f32.mrf.mxu0 }
 0x4b6   :  { %v2693_v50 = vpop.f32.mrf.mxu1 }
 0x4b7   :  { %v2806_v46 = vadd.f32 %v7082_v31, %v2692_v28  ;;  %v2694_v47 = vadd.f32 %v2693_v50, %v7121_v43  ;;  %3244 = vmatprep.mubr.bf16.mxu0 %v2913_v61  ;;  %v2869_v49 = vmax.f32 %v2805_v6, 0.0 }
 0x4b8   :  { %v2697_v5 = vpop.f32.mrf.mxu1  ;;  %3245 = vmatmul.mubr.bf16.gmra.mxu0 %v2912_v54 }
 0x4b9   :  { %v2807_v42 = vadd.f32 %v7078_v25, %v2694_v47  ;;  %v2870_v53 = vmax.f32 %v2806_v46, 0.0  ;;  %v2698_v11 = vadd.f32 %v2697_v5, %v7128_v8 }
 0x4ba   :  { %v2699_v45 = vpop.f32.mrf.mxu1 }
 0x4bb   :  { %v2871_v18 = vmax.f32 %v2807_v42, 0.0  ;;  %v2700_v2 = vadd.f32 %v2699_v45, %v7133_v32  ;;  %v2914_v35 = vpack.c.bf16 %v2870_v53, %v2868_v29  ;;  %v2808_v19 = vadd.f32 %v7082_v31, %v2698_v11 }
 0x4bc   :  { %v2701_v3 = vpop.f32.mrf.mxu1 }
 0x4bd   :  { %v2702_v43 = vadd.f32 %v2701_v3, %v7140_v63  ;;  %v2915_v15 = vpack.c.bf16 %v2871_v18, %v2869_v49  ;;  %v2809_v62 = vadd.f32 %v7078_v25, %v2700_v2  ;;  %v2872_v41 = vmax.f32 %v2808_v19, 0.0 }
 0x4be   :  { %v2703_v14 = vpop.f32.mrf.mxu1 }
 0x4bf   :  { %v2810_v20 = vadd.f32 %v7082_v31, %v2702_v43  ;;  %v2704_v44 = vadd.f32 %v2703_v14, %v7145_v4  ;;  %3254 = vmatprep.mubr.bf16.mxu0 %v2915_v15  ;;  %v2873_v1 = vmax.f32 %v2809_v62, 0.0 }
 0x4c0   :  { %v2707_v32 = vpop.f32.mrf.mxu1  ;;  %3255 = vmatmul.mubr.bf16.gmra.mxu0 %v2914_v35 }
 0x4c1   :  { %v2811_v8 = vadd.f32 %v7078_v25, %v2704_v44  ;;  %v2874_v63 = vmax.f32 %v2810_v20, 0.0  ;;  %v2708_v4 = vadd.f32 %v2707_v32, %v7152_v21 }
 0x4c2   :  { %v2709_v38 = vpop.f32.mrf.mxu1 }
 0x4c3   :  { %v2875_v23 = vmax.f32 %v2811_v8, 0.0  ;;  %v2710_v26 = vadd.f32 %v2709_v38, %v7157_v36  ;;  %v2916_v59 = vpack.c.bf16 %v2874_v63, %v2872_v41  ;;  %v2812_v36 = vadd.f32 %v7082_v31, %v2708_v4 }
 0x4c4   :  { %v2711_v34 = vpop.f32.mrf.mxu1 }
 0x4c5   :  { %v2712_v27 = vadd.f32 %v2711_v34, %v7164_v13  ;;  %v2917_v24 = vpack.c.bf16 %v2875_v23, %v2873_v1  ;;  %v2813_v56 = vadd.f32 %v7078_v25, %v2710_v26  ;;  %v2384_v13 = vpop.f32.mrf.mxu0  ;;  %v2876_v6 = vmax.f32 %v2812_v36, 0.0 }
 0x4c6   :  { %v2713_v39 = vpop.f32.mrf.mxu1 }
 0x4c7   :  { %v2814_v60 = vadd.f32 %v7082_v31, %v2712_v27  ;;  %v2714_v0 = vadd.f32 %v2713_v39, %v7169_v51  ;;  %3264 = vmatprep.mubr.bf16.mxu0 %v2917_v24  ;;  %v2877_v61 = vmax.f32 %v2813_v56, 0.0  ;;  %v2386_v53 = vpop.f32.mrf.mxu0 }
 0x4c8   :  { %v2717_v58 = vpop.f32.mrf.mxu1  ;;  %3265 = vmatmul.mubr.bf16.gmra.mxu0 %v2916_v59 }
 0x4c9   :  { %v2815_v21 = vadd.f32 %v7078_v25, %v2714_v0  ;;  %v2878_v30 = vmax.f32 %v2814_v60, 0.0  ;;  %v2718_v46 = vadd.f32 %v2717_v58, %v7176_v10 }
 0x4ca   :  { %v2719_v28 = vpop.f32.mrf.mxu1 }
 0x4cb   :  { %v2879_v54 = vmax.f32 %v2815_v21, 0.0  ;;  %v2720_v50 = vadd.f32 %v2719_v28, %v7181_v22  ;;  %v2918_v5 = vpack.c.bf16 %v2878_v30, %v2876_v6  ;;  %v2816_v2 = vadd.f32 %v7082_v31, %v2718_v46 }
 0x4cc   :  { %v2721_v47 = vpop.f32.mrf.mxu1 }
 0x4cd   :  { %v2722_v51 = vadd.f32 %v2721_v47, %v7188_v33  ;;  %v2919_v17 = vpack.c.bf16 %v2879_v54, %v2877_v61  ;;  %v2817_v45 = vadd.f32 %v7078_v25, %v2720_v50  ;;  %v2388_v33 = vpop.f32.mrf.mxu0  ;;  %v2880_v35 = vmax.f32 %v2816_v2, 0.0 }
 0x4ce   :  { %v2723_v42 = vpop.f32.mrf.mxu1 }
 0x4cf   :  { %v2818_v49 = vadd.f32 %v7082_v31, %v2722_v51  ;;  %v2724_v18 = vadd.f32 %v2723_v42, %v7193_v37  ;;  %3274 = vmatprep.mubr.bf16.mxu0 %v2919_v17  ;;  %v2881_v3 = vmax.f32 %v2817_v45, 0.0  ;;  %v2390_v32 = vpop.f32.mrf.mxu0 }
 0x4d0   :  { %v2727_v22 = vpop.f32.mrf.mxu1  ;;  %3275 = vmatmul.mubr.bf16.gmra.mxu0 %v2918_v5 }
 0x4d1   :  { %v2819_v10 = vadd.f32 %v7078_v25, %v2724_v18  ;;  %v2882_v29 = vmax.f32 %v2818_v49, 0.0  ;;  %v2728_v14 = vadd.f32 %v2727_v22, %v7200_v57  ;;  %v2394_v57 = vpop.f32.mrf.mxu0 }
 0x4d2   :  { %v2729_v11 = vpop.f32.mrf.mxu1 }
 0x4d3   :  { %v2883_v43 = vmax.f32 %v2819_v10, 0.0  ;;  %v2730_v15 = vadd.f32 %v2729_v11, %v2376_v55  ;;  %v2920_v37 = vpack.c.bf16 %v2882_v29, %v2880_v35  ;;  %v2820_v63 = vadd.f32 %v7082_v31, %v2728_v14  ;;  %v5811_v35 = vld [vmem:[#allocation12 + $0x70] ss:$8 sps:$4 sm:$0xff]   ;;  %v5813_v14 = vld [vmem:[#allocation12 + $0x74] ss:$8 sps:$4 sm:$0xff]  }
 0x4d4   :  { %v2731_v62 = vpop.f32.mrf.mxu1  ;;  %4118 = vmatprep.subr.bf16.mxu0 %v5813_v14 }
 0x4d5   :  { %v2732_v20 = vadd.f32 %v2731_v62, %v2378_v40  ;;  %v2921_v44 = vpack.c.bf16 %v2883_v43, %v2881_v3  ;;  %v2821_v52 = vadd.f32 %v7078_v25, %v2730_v15  ;;  %v2884_v4 = vmax.f32 %v2820_v63, 0.0  ;;  %4119 = vmatpush1.bf16.msra.mxu0 %v5811_v35  ;;  %v5814_v62 = vld [vmem:[#allocation12 + $0x60] ss:$8 sps:$4 sm:$0xff]   ;;  %v5846_v35 = vld [vmem:[#allocation12 + $0xc4] ss:$8 sps:$4 sm:$0xff]  }
 0x4d6   :  { %v2733_v19 = vpop.f32.mrf.mxu1 }
 0x4d7   :  { %v2822_v8 = vadd.f32 %v7082_v31, %v2732_v20  ;;  %v2734_v48 = vadd.f32 %v2733_v19, %v2380_v16  ;;  %3284 = vmatprep.mubr.bf16.mxu0 %v2921_v44  ;;  %v2885_v40 = vmax.f32 %v2821_v52, 0.0  ;;  %v2396_v16 = vpop.f32.mrf.mxu0  ;;  %v5816_v20 = vld [vmem:[#allocation12 + $0x64] ss:$8 sps:$4 sm:$0xff]   ;;  %v5819_v44 = vld [vmem:[#allocation12 + $0x54] ss:$8 sps:$4 sm:$0xff]  }
 0x4d8   :  { %v2737_v38 = vpop.f32.mrf.mxu1  ;;  %3285 = vmatmul.mubr.bf16.gmra.mxu0 %v2920_v37  ;;  %4120 = vmatprep.subr.bf16.mxu0 %v5816_v20  ;;  %v5822_v37 = vld [vmem:[#allocation12 + $0x44] ss:$8 sps:$4 sm:$0xff]   ;;  %v5823_v19 = vld [vmem:[#allocation12 + $0x30] ss:$8 sps:$4 sm:$0xff]  }
 0x4d9   :  { %v2823_v55 = vadd.f32 %v7078_v25, %v2734_v48  ;;  %v2886_v1 = vmax.f32 %v2822_v8, 0.0  ;;  %v2738_v34 = vadd.f32 %v2737_v38, %v2384_v13  ;;  %v2398_v13 = vpop.f32.mrf.mxu0  ;;  %4121 = vmatpush1.bf16.msra.mxu0 %v5814_v62  ;;  %v2960_v52 = vld [vmem:[%s7876_s13] sm:$0x3] }
 0x4da   :  { %v2739_v23 = vpop.f32.mrf.mxu1  ;;  %4122 = vmatprep.subr.bf16.mxu0 %v5819_v44  ;;  %v7243_v48 = vrot.slane %v2960_v52, %v6521_v9  ;;  %v7246_v63 = vrot.slane %v2960_v52, %v6523_v12 }
 0x4db   :  { %v2887_v26 = vmax.f32 %v2823_v55, 0.0  ;;  %v2740_v41 = vadd.f32 %v2739_v23, %v2386_v53  ;;  %v2922_v39 = vpack.c.bf16 %v2886_v1, %v2884_v4  ;;  %v2824_v58 = vadd.f32 %v7082_v31, %v2738_v34  ;;  %v2400_v53 = vpop.f32.mrf.mxu0  ;;  %v5826_v55 = vld [vmem:[#allocation12 + $0x20] ss:$8 sps:$4 sm:$0xff]   ;;  %v5828_v1 = vld [vmem:[#allocation12 + $0x24] ss:$8 sps:$4 sm:$0xff]  }
 0x4dc   :  { %v2741_v27 = vpop.f32.mrf.mxu1  ;;  %v5829_v4 = vld [vmem:[#allocation12 + $0x10] ss:$8 sps:$4 sm:$0xff]   ;;  %v5831_v34 = vld [vmem:[#allocation12 + $0x14] ss:$8 sps:$4 sm:$0xff]  }
 0x4dd   :  { %v2742_v24 = vadd.f32 %v2741_v27, %v2388_v33  ;;  %v2923_v59 = vpack.c.bf16 %v2887_v26, %v2885_v40  ;;  %v2825_v60 = vadd.f32 %v7078_v25, %v2740_v41  ;;  %v2888_v46 = vmax.f32 %v2824_v58, 0.0 }
 0x4de   :  { %v2743_v56 = vpop.f32.mrf.mxu1 }
 0x4df   :  { %v2826_v0 = vadd.f32 %v7082_v31, %v2742_v24  ;;  %v2744_v36 = vadd.f32 %v2743_v56, %v2390_v32  ;;  %3294 = vmatprep.mubr.bf16.mxu0 %v2923_v59  ;;  %v2889_v54 = vmax.f32 %v2825_v60, 0.0  ;;  %v5825_v32 = vld [vmem:[#allocation12 + $0x34] ss:$8 sps:$4 sm:$0xff]   ;;  %v5834_v24 = vld [vmem:[#allocation12 + $0x4] ss:$8 sps:$4 sm:$0xff]  }
 0x4e0   :  { %v2747_v21 = vpop.f32.mrf.mxu1  ;;  %3295 = vmatmul.mubr.bf16.gmra.mxu0 %v2922_v39 }
 0x4e1   :  { %v2827_v30 = vadd.f32 %v7078_v25, %v2744_v36  ;;  %v2890_v28 = vmax.f32 %v2826_v0, 0.0  ;;  %v2748_v47 = vadd.f32 %v2747_v21, %v2394_v57  ;;  %v5832_v36 = vld [vmem:[#allocation12] ss:$8 sps:$4 sm:$0xff]   ;;  %v5837_v21 = vld [vmem:[#allocation12 + $0xf4] ss:$8 sps:$4 sm:$0xff]  }
 0x4e2   :  { %v2749_v61 = vpop.f32.mrf.mxu1 }
 0x4e3   :  { %v2891_v50 = vmax.f32 %v2827_v30, 0.0  ;;  %v2750_v6 = vadd.f32 %v2749_v61, %v2396_v16  ;;  %v2924_v42 = vpack.c.bf16 %v2890_v28, %v2888_v46  ;;  %v2828_v22 = vadd.f32 %v7082_v31, %v2748_v47  ;;  %v5840_v47 = vld [vmem:[#allocation12 + $0xe4] ss:$8 sps:$4 sm:$0xff]  }
 0x4e4   :  { %v2751_v51 = vpop.f32.mrf.mxu1 }
 0x4e5   :  { %v2752_v17 = vadd.f32 %v2751_v51, %v2398_v13  ;;  %v2925_v5 = vpack.c.bf16 %v2891_v50, %v2889_v54  ;;  %v2829_v49 = vadd.f32 %v7078_v25, %v2750_v6  ;;  %v2892_v3 = vmax.f32 %v2828_v22, 0.0  ;;  %v5835_v6 = vld [vmem:[#allocation12 + $0xf0] ss:$8 sps:$4 sm:$0xff]  }
 0x4e6   :  { %v2753_v45 = vpop.f32.mrf.mxu1 }
 0x4e7   :  { %v2830_v18 = vadd.f32 %v7082_v31, %v2752_v17  ;;  %v2754_v2 = vadd.f32 %v2753_v45, %v2400_v53  ;;  %3304 = vmatprep.mubr.bf16.mxu0 %v2925_v5  ;;  %v2893_v11 = vmax.f32 %v2829_v49, 0.0  ;;  %v5817_v31 = vld [vmem:[#allocation12 + $0x50] ss:$8 sps:$4 sm:$0xff]   ;;  %v5838_v49 = vld [vmem:[#allocation12 + $0xe0] ss:$8 sps:$4 sm:$0xff]  }
 0x4e8   :  { %3305 = vmatmul.mubr.bf16.gmra.mxu0 %v2924_v42 }
 0x4e9   :  { %v2831_v10 = vadd.f32 %v7078_v25, %v2754_v2  ;;  %v2894_v29 = vmax.f32 %v2830_v18, 0.0  ;;  %4123 = vmatpush1.bf16.msra.mxu0 %v5817_v31  ;;  %v5820_v25 = vld [vmem:[#allocation12 + $0x40] ss:$8 sps:$4 sm:$0xff]   ;;  %v5843_v2 = vld [vmem:[#allocation12 + $0xd4] ss:$8 sps:$4 sm:$0xff]  }
 0x4ea   :  { %4124 = vmatprep.subr.bf16.mxu0 %v5822_v37  ;;  %v5844_v37 = vld [vmem:[#allocation12 + $0xc0] ss:$8 sps:$4 sm:$0xff]  }
 0x4eb   :  { %v2895_v33 = vmax.f32 %v2831_v10, 0.0  ;;  %v2926_v15 = vpack.c.bf16 %v2894_v29, %v2892_v3 }
 0x4ed   :  { %v2927_v43 = vpack.c.bf16 %v2895_v33, %v2893_v11  ;;  %4125 = vmatpush1.bf16.msra.mxu0 %v5820_v25 }
 0x4ee   :  { %4126 = vmatprep.subr.bf16.mxu0 %v5825_v32  ;;  %v5849_v32 = vld [vmem:[#allocation12 + $0xb4] ss:$8 sps:$4 sm:$0xff]  }
 0x4ef   :  { %3314 = vmatprep.mubr.bf16.mxu0 %v2927_v43  ;;  %v5841_v43 = vld [vmem:[#allocation12 + $0xd0] ss:$8 sps:$4 sm:$0xff]  }
 0x4f0   :  { %3315 = vmatmul.mubr.bf16.gmra.mxu0 %v2926_v15 }
 0x4f1   :  { %4127 = vmatpush1.bf16.msra.mxu0 %v5823_v19 }
 0x4f2   :  { %4128 = vmatprep.subr.bf16.mxu0 %v5828_v1 }
 0x4f5   :  { %4129 = vmatpush1.bf16.msra.mxu0 %v5826_v55 }
 0x4f6   :  { %4130 = vmatprep.subr.bf16.mxu0 %v5831_v34 }
 0x4f9   :  { %4131 = vmatpush1.bf16.msra.mxu0 %v5829_v4 }
 0x4fa   :  { %4132 = vmatprep.subr.bf16.mxu0 %v5834_v24 }
 0x4fd   :  { %4133 = vmatpush1.bf16.msra.mxu0 %v5832_v36 }
 0x4fe   :  { %4134 = vmatprep.subr.bf16.mxu0 %v5837_v21 }
 0x501   :  { %4135 = vmatpush2.bf16.msra.mxu0 %v5835_v6 }
 0x502   :  { %4136 = vmatprep.subr.bf16.mxu0 %v5840_v47 }
 0x505   :  { %4137 = vmatpush2.bf16.msra.mxu0 %v5838_v49 }
 0x506   :  { %4138 = vmatprep.subr.bf16.mxu0 %v5843_v2 }
 0x509   :  { %4139 = vmatpush2.bf16.msra.mxu0 %v5841_v43 }
 0x50a   :  { %4140 = vmatprep.subr.bf16.mxu0 %v5846_v35 }
 0x50d   :  { %4141 = vmatpush2.bf16.msra.mxu0 %v5844_v37 }
 0x50e   :  { %4142 = vmatprep.subr.bf16.mxu0 %v5849_v32 }
 0x538   :  { %v3166_v8 = vpop.f32.mrf.mxu0 }
 0x539   :  { %v3167_v26 = vadd.f32 %v3166_v8, %v7246_v63 }
 0x53a   :  { %v3168_v38 = vpop.f32.mrf.mxu0 }
 0x53b   :  { %v3169_v23 = vadd.f32 %v3168_v38, %v7243_v48  ;;  %v3325_v60 = vmax.f32 %v3167_v26, 0.0  ;;  %v5852_v26 = vld [vmem:[#allocation12 + $0xa4] ss:$8 sps:$4 sm:$0xff]  }
 0x53c   :  { %v3170_v57 = vpop.f32.mrf.mxu0 }
 0x53d   :  { %v3171_v40 = vadd.f32 %v3170_v57, %v7246_v63  ;;  %v3326_v16 = vmax.f32 %v3169_v23, 0.0  ;;  %v5847_v23 = vld [vmem:[#allocation12 + $0xb0] ss:$8 sps:$4 sm:$0xff]  }
 0x53e   :  { %v3172_v41 = vpop.f32.mrf.mxu0  ;;  %4143 = vmatpush2.bf16.msra.mxu0 %v5847_v23 }
 0x53f   :  { %v3173_v27 = vadd.f32 %v3172_v41, %v7243_v48  ;;  %v3327_v59 = vmax.f32 %v3171_v40, 0.0  ;;  %4144 = vmatprep.subr.bf16.mxu0 %v5852_v26 }
 0x540   :  { %v3176_v39 = vpop.f32.mrf.mxu0 }
 0x541   :  { %v3328_v56 = vmax.f32 %v3173_v27, 0.0  ;;  %v3389_v30 = vpack.c.bf16 %v3327_v59, %v3325_v60  ;;  %v3177_v54 = vadd.f32 %v3176_v39, %v7246_v63  ;;  %v5850_v39 = vld [vmem:[#allocation12 + $0xa0] ss:$8 sps:$4 sm:$0xff]  }
 0x542   :  { %v3178_v0 = vpop.f32.mrf.mxu0  ;;  %4145 = vmatpush2.bf16.msra.mxu0 %v5850_v39 }
 0x543   :  { %v3390_v58 = vpack.c.bf16 %v3328_v56, %v3326_v16  ;;  %v3179_v13 = vadd.f32 %v3178_v0, %v7243_v48  ;;  %v3329_v53 = vmax.f32 %v3177_v54, 0.0  ;;  %v5855_v56 = vld [vmem:[#allocation12 + $0x94] ss:$8 sps:$4 sm:$0xff]  }
 0x544   :  { %v3180_v28 = vpop.f32.mrf.mxu0  ;;  %4146 = vmatprep.subr.bf16.mxu0 %v5855_v56 }
 0x545   :  { %v3181_v61 = vadd.f32 %v3180_v28, %v7246_v63  ;;  %3657 = vmatprep.mubr.bf16.mxu1 %v3390_v58  ;;  %v3330_v5 = vmax.f32 %v3179_v13, 0.0  ;;  %v5853_v28 = vld [vmem:[#allocation12 + $0x90] ss:$8 sps:$4 sm:$0xff]  }
 0x546   :  { %v3182_v50 = vpop.f32.mrf.mxu0  ;;  %3658 = vmatmul.mubr.bf16.vlgmr.msra.gmra.mxu1 %v3389_v30  ;;  %4147 = vmatpush2.bf16.msra.mxu0 %v5853_v28 }
 0x547   :  { %v3183_v46 = vadd.f32 %v3182_v50, %v7243_v48  ;;  %v3331_v51 = vmax.f32 %v3181_v61, 0.0 }
 0x548   :  { %v3186_v17 = vpop.f32.mrf.mxu0 }
 0x549   :  { %v3332_v42 = vmax.f32 %v3183_v46, 0.0  ;;  %v3391_v22 = vpack.c.bf16 %v3331_v51, %v3329_v53  ;;  %v3187_v33 = vadd.f32 %v3186_v17, %v7246_v63 }
 0x54a   :  { %v3188_v45 = vpop.f32.mrf.mxu0 }
 0x54b   :  { %v3392_v18 = vpack.c.bf16 %v3332_v42, %v3330_v5  ;;  %v3189_v29 = vadd.f32 %v3188_v45, %v7243_v48  ;;  %v3333_v44 = vmax.f32 %v3187_v33, 0.0 }
 0x54c   :  { %v3190_v10 = vpop.f32.mrf.mxu0 }
 0x54d   :  { %v3191_v11 = vadd.f32 %v3190_v10, %v7246_v63  ;;  %3667 = vmatprep.mubr.bf16.mxu1 %v3392_v18  ;;  %v3334_v20 = vmax.f32 %v3189_v29, 0.0 }
 0x54e   :  { %v3192_v3 = vpop.f32.mrf.mxu0  ;;  %3668 = vmatmul.mubr.bf16.gmra.mxu1 %v3391_v22 }
 0x54f   :  { %v3193_v15 = vadd.f32 %v3192_v3, %v7243_v48  ;;  %v3335_v14 = vmax.f32 %v3191_v11, 0.0 }
 0x550   :  { %v3196_v62 = vpop.f32.mrf.mxu0 }
 0x551   :  { %v3336_v31 = vmax.f32 %v3193_v15, 0.0  ;;  %v3393_v52 = vpack.c.bf16 %v3335_v14, %v3333_v44  ;;  %v3197_v1 = vadd.f32 %v3196_v62, %v7246_v63 }
 0x552   :  { %v3198_v25 = vpop.f32.mrf.mxu0 }
 0x553   :  { %v3394_v19 = vpack.c.bf16 %v3336_v31, %v3334_v20  ;;  %v3199_v38 = vadd.f32 %v3198_v25, %v7243_v48  ;;  %v3337_v24 = vmax.f32 %v3197_v1, 0.0 }
 0x554   :  { %v3200_v8 = vpop.f32.mrf.mxu0 }
 0x555   :  { %v3201_v55 = vadd.f32 %v3200_v8, %v7246_v63  ;;  %3677 = vmatprep.mubr.bf16.mxu1 %v3394_v19  ;;  %v3338_v34 = vmax.f32 %v3199_v38, 0.0 }
 0x556   :  { %v3202_v57 = vpop.f32.mrf.mxu0  ;;  %3678 = vmatmul.mubr.bf16.gmra.mxu1 %v3393_v52 }
 0x557   :  { %v3203_v40 = vadd.f32 %v3202_v57, %v7243_v48  ;;  %v3339_v41 = vmax.f32 %v3201_v55, 0.0 }
 0x558   :  { %v3206_v4 = vpop.f32.mrf.mxu0 }
 0x559   :  { %v3340_v27 = vmax.f32 %v3203_v40, 0.0  ;;  %v3395_v60 = vpack.c.bf16 %v3339_v41, %v3337_v24  ;;  %v3207_v21 = vadd.f32 %v3206_v4, %v7246_v63 }
 0x55a   :  { %v3208_v59 = vpop.f32.mrf.mxu0 }
 0x55b   :  { %v3396_v16 = vpack.c.bf16 %v3340_v27, %v3338_v34  ;;  %v3209_v36 = vadd.f32 %v3208_v59, %v7243_v48  ;;  %v3341_v46 = vmax.f32 %v3207_v21, 0.0 }
 0x55c   :  { %v3210_v0 = vpop.f32.mrf.mxu0 }
 0x55d   :  { %v3211_v58 = vadd.f32 %v3210_v0, %v7246_v63  ;;  %3687 = vmatprep.mubr.bf16.mxu1 %v3396_v16  ;;  %v3342_v50 = vmax.f32 %v3209_v36, 0.0 }
 0x55e   :  { %v3212_v30 = vpop.f32.mrf.mxu0  ;;  %3688 = vmatmul.mubr.bf16.gmra.mxu1 %v3395_v60 }
 0x55f   :  { %v3213_v13 = vadd.f32 %v3212_v30, %v7243_v48  ;;  %v3343_v61 = vmax.f32 %v3211_v58, 0.0 }
 0x560   :  { %v3216_v54 = vpop.f32.mrf.mxu0 }
 0x561   :  { %v3344_v6 = vmax.f32 %v3213_v13, 0.0  ;;  %v3397_v17 = vpack.c.bf16 %v3343_v61, %v3341_v46  ;;  %v3217_v45 = vadd.f32 %v3216_v54, %v7246_v63 }
 0x562   :  { %v3218_v47 = vpop.f32.mrf.mxu0 }
 0x563   :  { %v3398_v51 = vpack.c.bf16 %v3344_v6, %v3342_v50  ;;  %v3219_v42 = vadd.f32 %v3218_v47, %v7243_v48  ;;  %v3345_v11 = vmax.f32 %v3217_v45, 0.0 }
 0x564   :  { %v3220_v5 = vpop.f32.mrf.mxu0 }
 0x565   :  { %v3221_v53 = vadd.f32 %v3220_v5, %v7246_v63  ;;  %3697 = vmatprep.mubr.bf16.mxu1 %v3398_v51  ;;  %v3346_v10 = vmax.f32 %v3219_v42, 0.0 }
 0x566   :  { %v3222_v49 = vpop.f32.mrf.mxu0  ;;  %3698 = vmatmul.mubr.bf16.gmra.mxu1 %v3397_v17 }
 0x567   :  { %v3223_v18 = vadd.f32 %v3222_v49, %v7243_v48  ;;  %v3347_v2 = vmax.f32 %v3221_v53, 0.0 }
 0x568   :  { %v3226_v22 = vpop.f32.mrf.mxu0 }
 0x569   :  { %v3348_v29 = vmax.f32 %v3223_v18, 0.0  ;;  %v3399_v43 = vpack.c.bf16 %v3347_v2, %v3345_v11  ;;  %v3227_v62 = vadd.f32 %v3226_v22, %v7246_v63 }
 0x56a   :  { %v3228_v33 = vpop.f32.mrf.mxu0 }
 0x56b   :  { %v3400_v3 = vpack.c.bf16 %v3348_v29, %v3346_v10  ;;  %v3229_v35 = vadd.f32 %v3228_v33, %v7243_v48  ;;  %v3349_v32 = vmax.f32 %v3227_v62, 0.0 }
 0x56c   :  { %v3230_v15 = vpop.f32.mrf.mxu0 }
 0x56d   :  { %v3231_v14 = vadd.f32 %v3230_v15, %v7246_v63  ;;  %3707 = vmatprep.mubr.bf16.mxu1 %v3400_v3  ;;  %v3350_v37 = vmax.f32 %v3229_v35, 0.0 }
 0x56e   :  { %v3232_v20 = vpop.f32.mrf.mxu0  ;;  %3708 = vmatmul.mubr.bf16.gmra.mxu1 %v3399_v43 }
 0x56f   :  { %v3233_v31 = vadd.f32 %v3232_v20, %v7243_v48  ;;  %v3351_v44 = vmax.f32 %v3231_v14, 0.0  ;;  %v5858_v14 = vld [vmem:[#allocation12 + $0x84] ss:$8 sps:$4 sm:$0xff]   ;;  %v5856_v20 = vld [vmem:[#allocation12 + $0x80] ss:$8 sps:$4 sm:$0xff]  }
 0x570   :  { %v3236_v25 = vpop.f32.mrf.mxu0  ;;  %4148 = vmatprep.subr.bf16.mxu0 %v5858_v14 }
 0x571   :  { %v3352_v19 = vmax.f32 %v3233_v31, 0.0  ;;  %v3401_v38 = vpack.c.bf16 %v3351_v44, %v3349_v32  ;;  %v3237_v23 = vadd.f32 %v3236_v25, %v7246_v63  ;;  %4149 = vmatpush2.bf16.msra.mxu0 %v5856_v20 }
 0x572   :  { %v3238_v52 = vpop.f32.mrf.mxu0 }
 0x573   :  { %v3402_v8 = vpack.c.bf16 %v3352_v19, %v3350_v37  ;;  %v3239_v1 = vadd.f32 %v3238_v52, %v7243_v48  ;;  %v3353_v24 = vmax.f32 %v3237_v23, 0.0 }
 0x574   :  { %v3240_v55 = vpop.f32.mrf.mxu0 }
 0x575   :  { %v3241_v57 = vadd.f32 %v3240_v55, %v7246_v63  ;;  %3717 = vmatprep.mubr.bf16.mxu1 %v3402_v8  ;;  %v3354_v34 = vmax.f32 %v3239_v1, 0.0 }
 0x576   :  { %v3242_v40 = vpop.f32.mrf.mxu0  ;;  %3718 = vmatmul.mubr.bf16.gmra.mxu1 %v3401_v38 }
 0x577   :  { %v3243_v26 = vadd.f32 %v3242_v40, %v7243_v48  ;;  %v3355_v41 = vmax.f32 %v3241_v57, 0.0 }
 0x578   :  { %v3246_v4 = vpop.f32.mrf.mxu0 }
 0x579   :  { %v3356_v27 = vmax.f32 %v3243_v26, 0.0  ;;  %v3403_v16 = vpack.c.bf16 %v3355_v41, %v3353_v24  ;;  %v3247_v36 = vadd.f32 %v3246_v4, %v7246_v63 }
 0x57a   :  { %v3248_v59 = vpop.f32.mrf.mxu0 }
 0x57b   :  { %v3404_v39 = vpack.c.bf16 %v3356_v27, %v3354_v34  ;;  %v3249_v60 = vadd.f32 %v3248_v59, %v7243_v48  ;;  %v3357_v54 = vmax.f32 %v3247_v36, 0.0 }
 0x57c   :  { %v3250_v56 = vpop.f32.mrf.mxu0 }
 0x57d   :  { %v3251_v0 = vadd.f32 %v3250_v56, %v7246_v63  ;;  %3727 = vmatprep.mubr.bf16.mxu1 %v3404_v39  ;;  %v3358_v13 = vmax.f32 %v3249_v60, 0.0 }
 0x57e   :  { %v3252_v58 = vpop.f32.mrf.mxu0  ;;  %3728 = vmatmul.mubr.bf16.gmra.mxu1 %v3403_v16 }
 0x57f   :  { %v3253_v21 = vadd.f32 %v3252_v58, %v7243_v48  ;;  %v3359_v30 = vmax.f32 %v3251_v0, 0.0 }
 0x580   :  { %v3256_v28 = vpop.f32.mrf.mxu0 }
 0x581   :  { %v3360_v61 = vmax.f32 %v3253_v21, 0.0  ;;  %v3405_v46 = vpack.c.bf16 %v3359_v30, %v3357_v54  ;;  %v3257_v5 = vadd.f32 %v3256_v28, %v7246_v63 }
 0x582   :  { %v3258_v50 = vpop.f32.mrf.mxu0 }
 0x583   :  { %v3406_v6 = vpack.c.bf16 %v3360_v61, %v3358_v13  ;;  %v3259_v51 = vadd.f32 %v3258_v50, %v7243_v48  ;;  %v3361_v22 = vmax.f32 %v3257_v5, 0.0 }
 0x584   :  { %v3260_v47 = vpop.f32.mrf.mxu0 }
 0x585   :  { %v3261_v17 = vadd.f32 %v3260_v47, %v7246_v63  ;;  %3737 = vmatprep.mubr.bf16.mxu1 %v3406_v6  ;;  %v3362_v18 = vmax.f32 %v3259_v51, 0.0 }
 0x586   :  { %v3262_v42 = vpop.f32.mrf.mxu0  ;;  %3738 = vmatmul.mubr.bf16.gmra.mxu1 %v3405_v46 }
 0x587   :  { %v3263_v53 = vadd.f32 %v3262_v42, %v7243_v48  ;;  %v3363_v45 = vmax.f32 %v3261_v17, 0.0 }
 0x588   :  { %v3266_v49 = vpop.f32.mrf.mxu0 }
 0x589   :  { %v3364_v2 = vmax.f32 %v3263_v53, 0.0  ;;  %v3407_v11 = vpack.c.bf16 %v3363_v45, %v3361_v22  ;;  %v3267_v15 = vadd.f32 %v3266_v49, %v7246_v63 }
 0x58a   :  { %v3268_v10 = vpop.f32.mrf.mxu0 }
 0x58b   :  { %v3408_v29 = vpack.c.bf16 %v3364_v2, %v3362_v18  ;;  %v3269_v3 = vadd.f32 %v3268_v10, %v7243_v48  ;;  %v3365_v19 = vmax.f32 %v3267_v15, 0.0 }
 0x58c   :  { %v3270_v33 = vpop.f32.mrf.mxu0 }
 0x58d   :  { %v3271_v43 = vadd.f32 %v3270_v33, %v7246_v63  ;;  %3747 = vmatprep.mubr.bf16.mxu1 %v3408_v29  ;;  %v3366_v25 = vmax.f32 %v3269_v3, 0.0 }
 0x58e   :  { %v3272_v35 = vpop.f32.mrf.mxu0  ;;  %3748 = vmatmul.mubr.bf16.gmra.mxu1 %v3407_v11 }
 0x58f   :  { %v3273_v62 = vadd.f32 %v3272_v35, %v7243_v48  ;;  %v3367_v31 = vmax.f32 %v3271_v43, 0.0 }
 0x590   :  { %v3276_v44 = vpop.f32.mrf.mxu0 }
 0x591   :  { %v3368_v37 = vmax.f32 %v3273_v62, 0.0  ;;  %v3409_v8 = vpack.c.bf16 %v3367_v31, %v3365_v19  ;;  %v3277_v57 = vadd.f32 %v3276_v44, %v7246_v63 }
 0x592   :  { %v3278_v32 = vpop.f32.mrf.mxu0 }
 0x593   :  { %v3410_v52 = vpack.c.bf16 %v3368_v37, %v3366_v25  ;;  %v3279_v55 = vadd.f32 %v3278_v32, %v7243_v48  ;;  %v3369_v27 = vmax.f32 %v3277_v57, 0.0 }
 0x594   :  { %v3280_v38 = vpop.f32.mrf.mxu0 }
 0x595   :  { %v3281_v1 = vadd.f32 %v3280_v38, %v7246_v63  ;;  %3757 = vmatprep.mubr.bf16.mxu1 %v3410_v52  ;;  %v3370_v4 = vmax.f32 %v3279_v55, 0.0 }
 0x596   :  { %v3282_v23 = vpop.f32.mrf.mxu0  ;;  %3758 = vmatmul.mubr.bf16.gmra.mxu1 %v3409_v8 }
 0x597   :  { %v3283_v40 = vadd.f32 %v3282_v23, %v7243_v48  ;;  %v3371_v26 = vmax.f32 %v3281_v1, 0.0 }
 0x598   :  { %v3286_v41 = vpop.f32.mrf.mxu0 }
 0x599   :  { %v3372_v34 = vmax.f32 %v3283_v40, 0.0  ;;  %v3411_v39 = vpack.c.bf16 %v3371_v26, %v3369_v27  ;;  %v3287_v0 = vadd.f32 %v3286_v41, %v7246_v63  ;;  %v5862_v27 = vld [vmem:[%s7881_s18 + $0x30] sm:$0xff]  }
 0x59a   :  { %v3288_v24 = vpop.f32.mrf.mxu0 }
 0x59b   :  { %v3412_v59 = vpack.c.bf16 %v3372_v34, %v3370_v4  ;;  %v3289_v56 = vadd.f32 %v3288_v24, %v7243_v48  ;;  %v3373_v61 = vmax.f32 %v3287_v0, 0.0  ;;  %v5859_v34 = vld [vmem:[%s7881_s18 + $0x78] sm:$0xff]   ;;  %v5863_v24 = vld [vmem:[%s7881_s18 + $0x68] sm:$0xff]  }
 0x59c   :  { %v3290_v16 = vpop.f32.mrf.mxu0  ;;  %5336 = vmatprep.subr.bf16.mxu1 %v5859_v34 }
 0x59d   :  { %v3291_v60 = vadd.f32 %v3290_v16, %v7246_v63  ;;  %3767 = vmatprep.mubr.bf16.mxu1 %v3412_v59  ;;  %v3374_v28 = vmax.f32 %v3289_v56, 0.0  ;;  %v3453_v59 = vld [vmem:[%s7878_s15] sm:$0x3]  ;;  %v5864_v56 = vld [vmem:[%s7881_s18 + $0x28] sm:$0xff]  }
 0x59e   :  { %v3292_v36 = vpop.f32.mrf.mxu0  ;;  %3768 = vmatmul.mubr.bf16.gmra.mxu1 %v3411_v39  ;;  %v7331_v16 = vrot.slane %v3453_v59, %v6521_v9 }
 0x59f   :  { %v3293_v58 = vadd.f32 %v3292_v36, %v7243_v48  ;;  %v3375_v21 = vmax.f32 %v3291_v60, 0.0  ;;  %v7337_v60 = vrot.slane %v3453_v59, %v6523_v12 }
 0x5a0   :  { %v3296_v30 = vpop.f32.mrf.mxu0 }
 0x5a1   :  { %v3376_v13 = vmax.f32 %v3293_v58, 0.0  ;;  %v3413_v6 = vpack.c.bf16 %v3375_v21, %v3373_v61  ;;  %v3297_v17 = vadd.f32 %v3296_v30, %v7246_v63  ;;  %v5866_v61 = vld [vmem:[%s7881_s18 + $0x20] sm:$0xff]  }
 0x5a2   :  { %v3298_v54 = vpop.f32.mrf.mxu0 }
 0x5a3   :  { %v3414_v50 = vpack.c.bf16 %v3376_v13, %v3374_v28  ;;  %v3299_v47 = vadd.f32 %v3298_v54, %v7243_v48  ;;  %v3377_v2 = vmax.f32 %v3297_v17, 0.0  ;;  %v5865_v13 = vld [vmem:[%s7881_s18 + $0x60] sm:$0xff]   ;;  %v5867_v54 = vld [vmem:[%s7881_s18 + $0x58] sm:$0xff]  }
 0x5a4   :  { %v3300_v46 = vpop.f32.mrf.mxu0  ;;  %v5868_v17 = vld [vmem:[%s7881_s18 + $0x18] sm:$0xff]  }
 0x5a5   :  { %v3301_v51 = vadd.f32 %v3300_v46, %v7246_v63  ;;  %3777 = vmatprep.mubr.bf16.mxu1 %v3414_v50  ;;  %v3378_v49 = vmax.f32 %v3299_v47, 0.0 }
 0x5a6   :  { %v3302_v5 = vpop.f32.mrf.mxu0  ;;  %3778 = vmatmul.mubr.bf16.gmra.mxu1 %v3413_v6 }
 0x5a7   :  { %v3303_v42 = vadd.f32 %v3302_v5, %v7243_v48  ;;  %v3379_v53 = vmax.f32 %v3301_v51, 0.0 }
 0x5a8   :  { %v3306_v45 = vpop.f32.mrf.mxu0 }
 0x5a9   :  { %v3380_v18 = vmax.f32 %v3303_v42, 0.0  ;;  %v3415_v29 = vpack.c.bf16 %v3379_v53, %v3377_v2  ;;  %v3307_v43 = vadd.f32 %v3306_v45, %v7246_v63  ;;  %v5869_v53 = vld [vmem:[%s7881_s18 + $0x50] sm:$0xff]  }
 0x5aa   :  { %v3308_v22 = vpop.f32.mrf.mxu0 }
 0x5ab   :  { %v3416_v10 = vpack.c.bf16 %v3380_v18, %v3378_v49  ;;  %v3309_v33 = vadd.f32 %v3308_v22, %v7243_v48  ;;  %v3381_v44 = vmax.f32 %v3307_v43, 0.0 }
 0x5ac   :  { %v3310_v11 = vpop.f32.mrf.mxu0 }
 0x5ad   :  { %v3311_v3 = vadd.f32 %v3310_v11, %v7246_v63  ;;  %3787 = vmatprep.mubr.bf16.mxu1 %v3416_v10  ;;  %v3382_v20 = vmax.f32 %v3309_v33, 0.0  ;;  %v5870_v10 = vld [vmem:[%s7881_s18 + $0x10] sm:$0xff]   ;;  %v5871_v33 = vld [vmem:[%s7881_s18 + $0x48] sm:$0xff]  }
 0x5ae   :  { %v3312_v15 = vpop.f32.mrf.mxu0  ;;  %3788 = vmatmul.mubr.bf16.gmra.mxu1 %v3415_v29 }
 0x5af   :  { %v3313_v35 = vadd.f32 %v3312_v15, %v7243_v48  ;;  %v3383_v14 = vmax.f32 %v3311_v3, 0.0 }
 0x5b0   :  { %v3316_v62 = vpop.f32.mrf.mxu0 }
 0x5b1   :  { %v3384_v31 = vmax.f32 %v3313_v35, 0.0  ;;  %v3417_v19 = vpack.c.bf16 %v3383_v14, %v3381_v44  ;;  %v3317_v38 = vadd.f32 %v3316_v62, %v7246_v63  ;;  %v5872_v62 = vld [vmem:[%s7881_s18 + $0x8] sm:$0xff]   ;;  %v5873_v44 = vld [vmem:[%s7881_s18 + $0x40] sm:$0xff]  }
 0x5b2   :  { %v3318_v25 = vpop.f32.mrf.mxu0 }
 0x5b3   :  { %v3418_v37 = vpack.c.bf16 %v3384_v31, %v3382_v20  ;;  %v3319_v52 = vadd.f32 %v3318_v25, %v7243_v48  ;;  %v3385_v26 = vmax.f32 %v3317_v38, 0.0 }
 0x5b4   :  { %v3320_v32 = vpop.f32.mrf.mxu0 }
 0x5b5   :  { %v3321_v8 = vadd.f32 %v3320_v32, %v7246_v63  ;;  %3797 = vmatprep.mubr.bf16.mxu1 %v3418_v37  ;;  %v3386_v23 = vmax.f32 %v3319_v52, 0.0  ;;  %v5860_v63 = vld [vmem:[%s7881_s18 + $0x38] sm:$0xff]  }
 0x5b6   :  { %v3322_v55 = vpop.f32.mrf.mxu0  ;;  %3798 = vmatmul.mubr.bf16.gmra.mxu1 %v3417_v19 }
 0x5b7   :  { %v3323_v1 = vadd.f32 %v3322_v55, %v7243_v48  ;;  %v3387_v57 = vmax.f32 %v3321_v8, 0.0  ;;  %5337 = vmatpush3.bf16.msra.mxu1 %v5860_v63  ;;  %v5861_v48 = vld [vmem:[%s7881_s18 + $0x70] sm:$0xff]   ;;  %v5874_v8 = vld [vmem:[%s7881_s18] sm:$0xff]  }
 0x5b8   :  { %5338 = vmatprep.subr.bf16.mxu1 %v5861_v48 }
 0x5b9   :  { %v3388_v40 = vmax.f32 %v3323_v1, 0.0  ;;  %v3419_v4 = vpack.c.bf16 %v3387_v57, %v3385_v26 }
 0x5bb   :  { %v3420_v41 = vpack.c.bf16 %v3388_v40, %v3386_v23  ;;  %5339 = vmatpush3.bf16.msra.mxu1 %v5862_v27 }
 0x5bc   :  { %5340 = vmatprep.subr.bf16.mxu1 %v5863_v24 }
 0x5bd   :  { %3807 = vmatprep.mubr.bf16.mxu1 %v3420_v41 }
 0x5be   :  { %3808 = vmatmul.mubr.bf16.gmra.mxu1 %v3419_v4 }
 0x5bf   :  { %5341 = vmatpush3.bf16.msra.mxu1 %v5864_v56 }
 0x5c0   :  { %5342 = vmatprep.subr.bf16.mxu1 %v5865_v13 }
 0x5c3   :  { %5343 = vmatpush3.bf16.msra.mxu1 %v5866_v61 }
 0x5c4   :  { %5344 = vmatprep.subr.bf16.mxu1 %v5867_v54 }
 0x5c7   :  { %5345 = vmatpush3.bf16.msra.mxu1 %v5868_v17 }
 0x5c8   :  { %5346 = vmatprep.subr.bf16.mxu1 %v5869_v53 }
 0x5cb   :  { %5347 = vmatpush3.bf16.msra.mxu1 %v5870_v10 }
 0x5cc   :  { %5348 = vmatprep.subr.bf16.mxu1 %v5871_v33 }
 0x5cf   :  { %5349 = vmatpush3.bf16.msra.mxu1 %v5872_v62 }
 0x5d0   :  { %5350 = vmatprep.subr.bf16.mxu1 %v5873_v44 }
 0x5d3   :  { %5351 = vmatpush3.bf16.msra.mxu1 %v5874_v8 }
 0x606   :  { %v3659_v39 = vpop.f32.mrf.mxu1 }
 0x607   :  { %v3660_v30 = vadd.f32 %v3659_v39, %v7337_v60 }
 0x608   :  { %v3661_v0 = vpop.f32.mrf.mxu1 }
 0x609   :  { %v3662_v58 = vadd.f32 %v3661_v0, %v7331_v16  ;;  %v3818_v5 = vmax.f32 %v3660_v30, 0.0 }
 0x60a   :  { %v3663_v36 = vpop.f32.mrf.mxu1 }
 0x60b   :  { %v3664_v21 = vadd.f32 %v3663_v36, %v7337_v60  ;;  %v3819_v47 = vmax.f32 %v3662_v58, 0.0 }
 0x60c   :  { %v3665_v28 = vpop.f32.mrf.mxu1 }
 0x60d   :  { %v3666_v50 = vadd.f32 %v3665_v28, %v7331_v16  ;;  %v3820_v6 = vmax.f32 %v3664_v21, 0.0 }
 0x60e   :  { %v3669_v46 = vpop.f32.mrf.mxu1 }
 0x60f   :  { %v3821_v51 = vmax.f32 %v3666_v50, 0.0  ;;  %v3882_v49 = vpack.c.bf16 %v3820_v6, %v3818_v5  ;;  %v3670_v29 = vadd.f32 %v3669_v46, %v7337_v60 }
 0x610   :  { %v3671_v42 = vpop.f32.mrf.mxu1 }
 0x611   :  { %v3883_v45 = vpack.c.bf16 %v3821_v51, %v3819_v47  ;;  %v3672_v2 = vadd.f32 %v3671_v42, %v7331_v16  ;;  %v3822_v20 = vmax.f32 %v3670_v29, 0.0 }
 0x612   :  { %v3673_v18 = vpop.f32.mrf.mxu1 }
 0x613   :  { %v3674_v22 = vadd.f32 %v3673_v18, %v7337_v60  ;;  %4150 = vmatprep.mubr.bf16.mxu0 %v3883_v45  ;;  %v3823_v35 = vmax.f32 %v3672_v2, 0.0 }
 0x614   :  { %v3675_v11 = vpop.f32.mrf.mxu1  ;;  %4151 = vmatmul.mubr.bf16.vlgmr.msra.gmra.mxu0 %v3882_v49 }
 0x615   :  { %v3676_v3 = vadd.f32 %v3675_v11, %v7331_v16  ;;  %v3824_v43 = vmax.f32 %v3674_v22, 0.0 }
 0x616   :  { %v3679_v15 = vpop.f32.mrf.mxu1 }
 0x617   :  { %v3825_v14 = vmax.f32 %v3676_v3, 0.0  ;;  %v3884_v37 = vpack.c.bf16 %v3824_v43, %v3822_v20  ;;  %v3680_v38 = vadd.f32 %v3679_v15, %v7337_v60 }
 0x618   :  { %v3681_v31 = vpop.f32.mrf.mxu1 }
 0x619   :  { %v3885_v25 = vpack.c.bf16 %v3825_v14, %v3823_v35  ;;  %v3682_v32 = vadd.f32 %v3681_v31, %v7331_v16  ;;  %v3826_v41 = vmax.f32 %v3680_v38, 0.0 }
 0x61a   :  { %v3683_v19 = vpop.f32.mrf.mxu1 }
 0x61b   :  { %v3684_v52 = vadd.f32 %v3683_v19, %v7337_v60  ;;  %4160 = vmatprep.mubr.bf16.mxu0 %v3885_v25  ;;  %v3827_v40 = vmax.f32 %v3682_v32, 0.0 }
 0x61c   :  { %v3685_v55 = vpop.f32.mrf.mxu1  ;;  %4161 = vmatmul.mubr.bf16.gmra.mxu0 %v3884_v37 }
 0x61d   :  { %v3686_v1 = vadd.f32 %v3685_v55, %v7331_v16  ;;  %v3828_v57 = vmax.f32 %v3684_v52, 0.0 }
 0x61e   :  { %v3689_v23 = vpop.f32.mrf.mxu1 }
 0x61f   :  { %v3829_v26 = vmax.f32 %v3686_v1, 0.0  ;;  %v3886_v63 = vpack.c.bf16 %v3828_v57, %v3826_v41  ;;  %v3690_v59 = vadd.f32 %v3689_v23, %v7337_v60 }
 0x620   :  { %v3691_v4 = vpop.f32.mrf.mxu1 }
 0x621   :  { %v3887_v34 = vpack.c.bf16 %v3829_v26, %v3827_v40  ;;  %v3692_v27 = vadd.f32 %v3691_v4, %v7331_v16  ;;  %v3830_v30 = vmax.f32 %v3690_v59, 0.0 }
 0x622   :  { %v3693_v48 = vpop.f32.mrf.mxu1 }
 0x623   :  { %v3694_v24 = vadd.f32 %v3693_v48, %v7337_v60  ;;  %4170 = vmatprep.mubr.bf16.mxu0 %v3887_v34  ;;  %v3831_v58 = vmax.f32 %v3692_v27, 0.0 }
 0x624   :  { %v3695_v39 = vpop.f32.mrf.mxu1  ;;  %4171 = vmatmul.mubr.bf16.gmra.mxu0 %v3886_v63 }
 0x625   :  { %v3696_v56 = vadd.f32 %v3695_v39, %v7331_v16  ;;  %v3832_v0 = vmax.f32 %v3694_v24, 0.0 }
 0x626   :  { %v3699_v36 = vpop.f32.mrf.mxu1 }
 0x627   :  { %v3833_v21 = vmax.f32 %v3696_v56, 0.0  ;;  %v3888_v61 = vpack.c.bf16 %v3832_v0, %v3830_v30  ;;  %v3700_v46 = vadd.f32 %v3699_v36, %v7337_v60 }
 0x628   :  { %v3701_v28 = vpop.f32.mrf.mxu1 }
 0x629   :  { %v3889_v13 = vpack.c.bf16 %v3833_v21, %v3831_v58  ;;  %v3702_v50 = vadd.f32 %v3701_v28, %v7331_v16  ;;  %v3834_v45 = vmax.f32 %v3700_v46, 0.0 }
 0x62a   :  { %v3703_v54 = vpop.f32.mrf.mxu1 }
 0x62b   :  { %v3704_v6 = vadd.f32 %v3703_v54, %v7337_v60  ;;  %4180 = vmatprep.mubr.bf16.mxu0 %v3889_v13  ;;  %v3835_v42 = vmax.f32 %v3702_v50, 0.0 }
 0x62c   :  { %v3705_v47 = vpop.f32.mrf.mxu1  ;;  %4181 = vmatmul.mubr.bf16.gmra.mxu0 %v3888_v61 }
 0x62d   :  { %v3706_v51 = vadd.f32 %v3705_v47, %v7331_v16  ;;  %v3836_v17 = vmax.f32 %v3704_v6, 0.0 }
 0x62e   :  { %v3709_v5 = vpop.f32.mrf.mxu1 }
 0x62f   :  { %v3837_v53 = vmax.f32 %v3706_v51, 0.0  ;;  %v3890_v2 = vpack.c.bf16 %v3836_v17, %v3834_v45  ;;  %v3710_v11 = vadd.f32 %v3709_v5, %v7337_v60 }
 0x630   :  { %v3711_v49 = vpop.f32.mrf.mxu1 }
 0x631   :  { %v3891_v18 = vpack.c.bf16 %v3837_v53, %v3835_v42  ;;  %v3712_v10 = vadd.f32 %v3711_v49, %v7331_v16  ;;  %v3838_v62 = vmax.f32 %v3710_v11, 0.0 }
 0x632   :  { %v3713_v22 = vpop.f32.mrf.mxu1 }
 0x633   :  { %v3714_v29 = vadd.f32 %v3713_v22, %v7337_v60  ;;  %4190 = vmatprep.mubr.bf16.mxu0 %v3891_v18  ;;  %v3839_v35 = vmax.f32 %v3712_v10, 0.0 }
 0x634   :  { %v3715_v33 = vpop.f32.mrf.mxu1  ;;  %4191 = vmatmul.mubr.bf16.gmra.mxu0 %v3890_v2 }
 0x635   :  { %v3716_v3 = vadd.f32 %v3715_v33, %v7331_v16  ;;  %v3840_v43 = vmax.f32 %v3714_v29, 0.0 }
 0x636   :  { %v3719_v15 = vpop.f32.mrf.mxu1 }
 0x637   :  { %v3841_v14 = vmax.f32 %v3716_v3, 0.0  ;;  %v3892_v44 = vpack.c.bf16 %v3840_v43, %v3838_v62  ;;  %v3720_v32 = vadd.f32 %v3719_v15, %v7337_v60 }
 0x638   :  { %v3721_v20 = vpop.f32.mrf.mxu1 }
 0x639   :  { %v3893_v31 = vpack.c.bf16 %v3841_v14, %v3839_v35  ;;  %v3722_v37 = vadd.f32 %v3721_v20, %v7331_v16  ;;  %v3842_v23 = vmax.f32 %v3720_v32, 0.0 }
 0x63a   :  { %v3723_v25 = vpop.f32.mrf.mxu1 }
 0x63b   :  { %v3724_v19 = vadd.f32 %v3723_v25, %v7337_v60  ;;  %4200 = vmatprep.mubr.bf16.mxu0 %v3893_v31  ;;  %v3843_v1 = vmax.f32 %v3722_v37, 0.0 }
 0x63c   :  { %v3725_v52 = vpop.f32.mrf.mxu1  ;;  %4201 = vmatmul.mubr.bf16.gmra.mxu0 %v3892_v44 }
 0x63d   :  { %v3726_v8 = vadd.f32 %v3725_v52, %v7331_v16  ;;  %v3844_v38 = vmax.f32 %v3724_v19, 0.0 }
 0x63e   :  { %v3729_v55 = vpop.f32.mrf.mxu1 }
 0x63f   :  { %v3845_v57 = vmax.f32 %v3726_v8, 0.0  ;;  %v3894_v41 = vpack.c.bf16 %v3844_v38, %v3842_v23  ;;  %v3730_v48 = vadd.f32 %v3729_v55, %v7337_v60 }
 0x640   :  { %v3731_v40 = vpop.f32.mrf.mxu1 }
 0x641   :  { %v3895_v26 = vpack.c.bf16 %v3845_v57, %v3843_v1  ;;  %v3732_v34 = vadd.f32 %v3731_v40, %v7331_v16  ;;  %v3846_v36 = vmax.f32 %v3730_v48, 0.0 }
 0x642   :  { %v3733_v4 = vpop.f32.mrf.mxu1 }
 0x643   :  { %v3734_v63 = vadd.f32 %v3733_v4, %v7337_v60  ;;  %4210 = vmatprep.mubr.bf16.mxu0 %v3895_v26  ;;  %v3847_v56 = vmax.f32 %v3732_v34, 0.0 }
 0x644   :  { %v3735_v27 = vpop.f32.mrf.mxu1  ;;  %4211 = vmatmul.mubr.bf16.gmra.mxu0 %v3894_v41 }
 0x645   :  { %v3736_v24 = vadd.f32 %v3735_v27, %v7331_v16  ;;  %v3848_v59 = vmax.f32 %v3734_v63, 0.0 }
 0x646   :  { %v3739_v39 = vpop.f32.mrf.mxu1 }
 0x647   :  { %v3849_v0 = vmax.f32 %v3736_v24, 0.0  ;;  %v3896_v30 = vpack.c.bf16 %v3848_v59, %v3846_v36  ;;  %v3740_v54 = vadd.f32 %v3739_v39, %v7337_v60 }
 0x648   :  { %v3741_v58 = vpop.f32.mrf.mxu1 }
 0x649   :  { %v3897_v21 = vpack.c.bf16 %v3849_v0, %v3847_v56  ;;  %v3742_v13 = vadd.f32 %v3741_v58, %v7331_v16  ;;  %v3850_v5 = vmax.f32 %v3740_v54, 0.0 }
 0x64a   :  { %v3743_v28 = vpop.f32.mrf.mxu1 }
 0x64b   :  { %v3744_v61 = vadd.f32 %v3743_v28, %v7337_v60  ;;  %4220 = vmatprep.mubr.bf16.mxu0 %v3897_v21  ;;  %v3851_v51 = vmax.f32 %v3742_v13, 0.0 }
 0x64c   :  { %v3745_v50 = vpop.f32.mrf.mxu1  ;;  %4221 = vmatmul.mubr.bf16.gmra.mxu0 %v3896_v30 }
 0x64d   :  { %v3746_v6 = vadd.f32 %v3745_v50, %v7331_v16  ;;  %v3852_v46 = vmax.f32 %v3744_v61, 0.0 }
 0x64e   :  { %v3749_v47 = vpop.f32.mrf.mxu1 }
 0x64f   :  { %v3853_v17 = vmax.f32 %v3746_v6, 0.0  ;;  %v3898_v45 = vpack.c.bf16 %v3852_v46, %v3850_v5  ;;  %v3750_v22 = vadd.f32 %v3749_v47, %v7337_v60 }
 0x650   :  { %v3751_v42 = vpop.f32.mrf.mxu1 }
 0x651   :  { %v3899_v53 = vpack.c.bf16 %v3853_v17, %v3851_v51  ;;  %v3752_v18 = vadd.f32 %v3751_v42, %v7331_v16  ;;  %v3854_v15 = vmax.f32 %v3750_v22, 0.0 }
 0x652   :  { %v3753_v49 = vpop.f32.mrf.mxu1 }
 0x653   :  { %v3754_v2 = vadd.f32 %v3753_v49, %v7337_v60  ;;  %4230 = vmatprep.mubr.bf16.mxu0 %v3899_v53  ;;  %v3855_v3 = vmax.f32 %v3752_v18, 0.0 }
 0x654   :  { %v3755_v10 = vpop.f32.mrf.mxu1  ;;  %4231 = vmatmul.mubr.bf16.gmra.mxu0 %v3898_v45 }
 0x655   :  { %v3756_v29 = vadd.f32 %v3755_v10, %v7331_v16  ;;  %v3856_v11 = vmax.f32 %v3754_v2, 0.0 }
 0x656   :  { %v3759_v33 = vpop.f32.mrf.mxu1 }
 0x657   :  { %v3857_v43 = vmax.f32 %v3756_v29, 0.0  ;;  %v3900_v62 = vpack.c.bf16 %v3856_v11, %v3854_v15  ;;  %v3760_v25 = vadd.f32 %v3759_v33, %v7337_v60 }
 0x658   :  { %v3761_v35 = vpop.f32.mrf.mxu1 }
 0x659   :  { %v3901_v14 = vpack.c.bf16 %v3857_v43, %v3855_v3  ;;  %v3762_v31 = vadd.f32 %v3761_v35, %v7331_v16  ;;  %v3858_v55 = vmax.f32 %v3760_v25, 0.0 }
 0x65a   :  { %v3763_v20 = vpop.f32.mrf.mxu1 }
 0x65b   :  { %v3764_v44 = vadd.f32 %v3763_v20, %v7337_v60  ;;  %4240 = vmatprep.mubr.bf16.mxu0 %v3901_v14  ;;  %v3859_v8 = vmax.f32 %v3762_v31, 0.0 }
 0x65c   :  { %v3765_v37 = vpop.f32.mrf.mxu1  ;;  %4241 = vmatmul.mubr.bf16.gmra.mxu0 %v3900_v62 }
 0x65d   :  { %v3766_v19 = vadd.f32 %v3765_v37, %v7331_v16  ;;  %v3860_v32 = vmax.f32 %v3764_v44, 0.0 }
 0x65e   :  { %v3769_v52 = vpop.f32.mrf.mxu1 }
 0x65f   :  { %v3861_v38 = vmax.f32 %v3766_v19, 0.0  ;;  %v3902_v23 = vpack.c.bf16 %v3860_v32, %v3858_v55  ;;  %v3770_v4 = vadd.f32 %v3769_v52, %v7337_v60 }
 0x660   :  { %v3771_v1 = vpop.f32.mrf.mxu1 }
 0x661   :  { %v3903_v57 = vpack.c.bf16 %v3861_v38, %v3859_v8  ;;  %v3772_v26 = vadd.f32 %v3771_v1, %v7331_v16  ;;  %v3862_v39 = vmax.f32 %v3770_v4, 0.0 }
 0x662   :  { %v3773_v40 = vpop.f32.mrf.mxu1 }
 0x663   :  { %v3774_v41 = vadd.f32 %v3773_v40, %v7337_v60  ;;  %4250 = vmatprep.mubr.bf16.mxu0 %v3903_v57  ;;  %v3863_v24 = vmax.f32 %v3772_v26, 0.0 }
 0x664   :  { %v3775_v34 = vpop.f32.mrf.mxu1  ;;  %4251 = vmatmul.mubr.bf16.gmra.mxu0 %v3902_v23 }
 0x665   :  { %v3776_v63 = vadd.f32 %v3775_v34, %v7331_v16  ;;  %v3864_v48 = vmax.f32 %v3774_v41, 0.0 }
 0x666   :  { %v3779_v27 = vpop.f32.mrf.mxu1 }
 0x667   :  { %v3865_v59 = vmax.f32 %v3776_v63, 0.0  ;;  %v3904_v36 = vpack.c.bf16 %v3864_v48, %v3862_v39  ;;  %v3780_v28 = vadd.f32 %v3779_v27, %v7337_v60 }
 0x668   :  { %v3781_v56 = vpop.f32.mrf.mxu1 }
 0x669   :  { %v3905_v0 = vpack.c.bf16 %v3865_v59, %v3863_v24  ;;  %v3782_v21 = vadd.f32 %v3781_v56, %v7331_v16  ;;  %v3866_v47 = vmax.f32 %v3780_v28, 0.0  ;;  %v3946_v59 = vld [vmem:[%s7880_s17] sm:$0x3] }
 0x66a   :  { %v3783_v58 = vpop.f32.mrf.mxu1  ;;  %v7437_v56 = vrot.slane %v3946_v59, %v6521_v9 }
 0x66b   :  { %v3784_v30 = vadd.f32 %v3783_v58, %v7337_v60  ;;  %4260 = vmatprep.mubr.bf16.mxu0 %v3905_v0  ;;  %v3867_v6 = vmax.f32 %v3782_v21, 0.0 }
 0x66c   :  { %v3785_v13 = vpop.f32.mrf.mxu1  ;;  %4261 = vmatmul.mubr.bf16.gmra.mxu0 %v3904_v36 }
 0x66d   :  { %v3786_v61 = vadd.f32 %v3785_v13, %v7331_v16  ;;  %v3868_v54 = vmax.f32 %v3784_v30, 0.0 }
 0x66e   :  { %v3789_v50 = vpop.f32.mrf.mxu1 }
 0x66f   :  { %v3869_v46 = vmax.f32 %v3786_v61, 0.0  ;;  %v3906_v5 = vpack.c.bf16 %v3868_v54, %v3866_v47  ;;  %v3790_v49 = vadd.f32 %v3789_v50, %v7337_v60 }
 0x670   :  { %v3791_v51 = vpop.f32.mrf.mxu1 }
 0x671   :  { %v3907_v17 = vpack.c.bf16 %v3869_v46, %v3867_v6  ;;  %v3792_v53 = vadd.f32 %v3791_v51, %v7331_v16  ;;  %v3870_v33 = vmax.f32 %v3790_v49, 0.0 }
 0x672   :  { %v3793_v42 = vpop.f32.mrf.mxu1 }
 0x673   :  { %v3794_v45 = vadd.f32 %v3793_v42, %v7337_v60  ;;  %4270 = vmatprep.mubr.bf16.mxu0 %v3907_v17  ;;  %v3871_v29 = vmax.f32 %v3792_v53, 0.0 }
 0x674   :  { %v3795_v18 = vpop.f32.mrf.mxu1  ;;  %4271 = vmatmul.mubr.bf16.gmra.mxu0 %v3906_v5 }
 0x675   :  { %v3796_v2 = vadd.f32 %v3795_v18, %v7331_v16  ;;  %v3872_v22 = vmax.f32 %v3794_v45, 0.0 }
 0x676   :  { %v3799_v10 = vpop.f32.mrf.mxu1 }
 0x677   :  { %v3873_v11 = vmax.f32 %v3796_v2, 0.0  ;;  %v3908_v15 = vpack.c.bf16 %v3872_v22, %v3870_v33  ;;  %v3800_v20 = vadd.f32 %v3799_v10, %v7337_v60 }
 0x678   :  { %v3801_v3 = vpop.f32.mrf.mxu1 }
 0x679   :  { %v3909_v43 = vpack.c.bf16 %v3873_v11, %v3871_v29  ;;  %v3802_v14 = vadd.f32 %v3801_v3, %v7331_v16  ;;  %v3874_v52 = vmax.f32 %v3800_v20, 0.0 }
 0x67a   :  { %v3803_v35 = vpop.f32.mrf.mxu1 }
 0x67b   :  { %v3804_v62 = vadd.f32 %v3803_v35, %v7337_v60  ;;  %4280 = vmatprep.mubr.bf16.mxu0 %v3909_v43  ;;  %v3875_v19 = vmax.f32 %v3802_v14, 0.0 }
 0x67c   :  { %v3805_v31 = vpop.f32.mrf.mxu1  ;;  %4281 = vmatmul.mubr.bf16.gmra.mxu0 %v3908_v15 }
 0x67d   :  { %v3806_v44 = vadd.f32 %v3805_v31, %v7331_v16  ;;  %v3876_v25 = vmax.f32 %v3804_v62, 0.0 }
 0x67e   :  { %v3809_v37 = vpop.f32.mrf.mxu1 }
 0x67f   :  { %v3877_v32 = vmax.f32 %v3806_v44, 0.0  ;;  %v3910_v55 = vpack.c.bf16 %v3876_v25, %v3874_v52  ;;  %v3810_v40 = vadd.f32 %v3809_v37, %v7337_v60 }
 0x680   :  { %v3811_v8 = vpop.f32.mrf.mxu1 }
 0x681   :  { %v3911_v38 = vpack.c.bf16 %v3877_v32, %v3875_v19  ;;  %v3812_v57 = vadd.f32 %v3811_v8, %v7331_v16  ;;  %v3878_v48 = vmax.f32 %v3810_v40, 0.0 }
 0x682   :  { %v3813_v1 = vpop.f32.mrf.mxu1 }
 0x683   :  { %v3814_v23 = vadd.f32 %v3813_v1, %v7337_v60  ;;  %4290 = vmatprep.mubr.bf16.mxu0 %v3911_v38  ;;  %v3879_v34 = vmax.f32 %v3812_v57, 0.0  ;;  %v7440_v60 = vrot.slane %v3946_v59, %v6523_v12 }
 0x684   :  { %v3815_v26 = vpop.f32.mrf.mxu1  ;;  %4291 = vmatmul.mubr.bf16.gmra.mxu0 %v3910_v55 }
 0x685   :  { %v3816_v41 = vadd.f32 %v3815_v26, %v7331_v16  ;;  %v3880_v4 = vmax.f32 %v3814_v23, 0.0 }
 0x687   :  { %v3881_v63 = vmax.f32 %v3816_v41, 0.0  ;;  %v3912_v24 = vpack.c.bf16 %v3880_v4, %v3878_v48 }
 0x689   :  { %v3913_v27 = vpack.c.bf16 %v3881_v63, %v3879_v34 }
 0x68b   :  { %4300 = vmatprep.mubr.bf16.mxu0 %v3913_v27 }
 0x68c   :  { %4301 = vmatmul.mubr.bf16.gmra.mxu0 %v3912_v24 }
 0x6d4   :  { %v4152_v39 = vpop.f32.mrf.mxu0 }
 0x6d5   :  { %v4153_v21 = vadd.f32 %v4152_v39, %v7440_v60 }
 0x6d6   :  { %v4154_v16 = vpop.f32.mrf.mxu0 }
 0x6d7   :  { %v4155_v36 = vadd.f32 %v4154_v16, %v7437_v56  ;;  %v4311_v9 = vmax.f32 %v4153_v21, 0.0 }
 0x6d8   :  { %v4156_v0 = vpop.f32.mrf.mxu0 }
 0x6d9   :  { %v4157_v58 = vadd.f32 %v4156_v0, %v7440_v60  ;;  %v4312_v54 = vmax.f32 %v4155_v36, 0.0 }
 0x6da   :  { %v4158_v30 = vpop.f32.mrf.mxu0 }
 0x6db   :  { %v4159_v28 = vadd.f32 %v4158_v30, %v7437_v56  ;;  %v4313_v13 = vmax.f32 %v4157_v58, 0.0 }
 0x6dc   :  { %v4162_v61 = vpop.f32.mrf.mxu0 }
 0x6dd   :  { %v4314_v50 = vmax.f32 %v4159_v28, 0.0  ;;  %v4375_v12 = vpack.c.bf16 %v4313_v13, %v4311_v9  ;;  %v4163_v5 = vadd.f32 %v4162_v61, %v7440_v60 }
 0x6de   :  { %v4164_v6 = vpop.f32.mrf.mxu0 }
 0x6df   :  { %v4376_v46 = vpack.c.bf16 %v4314_v50, %v4312_v54  ;;  %v4165_v51 = vadd.f32 %v4164_v6, %v7437_v56  ;;  %v4315_v22 = vmax.f32 %v4163_v5, 0.0 }
 0x6e0   :  { %v4166_v47 = vpop.f32.mrf.mxu0 }
 0x6e1   :  { %v4167_v17 = vadd.f32 %v4166_v47, %v7440_v60  ;;  %4574 = vmatprep.mubr.bf16.mxu1 %v4376_v46  ;;  %v4316_v18 = vmax.f32 %v4165_v51, 0.0 }
 0x6e2   :  { %v4168_v42 = vpop.f32.mrf.mxu0  ;;  %4575 = vmatmul.mubr.bf16.vlgmr.msra.gmra.mxu1 %v4375_v12 }
 0x6e3   :  { %v4169_v53 = vadd.f32 %v4168_v42, %v7437_v56  ;;  %v4317_v45 = vmax.f32 %v4167_v17, 0.0 }
 0x6e4   :  { %v4172_v49 = vpop.f32.mrf.mxu0 }
 0x6e5   :  { %v4318_v2 = vmax.f32 %v4169_v53, 0.0  ;;  %v4377_v11 = vpack.c.bf16 %v4317_v45, %v4315_v22  ;;  %v4173_v15 = vadd.f32 %v4172_v49, %v7440_v60 }
 0x6e6   :  { %v4174_v10 = vpop.f32.mrf.mxu0 }
 0x6e7   :  { %v4378_v29 = vpack.c.bf16 %v4318_v2, %v4316_v18  ;;  %v4175_v3 = vadd.f32 %v4174_v10, %v7437_v56  ;;  %v4319_v25 = vmax.f32 %v4173_v15, 0.0 }
 0x6e8   :  { %v4176_v33 = vpop.f32.mrf.mxu0 }
 0x6e9   :  { %v4177_v43 = vadd.f32 %v4176_v33, %v7440_v60  ;;  %4582 = vmatprep.mubr.bf16.mxu1 %v4378_v29  ;;  %v4320_v31 = vmax.f32 %v4175_v3, 0.0 }
 0x6ea   :  { %v4178_v35 = vpop.f32.mrf.mxu0  ;;  %4583 = vmatmul.mubr.bf16.gmra.mxu1 %v4377_v11 }
 0x6eb   :  { %v4179_v14 = vadd.f32 %v4178_v35, %v7437_v56  ;;  %v4321_v62 = vmax.f32 %v4177_v43, 0.0 }
 0x6ec   :  { %v4182_v20 = vpop.f32.mrf.mxu0 }
 0x6ed   :  { %v4322_v44 = vmax.f32 %v4179_v14, 0.0  ;;  %v4379_v32 = vpack.c.bf16 %v4321_v62, %v4319_v25  ;;  %v4183_v55 = vadd.f32 %v4182_v20, %v7440_v60 }
 0x6ee   :  { %v4184_v37 = vpop.f32.mrf.mxu0 }
 0x6ef   :  { %v4380_v19 = vpack.c.bf16 %v4322_v44, %v4320_v31  ;;  %v4185_v8 = vadd.f32 %v4184_v37, %v7437_v56  ;;  %v4323_v4 = vmax.f32 %v4183_v55, 0.0 }
 0x6f0   :  { %v4186_v52 = vpop.f32.mrf.mxu0 }
 0x6f1   :  { %v4187_v38 = vadd.f32 %v4186_v52, %v7440_v60  ;;  %4590 = vmatprep.mubr.bf16.mxu1 %v4380_v19  ;;  %v4324_v26 = vmax.f32 %v4185_v8, 0.0 }
 0x6f2   :  { %v4188_v1 = vpop.f32.mrf.mxu0  ;;  %4591 = vmatmul.mubr.bf16.gmra.mxu1 %v4379_v32 }
 0x6f3   :  { %v4189_v57 = vadd.f32 %v4188_v1, %v7437_v56  ;;  %v4325_v23 = vmax.f32 %v4187_v38, 0.0 }
 0x6f4   :  { %v4192_v40 = vpop.f32.mrf.mxu0 }
 0x6f5   :  { %v4326_v41 = vmax.f32 %v4189_v57, 0.0  ;;  %v4381_v48 = vpack.c.bf16 %v4325_v23, %v4323_v4  ;;  %v4193_v39 = vadd.f32 %v4192_v40, %v7440_v60 }
 0x6f6   :  { %v4194_v34 = vpop.f32.mrf.mxu0 }
 0x6f7   :  { %v4382_v63 = vpack.c.bf16 %v4326_v41, %v4324_v26  ;;  %v4195_v24 = vadd.f32 %v4194_v34, %v7437_v56  ;;  %v4327_v28 = vmax.f32 %v4193_v39, 0.0 }
 0x6f8   :  { %v4196_v27 = vpop.f32.mrf.mxu0 }
 0x6f9   :  { %v4197_v59 = vadd.f32 %v4196_v27, %v7440_v60  ;;  %4598 = vmatprep.mubr.bf16.mxu1 %v4382_v63  ;;  %v4328_v21 = vmax.f32 %v4195_v24, 0.0 }
 0x6fa   :  { %v4198_v16 = vpop.f32.mrf.mxu0  ;;  %4599 = vmatmul.mubr.bf16.gmra.mxu1 %v4381_v48 }
 0x6fb   :  { %v4199_v0 = vadd.f32 %v4198_v16, %v7437_v56  ;;  %v4329_v36 = vmax.f32 %v4197_v59, 0.0 }
 0x6fc   :  { %v4202_v58 = vpop.f32.mrf.mxu0 }
 0x6fd   :  { %v4330_v30 = vmax.f32 %v4199_v0, 0.0  ;;  %v4383_v54 = vpack.c.bf16 %v4329_v36, %v4327_v28  ;;  %v4203_v46 = vadd.f32 %v4202_v58, %v7440_v60 }
 0x6fe   :  { %v4204_v13 = vpop.f32.mrf.mxu0 }
 0x6ff   :  { %v4384_v61 = vpack.c.bf16 %v4330_v30, %v4328_v21  ;;  %v4205_v9 = vadd.f32 %v4204_v13, %v7437_v56  ;;  %v4331_v53 = vmax.f32 %v4203_v46, 0.0 }
 0x700   :  { %v4206_v50 = vpop.f32.mrf.mxu0 }
 0x701   :  { %v4207_v6 = vadd.f32 %v4206_v50, %v7440_v60  ;;  %4606 = vmatprep.mubr.bf16.mxu1 %v4384_v61  ;;  %v4332_v5 = vmax.f32 %v4205_v9, 0.0 }
 0x702   :  { %v4208_v12 = vpop.f32.mrf.mxu0  ;;  %4607 = vmatmul.mubr.bf16.gmra.mxu1 %v4383_v54 }
 0x703   :  { %v4209_v47 = vadd.f32 %v4208_v12, %v7437_v56  ;;  %v4333_v51 = vmax.f32 %v4207_v6, 0.0 }
 0x704   :  { %v4212_v17 = vpop.f32.mrf.mxu0 }
 0x705   :  { %v4334_v42 = vmax.f32 %v4209_v47, 0.0  ;;  %v4385_v18 = vpack.c.bf16 %v4333_v51, %v4331_v53  ;;  %v4213_v29 = vadd.f32 %v4212_v17, %v7440_v60 }
 0x706   :  { %v4214_v45 = vpop.f32.mrf.mxu0 }
 0x707   :  { %v4386_v49 = vpack.c.bf16 %v4334_v42, %v4332_v5  ;;  %v4215_v22 = vadd.f32 %v4214_v45, %v7437_v56  ;;  %v4335_v14 = vmax.f32 %v4213_v29, 0.0 }
 0x708   :  { %v4216_v2 = vpop.f32.mrf.mxu0 }
 0x709   :  { %v4217_v10 = vadd.f32 %v4216_v2, %v7440_v60  ;;  %4614 = vmatprep.mubr.bf16.mxu1 %v4386_v49  ;;  %v4336_v15 = vmax.f32 %v4215_v22, 0.0 }
 0x70a   :  { %v4218_v11 = vpop.f32.mrf.mxu0  ;;  %4615 = vmatmul.mubr.bf16.gmra.mxu1 %v4385_v18 }
 0x70b   :  { %v4219_v33 = vadd.f32 %v4218_v11, %v7437_v56  ;;  %v4337_v3 = vmax.f32 %v4217_v10, 0.0 }
 0x70c   :  { %v4222_v43 = vpop.f32.mrf.mxu0 }
 0x70d   :  { %v4338_v35 = vmax.f32 %v4219_v33, 0.0  ;;  %v4387_v31 = vpack.c.bf16 %v4337_v3, %v4335_v14  ;;  %v4223_v19 = vadd.f32 %v4222_v43, %v7440_v60 }
 0x70e   :  { %v4224_v62 = vpop.f32.mrf.mxu0 }
 0x70f   :  { %v4388_v20 = vpack.c.bf16 %v4338_v35, %v4336_v15  ;;  %v4225_v25 = vadd.f32 %v4224_v62, %v7437_v56  ;;  %v4339_v57 = vmax.f32 %v4223_v19, 0.0 }
 0x710   :  { %v4226_v44 = vpop.f32.mrf.mxu0 }
 0x711   :  { %v4227_v37 = vadd.f32 %v4226_v44, %v7440_v60  ;;  %4622 = vmatprep.mubr.bf16.mxu1 %v4388_v20  ;;  %v4340_v55 = vmax.f32 %v4225_v25, 0.0 }
 0x712   :  { %v4228_v32 = vpop.f32.mrf.mxu0  ;;  %4623 = vmatmul.mubr.bf16.gmra.mxu1 %v4387_v31 }
 0x713   :  { %v4229_v52 = vadd.f32 %v4228_v32, %v7437_v56  ;;  %v4341_v8 = vmax.f32 %v4227_v37, 0.0 }
 0x714   :  { %v4232_v38 = vpop.f32.mrf.mxu0 }
 0x715   :  { %v4342_v1 = vmax.f32 %v4229_v52, 0.0  ;;  %v4389_v26 = vpack.c.bf16 %v4341_v8, %v4339_v57  ;;  %v4233_v63 = vadd.f32 %v4232_v38, %v7440_v60 }
 0x716   :  { %v4234_v23 = vpop.f32.mrf.mxu0 }
 0x717   :  { %v4390_v40 = vpack.c.bf16 %v4342_v1, %v4340_v55  ;;  %v4235_v4 = vadd.f32 %v4234_v23, %v7437_v56  ;;  %v4343_v0 = vmax.f32 %v4233_v63, 0.0 }
 0x718   :  { %v4236_v41 = vpop.f32.mrf.mxu0 }
 0x719   :  { %v4237_v34 = vadd.f32 %v4236_v41, %v7440_v60  ;;  %4630 = vmatprep.mubr.bf16.mxu1 %v4390_v40  ;;  %v4344_v39 = vmax.f32 %v4235_v4, 0.0 }
 0x71a   :  { %v4238_v48 = vpop.f32.mrf.mxu0  ;;  %4631 = vmatmul.mubr.bf16.gmra.mxu1 %v4389_v26 }
 0x71b   :  { %v4239_v27 = vadd.f32 %v4238_v48, %v7437_v56  ;;  %v4345_v24 = vmax.f32 %v4237_v34, 0.0 }
 0x71c   :  { %v4242_v59 = vpop.f32.mrf.mxu0 }
 0x71d   :  { %v4346_v16 = vmax.f32 %v4239_v27, 0.0  ;;  %v4391_v21 = vpack.c.bf16 %v4345_v24, %v4343_v0  ;;  %v4243_v61 = vadd.f32 %v4242_v59, %v7440_v60 }
 0x71e   :  { %v4244_v36 = vpop.f32.mrf.mxu0 }
 0x71f   :  { %v4392_v58 = vpack.c.bf16 %v4346_v16, %v4344_v39  ;;  %v4245_v28 = vadd.f32 %v4244_v36, %v7437_v56  ;;  %v4347_v47 = vmax.f32 %v4243_v61, 0.0 }
 0x720   :  { %v4246_v30 = vpop.f32.mrf.mxu0 }
 0x721   :  { %v4247_v13 = vadd.f32 %v4246_v30, %v7440_v60  ;;  %4638 = vmatprep.mubr.bf16.mxu1 %v4392_v58  ;;  %v4348_v46 = vmax.f32 %v4245_v28, 0.0 }
 0x722   :  { %v4248_v54 = vpop.f32.mrf.mxu0  ;;  %4639 = vmatmul.mubr.bf16.gmra.mxu1 %v4391_v21 }
 0x723   :  { %v4249_v50 = vadd.f32 %v4248_v54, %v7437_v56  ;;  %v4349_v9 = vmax.f32 %v4247_v13, 0.0 }
 0x724   :  { %v4252_v6 = vpop.f32.mrf.mxu0 }
 0x725   :  { %v4350_v12 = vmax.f32 %v4249_v50, 0.0  ;;  %v4393_v5 = vpack.c.bf16 %v4349_v9, %v4347_v47  ;;  %v4253_v49 = vadd.f32 %v4252_v6, %v7440_v60 }
 0x726   :  { %v4254_v51 = vpop.f32.mrf.mxu0 }
 0x727   :  { %v4394_v17 = vpack.c.bf16 %v4350_v12, %v4348_v46  ;;  %v4255_v53 = vadd.f32 %v4254_v51, %v7437_v56  ;;  %v4351_v33 = vmax.f32 %v4253_v49, 0.0 }
 0x728   :  { %v4256_v42 = vpop.f32.mrf.mxu0 }
 0x729   :  { %v4257_v45 = vadd.f32 %v4256_v42, %v7440_v60  ;;  %4646 = vmatprep.mubr.bf16.mxu1 %v4394_v17  ;;  %v4352_v29 = vmax.f32 %v4255_v53, 0.0 }
 0x72a   :  { %v4258_v18 = vpop.f32.mrf.mxu0  ;;  %4647 = vmatmul.mubr.bf16.gmra.mxu1 %v4393_v5 }
 0x72b   :  { %v4259_v2 = vadd.f32 %v4258_v18, %v7437_v56  ;;  %v4353_v22 = vmax.f32 %v4257_v45, 0.0 }
 0x72c   :  { %v4262_v10 = vpop.f32.mrf.mxu0 }
 0x72d   :  { %v4354_v11 = vmax.f32 %v4259_v2, 0.0  ;;  %v4395_v15 = vpack.c.bf16 %v4353_v22, %v4351_v33  ;;  %v4263_v20 = vadd.f32 %v4262_v10, %v7440_v60 }
 0x72e   :  { %v4264_v3 = vpop.f32.mrf.mxu0 }
 0x72f   :  { %v4396_v43 = vpack.c.bf16 %v4354_v11, %v4352_v29  ;;  %v4265_v14 = vadd.f32 %v4264_v3, %v7437_v56  ;;  %v4355_v52 = vmax.f32 %v4263_v20, 0.0 }
 0x730   :  { %v4266_v35 = vpop.f32.mrf.mxu0 }
 0x731   :  { %v4267_v62 = vadd.f32 %v4266_v35, %v7440_v60  ;;  %4654 = vmatprep.mubr.bf16.mxu1 %v4396_v43  ;;  %v4356_v19 = vmax.f32 %v4265_v14, 0.0 }
 0x732   :  { %v4268_v31 = vpop.f32.mrf.mxu0  ;;  %4655 = vmatmul.mubr.bf16.gmra.mxu1 %v4395_v15 }
 0x733   :  { %v4269_v44 = vadd.f32 %v4268_v31, %v7437_v56  ;;  %v4357_v25 = vmax.f32 %v4267_v62, 0.0 }
 0x734   :  { %v4272_v37 = vpop.f32.mrf.mxu0 }
 0x735   :  { %v4358_v32 = vmax.f32 %v4269_v44, 0.0  ;;  %v4397_v55 = vpack.c.bf16 %v4357_v25, %v4355_v52  ;;  %v4273_v40 = vadd.f32 %v4272_v37, %v7440_v60 }
 0x736   :  { %v4274_v8 = vpop.f32.mrf.mxu0 }
 0x737   :  { %v4398_v38 = vpack.c.bf16 %v4358_v32, %v4356_v19  ;;  %v4275_v57 = vadd.f32 %v4274_v8, %v7437_v56  ;;  %v4359_v27 = vmax.f32 %v4273_v40, 0.0  ;;  %v7509_v19 = vld [vmem:[%s7882_s19] ss:$0 sm:$0xff] }
 0x738   :  { %v4276_v1 = vpop.f32.mrf.mxu0 }
 0x739   :  { %v4277_v23 = vadd.f32 %v4276_v1, %v7440_v60  ;;  %4662 = vmatprep.mubr.bf16.mxu1 %v4398_v38  ;;  %v4360_v63 = vmax.f32 %v4275_v57, 0.0 }
 0x73a   :  { %v4278_v26 = vpop.f32.mrf.mxu0  ;;  %4663 = vmatmul.mubr.bf16.gmra.mxu1 %v4397_v55 }
 0x73b   :  { %v4279_v41 = vadd.f32 %v4278_v26, %v7437_v56  ;;  %v4361_v4 = vmax.f32 %v4277_v23, 0.0 }
 0x73c   :  { %v4282_v34 = vpop.f32.mrf.mxu0 }
 0x73d   :  { %v4362_v48 = vmax.f32 %v4279_v41, 0.0  ;;  %v4399_v39 = vpack.c.bf16 %v4361_v4, %v4359_v27  ;;  %v4283_v58 = vadd.f32 %v4282_v34, %v7440_v60 }
 0x73e   :  { %v4284_v24 = vpop.f32.mrf.mxu0 }
 0x73f   :  { %v4400_v59 = vpack.c.bf16 %v4362_v48, %v4360_v63  ;;  %v4285_v0 = vadd.f32 %v4284_v24, %v7437_v56  ;;  %v4363_v50 = vmax.f32 %v4283_v58, 0.0 }
 0x740   :  { %v4286_v16 = vpop.f32.mrf.mxu0 }
 0x741   :  { %v4287_v36 = vadd.f32 %v4286_v16, %v7440_v60  ;;  %4670 = vmatprep.mubr.bf16.mxu1 %v4400_v59  ;;  %v4364_v61 = vmax.f32 %v4285_v0, 0.0 }
 0x742   :  { %v4288_v21 = vpop.f32.mrf.mxu0  ;;  %4671 = vmatmul.mubr.bf16.gmra.mxu1 %v4399_v39 }
 0x743   :  { %v4289_v30 = vadd.f32 %v4288_v21, %v7437_v56  ;;  %v4365_v28 = vmax.f32 %v4287_v36, 0.0 }
 0x744   :  { %v4292_v13 = vpop.f32.mrf.mxu0 }
 0x745   :  { %v4366_v54 = vmax.f32 %v4289_v30, 0.0  ;;  %v4401_v46 = vpack.c.bf16 %v4365_v28, %v4363_v50  ;;  %v4293_v17 = vadd.f32 %v4292_v13, %v7440_v60 }
 0x746   :  { %v4294_v9 = vpop.f32.mrf.mxu0 }
 0x747   :  { %v4402_v6 = vpack.c.bf16 %v4366_v54, %v4364_v61  ;;  %v4295_v47 = vadd.f32 %v4294_v9, %v7437_v56  ;;  %v4367_v2 = vmax.f32 %v4293_v17, 0.0 }
 0x748   :  { %v4296_v12 = vpop.f32.mrf.mxu0 }
 0x749   :  { %v4297_v51 = vadd.f32 %v4296_v12, %v7440_v60  ;;  %4678 = vmatprep.mubr.bf16.mxu1 %v4402_v6  ;;  %v4368_v49 = vmax.f32 %v4295_v47, 0.0 }
 0x74a   :  { %v4298_v5 = vpop.f32.mrf.mxu0  ;;  %4679 = vmatmul.mubr.bf16.gmra.mxu1 %v4401_v46 }
 0x74b   :  { %v4299_v42 = vadd.f32 %v4298_v5, %v7437_v56  ;;  %v4369_v53 = vmax.f32 %v4297_v51, 0.0 }
 0x74c   :  { %v4302_v45 = vpop.f32.mrf.mxu0 }
 0x74d   :  { %v4370_v18 = vmax.f32 %v4299_v42, 0.0  ;;  %v4403_v29 = vpack.c.bf16 %v4369_v53, %v4367_v2  ;;  %v4303_v43 = vadd.f32 %v4302_v45, %v7440_v60 }
 0x74e   :  { %v4304_v22 = vpop.f32.mrf.mxu0 }
 0x74f   :  { %v4404_v10 = vpack.c.bf16 %v4370_v18, %v4368_v49  ;;  %v4305_v33 = vadd.f32 %v4304_v22, %v7437_v56  ;;  %v4371_v31 = vmax.f32 %v4303_v43, 0.0  ;;  %v7540_v49 = vand.u32 127, %v200_v7 }
 0x750   :  { %v4306_v11 = vpop.f32.mrf.mxu0 }
 0x751   :  { %v4307_v3 = vadd.f32 %v4306_v11, %v7440_v60  ;;  %4686 = vmatprep.mubr.bf16.mxu1 %v4404_v10  ;;  %v4372_v62 = vmax.f32 %v4305_v33, 0.0  ;;  %vm4705_vm3 = vcmp.lt.s32.totalorder %v7540_v49, 3 }
 0x752   :  { %v4308_v15 = vpop.f32.mrf.mxu0  ;;  %4687 = vmatmul.mubr.bf16.gmra.mxu1 %v4403_v29 }
 0x753   :  { %v4309_v35 = vadd.f32 %v4308_v15, %v7437_v56  ;;  %v4373_v14 = vmax.f32 %v4307_v3, 0.0 }
 0x755   :  { %v4374_v20 = vmax.f32 %v4309_v35, 0.0  ;;  %v4405_v25 = vpack.c.bf16 %v4373_v14, %v4371_v31 }
 0x757   :  { %v4406_v44 = vpack.c.bf16 %v4374_v20, %v4372_v62 }
 0x759   :  { %4694 = vmatprep.mubr.bf16.mxu1 %v4406_v44 }
 0x75a   :  { %4695 = vmatmul.mubr.bf16.gmra.mxu1 %v4405_v25 }
 0x7a2   :  { %v5352_v37 = vpop.f32.mrf.mxu1 }
 0x7a4   :  { %v5353_v32 = vpop.f32.mrf.mxu1 }
 0x7a5   :  { %v5354_v60 = vadd.f32 %v5353_v32, %v5352_v37 }
 0x7a6   :  { %v5355_v52 = vpop.f32.mrf.mxu1 }
 0x7a7   :  { %v7512_v8 = vadd.f32 %v5354_v60, %v7509_v19 }
 0x7a8   :  { %v5356_v56 = vpop.f32.mrf.mxu1 }
 0x7a9   :  { %v5304_v38 = vmul.f32 -1.442695, %v7512_v8  ;;  %v5357_v55 = vadd.f32 %v5356_v56, %v5355_v52  ;;  %v4898_v43 = vmax.f32 %v7512_v8, 0.0 }
 0x7aa   :  { %v5358_v1 = vpop.f32.mrf.mxu1 }
 0x7ab   :  { %5875 = vpow2.f32 %v5304_v38  ;;  %v7516_v57 = vadd.f32 %v5357_v55, %v7509_v19 }
 0x7ac   :  { %v5359_v23 = vpop.f32.mrf.mxu1 }
 0x7ad   :  { %v5305_v40 = vmul.f32 -1.442695, %v7516_v57  ;;  %v5360_v26 = vadd.f32 %v5359_v23, %v5358_v1  ;;  %v4899_v37 = vmax.f32 %v7516_v57, 0.0 }
 0x7ae   :  { %v5361_v41 = vpop.f32.mrf.mxu1 }
 0x7af   :  { %5877 = vpow2.f32 %v5305_v40  ;;  %v7520_v4 = vadd.f32 %v5360_v26, %v7509_v19 }
 0x7b0   :  { %v5362_v34 = vpop.f32.mrf.mxu1 }
 0x7b1   :  { %v5306_v63 = vmul.f32 -1.442695, %v7520_v4  ;;  %v5363_v48 = vadd.f32 %v5362_v34, %v5361_v41  ;;  %v4900_v23 = vmax.f32 %v7520_v4, 0.0 }
 0x7b2   :  { %v5364_v27 = vpop.f32.mrf.mxu1 }
 0x7b3   :  { %5879 = vpow2.f32 %v5306_v63  ;;  %v7524_v24 = vadd.f32 %v5363_v48, %v7509_v19 }
 0x7b4   :  { %v5365_v59 = vpop.f32.mrf.mxu1 }
 0x7b5   :  { %v5307_v39 = vmul.f32 -1.442695, %v7524_v24  ;;  %v5366_v16 = vadd.f32 %v5365_v59, %v5364_v27 }
 0x7b6   :  { %v5367_v0 = vpop.f32.mrf.mxu1 }
 0x7b7   :  { %5881 = vpow2.f32 %v5307_v39  ;;  %v7528_v36 = vadd.f32 %v5366_v16, %v7509_v19  ;;  %v4901_v39 = vmax.f32 %v7524_v24, 0.0 }
 0x7b8   :  { %v5876_v58 = vpop.eup %5875  ;;  %v5368_v21 = vpop.f32.mrf.mxu1 }
 0x7b9   :  { %v4802_v30 = vadd.f32 1.0, %v5876_v58  ;;  %v5308_v28 = vmul.f32 -1.442695, %v7528_v36  ;;  %v5369_v13 = vadd.f32 %v5368_v21, %v5367_v0 }
 0x7ba   :  { %v5370_v61 = vpop.f32.mrf.mxu1 }
 0x7bb   :  { %5883 = vrcp.f32 %v4802_v30  ;;  %v7532_v54 = vadd.f32 %v5369_v13, %v7509_v19 }
 0x7bc   :  { %v5878_v50 = vpop.eup %5877  ;;  %5885 = vpow2.f32 %v5308_v28  ;;  %v5371_v9 = vpop.f32.mrf.mxu1 }
 0x7bd   :  { %v4803_v6 = vadd.f32 1.0, %v5878_v50  ;;  %v5309_v46 = vmul.f32 -1.442695, %v7532_v54  ;;  %v5372_v12 = vadd.f32 %v5371_v9, %v5370_v61 }
 0x7be   :  { %v5373_v47 = vpop.f32.mrf.mxu1 }
 0x7bf   :  { %5887 = vrcp.f32 %v4803_v6  ;;  %v7536_v51 = vadd.f32 %v5372_v12, %v7509_v19  ;;  %v4902_v6 = vmax.f32 %v7528_v36, 0.0 }
 0x7c0   :  { %v5880_v17 = vpop.eup %5879  ;;  %5889 = vpow2.f32 %v5309_v46  ;;  %v5374_v5 = vpop.f32.mrf.mxu1 }
 0x7c1   :  { %v4804_v42 = vadd.f32 1.0, %v5880_v17  ;;  %v5310_v53 = vmul.f32 -1.442695, %v7536_v51  ;;  %v5375_v45 = vadd.f32 %v5374_v5, %v5373_v47 }
 0x7c2   :  { %v5376_v18 = vpop.f32.mrf.mxu1 }
 0x7c3   :  { %5891 = vrcp.f32 %v4804_v42  ;;  %v7543_v2 = vadd.f32 %v5375_v45, %v7509_v19 }
 0x7c4   :  { %v5882_v22 = vpop.eup %5881  ;;  %5893 = vpow2.f32 %v5310_v53  ;;  %v5377_v10 = vpop.f32.mrf.mxu1 }
 0x7c5   :  { %v4805_v29 = vadd.f32 1.0, %v5882_v22  ;;  %v5311_v11 = vmul.f32 -1.442695, %v7543_v2  ;;  %v5378_v33 = vadd.f32 %v5377_v10, %v5376_v18  ;;  %v4903_v18 = vmax.f32 %v7532_v54, 0.0 }
 0x7c6   :  { %v5379_v3 = vpop.f32.mrf.mxu1 }
 0x7c7   :  { %5895 = vrcp.f32 %v4805_v29  ;;  %v7549_v7 = vadd.f32 %v5378_v33, %v7509_v19 }
 0x7c8   :  { %v5884_v15 = vpop.eup %5883  ;;  %5897 = vpow2.f32 %v5311_v11  ;;  %v5380_v35 = vpop.f32.mrf.mxu1 }
 0x7c9   :  { %v5886_v14 = vpop.eup %5885  ;;  %v4930_v62 = vsel %vm4705_vm3, %v5884_v15, %v4898_v43  ;;  %v5312_v20 = vmul.f32 -1.442695, %v7549_v7  ;;  %v5381_v31 = vadd.f32 %v5380_v35, %v5379_v3  ;;  %v4904_v35 = vmax.f32 %v7536_v51, 0.0 }
 0x7ca   :  { %4963 = vst.msk [vmem:[%s7883_s20] sm:$0xff] %vm4962_vm4, %v4930_v62  ;;  %v4806_v44 = vadd.f32 1.0, %v5886_v14  ;;  %v5382_v25 = vpop.f32.mrf.mxu1 }
 0x7cb   :  { %5899 = vpow2.f32 %v5312_v20  ;;  %v7560_v32 = vadd.f32 %v5381_v31, %v7509_v19 }
 0x7cc   :  { %v5888_v60 = vpop.eup %5887  ;;  %5901 = vrcp.f32 %v4806_v44  ;;  %v5383_v52 = vpop.f32.mrf.mxu1 }
 0x7cd   :  { %v5890_v8 = vpop.eup %5889  ;;  %v4931_v56 = vsel %vm4705_vm3, %v5888_v60, %v4899_v37  ;;  %v5313_v38 = vmul.f32 -1.442695, %v7560_v32  ;;  %v5384_v55 = vadd.f32 %v5383_v52, %v5382_v25  ;;  %v4905_v52 = vmax.f32 %v7543_v2, 0.0 }
 0x7ce   :  { %4964 = vst.msk [vmem:[%s7883_s20 + $0x8] sm:$0xff] %vm4962_vm4, %v4931_v56  ;;  %v4807_v1 = vadd.f32 1.0, %v5890_v8  ;;  %v5385_v57 = vpop.f32.mrf.mxu1 }
 0x7cf   :  { %5903 = vpow2.f32 %v5313_v38  ;;  %v7571_v40 = vadd.f32 %v5384_v55, %v7509_v19 }
 0x7d0   :  { %v5892_v26 = vpop.eup %5891  ;;  %5905 = vrcp.f32 %v4807_v1  ;;  %v5386_v41 = vpop.f32.mrf.mxu1 }
 0x7d1   :  { %v5894_v34 = vpop.eup %5893  ;;  %v4932_v63 = vsel %vm4705_vm3, %v5892_v26, %v4900_v23  ;;  %v5314_v48 = vmul.f32 -1.442695, %v7571_v40  ;;  %v5387_v27 = vadd.f32 %v5386_v41, %v5385_v57  ;;  %v4906_v26 = vmax.f32 %v7549_v7, 0.0 }
 0x7d2   :  { %4965 = vst.msk [vmem:[%s7883_s20 + $0x10] sm:$0xff] %vm4962_vm4, %v4932_v63  ;;  %v4808_v4 = vadd.f32 1.0, %v5894_v34  ;;  %v5388_v59 = vpop.f32.mrf.mxu1 }
 0x7d3   :  { %5907 = vpow2.f32 %v5314_v48  ;;  %v7582_v16 = vadd.f32 %v5387_v27, %v7509_v19 }
 0x7d4   :  { %v5896_v0 = vpop.eup %5895  ;;  %5909 = vrcp.f32 %v4808_v4  ;;  %v5389_v58 = vpop.f32.mrf.mxu1 }
 0x7d5   :  { %v5898_v21 = vpop.eup %5897  ;;  %v4933_v30 = vsel %vm4705_vm3, %v5896_v0, %v4901_v39  ;;  %v5315_v28 = vmul.f32 -1.442695, %v7582_v16  ;;  %v5390_v13 = vadd.f32 %v5389_v58, %v5388_v59  ;;  %v4907_v39 = vmax.f32 %v7560_v32, 0.0 }
 0x7d6   :  { %4966 = vst.msk [vmem:[%s7883_s20 + $0x18] sm:$0xff] %vm4962_vm4, %v4933_v30  ;;  %v4809_v24 = vadd.f32 1.0, %v5898_v21  ;;  %v5391_v61 = vpop.f32.mrf.mxu1 }
 0x7d7   :  { %5911 = vpow2.f32 %v5315_v28  ;;  %v7592_v50 = vadd.f32 %v5390_v13, %v7509_v19 }
 0x7d8   :  { %v5900_v9 = vpop.eup %5899  ;;  %5913 = vrcp.f32 %v4809_v24  ;;  %v5392_v46 = vpop.f32.mrf.mxu1 }
 0x7d9   :  { %v5902_v12 = vpop.eup %5901  ;;  %v4810_v47 = vadd.f32 1.0, %v5900_v9  ;;  %v5316_v17 = vmul.f32 -1.442695, %v7592_v50  ;;  %v5393_v5 = vadd.f32 %v5392_v46, %v5391_v61  ;;  %v4908_v9 = vmax.f32 %v7571_v40, 0.0 }
 0x7da   :  { %v4934_v42 = vsel %vm4705_vm3, %v5902_v12, %v4902_v6  ;;  %v5394_v53 = vpop.f32.mrf.mxu1 }
 0x7db   :  { %4967 = vst.msk [vmem:[%s7883_s20 + $0x20] sm:$0xff] %vm4962_vm4, %v4934_v42  ;;  %5915 = vrcp.f32 %v4810_v47  ;;  %v7603_v45 = vadd.f32 %v5393_v5, %v7509_v19 }
 0x7dc   :  { %v5904_v36 = vpop.eup %5903  ;;  %5917 = vpow2.f32 %v5316_v17  ;;  %v5395_v22 = vpop.f32.mrf.mxu1 }
 0x7dd   :  { %v5906_v10 = vpop.eup %5905  ;;  %v4811_v29 = vadd.f32 1.0, %v5904_v36  ;;  %v5317_v11 = vmul.f32 -1.442695, %v7603_v45  ;;  %v5396_v33 = vadd.f32 %v5395_v22, %v5394_v53  ;;  %v4909_v36 = vmax.f32 %v7582_v16, 0.0 }
 0x7de   :  { %v4935_v3 = vsel %vm4705_vm3, %v5906_v10, %v4903_v18  ;;  %v5397_v43 = vpop.f32.mrf.mxu1 }
 0x7df   :  { %4968 = vst.msk [vmem:[%s7883_s20 + $0x28] sm:$0xff] %vm4962_vm4, %v4935_v3  ;;  %5919 = vrcp.f32 %v4811_v29  ;;  %v7614_v15 = vadd.f32 %v5396_v33, %v7509_v19 }
 0x7e0   :  { %v5908_v54 = vpop.eup %5907  ;;  %5921 = vpow2.f32 %v5317_v11  ;;  %v5398_v14 = vpop.f32.mrf.mxu1 }
 0x7e1   :  { %v5910_v62 = vpop.eup %5909  ;;  %v4812_v20 = vadd.f32 1.0, %v5908_v54  ;;  %v5318_v31 = vmul.f32 -1.442695, %v7614_v15  ;;  %v5399_v44 = vadd.f32 %v5398_v14, %v5397_v43  ;;  %v4910_v14 = vmax.f32 %v7592_v50, 0.0 }
 0x7e2   :  { %v4936_v25 = vsel %vm4705_vm3, %v5910_v62, %v4904_v35  ;;  %v5400_v37 = vpop.f32.mrf.mxu1 }
 0x7e3   :  { %4969 = vst.msk [vmem:[%s7883_s20 + $0x30] sm:$0xff] %vm4962_vm4, %v4936_v25  ;;  %5923 = vrcp.f32 %v4812_v20  ;;  %v7625_v60 = vadd.f32 %v5399_v44, %v7509_v19 }
 0x7e4   :  { %v5912_v51 = vpop.eup %5911  ;;  %5925 = vpow2.f32 %v5318_v31  ;;  %v5401_v8 = vpop.f32.mrf.mxu1 }
 0x7e5   :  { %v5914_v56 = vpop.eup %5913  ;;  %v4813_v38 = vadd.f32 1.0, %v5912_v51  ;;  %v5319_v55 = vmul.f32 -1.442695, %v7625_v60  ;;  %v5402_v1 = vadd.f32 %v5401_v8, %v5400_v37  ;;  %v4911_v8 = vmax.f32 %v7603_v45, 0.0 }
 0x7e6   :  { %v4937_v57 = vsel %vm4705_vm3, %v5914_v56, %v4905_v52  ;;  %v5403_v23 = vpop.f32.mrf.mxu1 }
 0x7e7   :  { %4970 = vst.msk [vmem:[%s7883_s20 + $0x38] sm:$0xff] %vm4962_vm4, %v4937_v57  ;;  %5927 = vrcp.f32 %v4813_v38  ;;  %v7637_v2 = vadd.f32 %v5402_v1, %v7509_v19 }
 0x7e8   :  { %v5916_v41 = vpop.eup %5915  ;;  %5929 = vpow2.f32 %v5319_v55  ;;  %v5404_v34 = vpop.f32.mrf.mxu1 }
 0x7e9   :  { %v5918_v63 = vpop.eup %5917  ;;  %v4938_v48 = vsel %vm4705_vm3, %v5916_v41, %v4906_v26  ;;  %v5320_v27 = vmul.f32 -1.442695, %v7637_v2  ;;  %v5405_v4 = vadd.f32 %v5404_v34, %v5403_v23  ;;  %v4912_v34 = vmax.f32 %v7614_v15, 0.0 }
 0x7ea   :  { %4971 = vst.msk [vmem:[%s7883_s20 + $0x40] sm:$0xff] %vm4962_vm4, %v4938_v48  ;;  %v4814_v7 = vadd.f32 1.0, %v5918_v63  ;;  %v5406_v59 = vpop.f32.mrf.mxu1 }
 0x7eb   :  { %5931 = vpow2.f32 %v5320_v27  ;;  %v7648_v0 = vadd.f32 %v5405_v4, %v7509_v19 }
 0x7ec   :  { %v5920_v58 = vpop.eup %5919  ;;  %5933 = vrcp.f32 %v4814_v7  ;;  %v5407_v21 = vpop.f32.mrf.mxu1 }
 0x7ed   :  { %v5922_v30 = vpop.eup %5921  ;;  %v4939_v28 = vsel %vm4705_vm3, %v5920_v58, %v4907_v39  ;;  %v5321_v13 = vmul.f32 -1.442695, %v7648_v0  ;;  %v5408_v24 = vadd.f32 %v5407_v21, %v5406_v59  ;;  %v4913_v21 = vmax.f32 %v7625_v60, 0.0 }
 0x7ee   :  { %4972 = vst.msk [vmem:[%s7883_s20 + $0x48] sm:$0xff] %vm4962_vm4, %v4939_v28  ;;  %v4815_v32 = vadd.f32 1.0, %v5922_v30  ;;  %v5409_v61 = vpop.f32.mrf.mxu1 }
 0x7ef   :  { %5935 = vpow2.f32 %v5321_v13  ;;  %v7659_v6 = vadd.f32 %v5408_v24, %v7509_v19 }
 0x7f0   :  { %v5924_v46 = vpop.eup %5923  ;;  %5937 = vrcp.f32 %v4815_v32  ;;  %v5410_v12 = vpop.f32.mrf.mxu1 }
 0x7f1   :  { %v5926_v47 = vpop.eup %5925  ;;  %v4940_v17 = vsel %vm4705_vm3, %v5924_v46, %v4908_v9  ;;  %v5322_v5 = vmul.f32 -1.442695, %v7659_v6  ;;  %v5411_v42 = vadd.f32 %v5410_v12, %v5409_v61  ;;  %v4914_v46 = vmax.f32 %v7637_v2, 0.0 }
 0x7f2   :  { %4973 = vst.msk [vmem:[%s7883_s20 + $0x50] sm:$0xff] %vm4962_vm4, %v4940_v17  ;;  %v4816_v40 = vadd.f32 1.0, %v5926_v47  ;;  %v5412_v53 = vpop.f32.mrf.mxu1 }
 0x7f3   :  { %5939 = vpow2.f32 %v5322_v5  ;;  %v7670_v18 = vadd.f32 %v5411_v42, %v7509_v19 }
 0x7f4   :  { %v5928_v22 = vpop.eup %5927  ;;  %5941 = vrcp.f32 %v4816_v40  ;;  %v5413_v10 = vpop.f32.mrf.mxu1 }
 0x7f5   :  { %v5930_v29 = vpop.eup %5929  ;;  %v4941_v11 = vsel %vm4705_vm3, %v5928_v22, %v4909_v36  ;;  %v5323_v33 = vmul.f32 -1.442695, %v7670_v18  ;;  %v5414_v3 = vadd.f32 %v5413_v10, %v5412_v53  ;;  %v4915_v36 = vmax.f32 %v7648_v0, 0.0 }
 0x7f6   :  { %4974 = vst.msk [vmem:[%s7883_s20 + $0x58] sm:$0xff] %vm4962_vm4, %v4941_v11  ;;  %v4817_v16 = vadd.f32 1.0, %v5930_v29  ;;  %v5415_v43 = vpop.f32.mrf.mxu1 }
 0x7f7   :  { %5943 = vpow2.f32 %v5323_v33  ;;  %v7680_v54 = vadd.f32 %v5414_v3, %v7509_v19 }
 0x7f8   :  { %v5932_v35 = vpop.eup %5931  ;;  %5945 = vrcp.f32 %v4817_v16  ;;  %v5416_v62 = vpop.f32.mrf.mxu1 }
 0x7f9   :  { %v5934_v20 = vpop.eup %5933  ;;  %v4818_v31 = vadd.f32 1.0, %v5932_v35  ;;  %v5324_v44 = vmul.f32 -1.442695, %v7680_v54  ;;  %v5417_v25 = vadd.f32 %v5416_v62, %v5415_v43  ;;  %v4916_v35 = vmax.f32 %v7659_v6, 0.0 }
 0x7fa   :  { %v4942_v37 = vsel %vm4705_vm3, %v5934_v20, %v4910_v14  ;;  %v5418_v51 = vpop.f32.mrf.mxu1 }
 0x7fb   :  { %4975 = vst.msk [vmem:[%s7883_s20 + $0x60] sm:$0xff] %vm4962_vm4, %v4942_v37  ;;  %5947 = vrcp.f32 %v4818_v31  ;;  %v7691_v52 = vadd.f32 %v5417_v25, %v7509_v19 }
 0x7fc   :  { %v5936_v50 = vpop.eup %5935  ;;  %5949 = vpow2.f32 %v5324_v44  ;;  %v5419_v56 = vpop.f32.mrf.mxu1 }
 0x7fd   :  { %v5938_v38 = vpop.eup %5937  ;;  %v4819_v55 = vadd.f32 1.0, %v5936_v50  ;;  %v5325_v1 = vmul.f32 -1.442695, %v7691_v52  ;;  %v5420_v57 = vadd.f32 %v5419_v56, %v5418_v51  ;;  %v4917_v50 = vmax.f32 %v7670_v18, 0.0 }
 0x7fe   :  { %v4943_v23 = vsel %vm4705_vm3, %v5938_v38, %v4911_v8  ;;  %v5421_v26 = vpop.f32.mrf.mxu1 }
 0x7ff   :  { %4976 = vst.msk [vmem:[%s7883_s20 + $0x68] sm:$0xff] %vm4962_vm4, %v4943_v23  ;;  %5951 = vrcp.f32 %v4819_v55  ;;  %v7702_v41 = vadd.f32 %v5420_v57, %v7509_v19 }
 0x800   :  { %v5940_v45 = vpop.eup %5939  ;;  %5953 = vpow2.f32 %v5325_v1  ;;  %v5422_v63 = vpop.f32.mrf.mxu1 }
 0x801   :  { %v5942_v48 = vpop.eup %5941  ;;  %v4820_v27 = vadd.f32 1.0, %v5940_v45  ;;  %v5326_v4 = vmul.f32 -1.442695, %v7702_v41  ;;  %v5423_v7 = vadd.f32 %v5422_v63, %v5421_v26  ;;  %v4918_v63 = vmax.f32 %v7680_v54, 0.0 }
 0x802   :  { %v4944_v59 = vsel %vm4705_vm3, %v5942_v48, %v4912_v34  ;;  %v5424_v39 = vpop.f32.mrf.mxu1 }
 0x803   :  { %4977 = vst.msk [vmem:[%s7883_s20 + $0x70] sm:$0xff] %vm4962_vm4, %v4944_v59  ;;  %5955 = vrcp.f32 %v4820_v27  ;;  %v7713_v58 = vadd.f32 %v5423_v7, %v7509_v19 }
 0x804   :  { %v5944_v15 = vpop.eup %5943  ;;  %5957 = vpow2.f32 %v5326_v4  ;;  %v5425_v30 = vpop.f32.mrf.mxu1 }
 0x805   :  { %v5946_v28 = vpop.eup %5945  ;;  %v4821_v13 = vadd.f32 1.0, %v5944_v15  ;;  %v5327_v24 = vmul.f32 -1.442695, %v7713_v58  ;;  %v5426_v32 = vadd.f32 %v5425_v30, %v5424_v39  ;;  %v4919_v30 = vmax.f32 %v7691_v52, 0.0 }
 0x806   :  { %v4945_v61 = vsel %vm4705_vm3, %v5946_v28, %v4913_v21  ;;  %v5427_v9 = vpop.f32.mrf.mxu1 }
 0x807   :  { %4978 = vst.msk [vmem:[%s7883_s20 + $0x78] sm:$0xff] %vm4962_vm4, %v4945_v61  ;;  %5959 = vrcp.f32 %v4821_v13  ;;  %v7725_v60 = vadd.f32 %v5426_v32, %v7509_v19 }
 0x808   :  { %v5948_v12 = vpop.eup %5947  ;;  %5961 = vpow2.f32 %v5327_v24  ;;  %v5428_v47 = vpop.f32.mrf.mxu1 }
 0x809   :  { %v5950_v17 = vpop.eup %5949  ;;  %v4946_v5 = vsel %vm4705_vm3, %v5948_v12, %v4914_v46  ;;  %v5328_v42 = vmul.f32 -1.442695, %v7725_v60  ;;  %v5429_v40 = vadd.f32 %v5428_v47, %v5427_v9  ;;  %v4920_v47 = vmax.f32 %v7702_v41, 0.0 }
 0x80a   :  { %4979 = vst.msk [vmem:[%s7883_s20 + $0x80] sm:$0xff] %vm4962_vm4, %v4946_v5  ;;  %v4822_v2 = vadd.f32 1.0, %v5950_v17  ;;  %v5430_v53 = vpop.f32.mrf.mxu1  ;;  %v4921_v41 = vmax.f32 %v7713_v58, 0.0 }
 0x80b   :  { %5963 = vpow2.f32 %v5328_v42  ;;  %v7736_v22 = vadd.f32 %v5429_v40, %v7509_v19 }
 0x80c   :  { %v5952_v10 = vpop.eup %5951  ;;  %5965 = vrcp.f32 %v4822_v2  ;;  %v5431_v29 = vpop.f32.mrf.mxu1 }
 0x80d   :  { %v5954_v11 = vpop.eup %5953  ;;  %v4947_v33 = vsel %vm4705_vm3, %v5952_v10, %v4915_v36  ;;  %v5329_v3 = vmul.f32 -1.442695, %v7736_v22  ;;  %v5432_v16 = vadd.f32 %v5431_v29, %v5430_v53 }
 0x80e   :  { %4980 = vst.msk [vmem:[%s7883_s20 + $0x88] sm:$0xff] %vm4962_vm4, %v4947_v33  ;;  %v4823_v0 = vadd.f32 1.0, %v5954_v11  ;;  %v5433_v43 = vpop.f32.mrf.mxu1 }
 0x80f   :  { %5967 = vpow2.f32 %v5329_v3  ;;  %v7747_v14 = vadd.f32 %v5432_v16, %v7509_v19  ;;  %v4922_v16 = vmax.f32 %v7725_v60, 0.0 }
 0x810   :  { %v5956_v62 = vpop.eup %5955  ;;  %5969 = vrcp.f32 %v4823_v0  ;;  %v5434_v20 = vpop.f32.mrf.mxu1 }
 0x811   :  { %v5958_v31 = vpop.eup %5957  ;;  %v4948_v44 = vsel %vm4705_vm3, %v5956_v62, %v4916_v35  ;;  %v5330_v25 = vmul.f32 -1.442695, %v7747_v14  ;;  %v5435_v37 = vadd.f32 %v5434_v20, %v5433_v43  ;;  %v4923_v35 = vmax.f32 %v7736_v22, 0.0 }
 0x812   :  { %4981 = vst.msk [vmem:[%s7883_s20 + $0x90] sm:$0xff] %vm4962_vm4, %v4948_v44  ;;  %v4824_v6 = vadd.f32 1.0, %v5958_v31  ;;  %v5436_v51 = vpop.f32.mrf.mxu1  ;;  %v4924_v44 = vmax.f32 %v7747_v14, 0.0 }
 0x813   :  { %5971 = vpow2.f32 %v5330_v25  ;;  %v7758_v8 = vadd.f32 %v5435_v37, %v7509_v19 }
 0x814   :  { %v5960_v56 = vpop.eup %5959  ;;  %5973 = vrcp.f32 %v4824_v6  ;;  %v5437_v38 = vpop.f32.mrf.mxu1 }
 0x815   :  { %v5962_v55 = vpop.eup %5961  ;;  %v4949_v1 = vsel %vm4705_vm3, %v5960_v56, %v4917_v50  ;;  %v5331_v57 = vmul.f32 -1.442695, %v7758_v8  ;;  %v5438_v23 = vadd.f32 %v5437_v38, %v5436_v51  ;;  %v4925_v51 = vmax.f32 %v7758_v8, 0.0 }
 0x816   :  { %4982 = vst.msk [vmem:[%s7883_s20 + $0x98] sm:$0xff] %vm4962_vm4, %v4949_v1  ;;  %v4825_v18 = vadd.f32 1.0, %v5962_v55  ;;  %v5439_v26 = vpop.f32.mrf.mxu1 }
 0x817   :  { %5975 = vpow2.f32 %v5331_v57  ;;  %v7768_v45 = vadd.f32 %v5438_v23, %v7509_v19 }
 0x818   :  { %v5964_v34 = vpop.eup %5963  ;;  %5977 = vrcp.f32 %v4825_v18  ;;  %v5440_v48 = vpop.f32.mrf.mxu1 }
 0x819   :  { %v5966_v27 = vpop.eup %5965  ;;  %v4826_v4 = vadd.f32 1.0, %v5964_v34  ;;  %v5332_v7 = vmul.f32 -1.442695, %v7768_v45  ;;  %v5441_v59 = vadd.f32 %v5440_v48, %v5439_v26  ;;  %v4926_v55 = vmax.f32 %v7768_v45, 0.0 }
 0x81a   :  { %v4950_v39 = vsel %vm4705_vm3, %v5966_v27, %v4918_v63  ;;  %v5442_v15 = vpop.f32.mrf.mxu1 }
 0x81b   :  { %4983 = vst.msk [vmem:[%s7883_s20 + $0xa0] sm:$0xff] %vm4962_vm4, %v4950_v39  ;;  %5979 = vrcp.f32 %v4826_v4  ;;  %v7779_v21 = vadd.f32 %v5441_v59, %v7509_v19 }
 0x81c   :  { %v5968_v54 = vpop.eup %5967  ;;  %5981 = vpow2.f32 %v5332_v7  ;;  %v5443_v28 = vpop.f32.mrf.mxu1 }
 0x81d   :  { %v5970_v13 = vpop.eup %5969  ;;  %v4827_v24 = vadd.f32 1.0, %v5968_v54  ;;  %v5333_v32 = vmul.f32 -1.442695, %v7779_v21  ;;  %v5444_v61 = vadd.f32 %v5443_v28, %v5442_v15  ;;  %v4927_v8 = vmax.f32 %v7779_v21, 0.0 }
 0x81e   :  { %v4951_v9 = vsel %vm4705_vm3, %v5970_v13, %v4919_v30  ;;  %v5445_v46 = vpop.f32.mrf.mxu1 }
 0x81f   :  { %4984 = vst.msk [vmem:[%s7883_s20 + $0xa8] sm:$0xff] %vm4962_vm4, %v4951_v9  ;;  %5983 = vrcp.f32 %v4827_v24  ;;  %v7790_v12 = vadd.f32 %v5444_v61, %v7509_v19 }
 0x820   :  { %v5972_v52 = vpop.eup %5971  ;;  %5985 = vpow2.f32 %v5333_v32  ;;  %v5446_v17 = vpop.f32.mrf.mxu1 }
 0x821   :  { %v5974_v5 = vpop.eup %5973  ;;  %v4828_v42 = vadd.f32 1.0, %v5972_v52  ;;  %v5334_v40 = vmul.f32 -1.442695, %v7790_v12  ;;  %v5447_v2 = vadd.f32 %v5446_v17, %v5445_v46  ;;  %v4928_v26 = vmax.f32 %v7790_v12, 0.0 }
 0x822   :  { %v4952_v53 = vsel %vm4705_vm3, %v5974_v5, %v4920_v47 }
 0x823   :  { %4985 = vst.msk [vmem:[%s7883_s20 + $0xb0] sm:$0xff] %vm4962_vm4, %v4952_v53  ;;  %5987 = vrcp.f32 %v4828_v42  ;;  %v4700_v36 = vadd.f32 %v5447_v2, %v7509_v19 }
 0x824   :  { %v5976_v10 = vpop.eup %5975  ;;  %5989 = vpow2.f32 %v5334_v40 }
 0x825   :  { %v5978_v29 = vpop.eup %5977  ;;  %v4829_v11 = vadd.f32 1.0, %v5976_v10  ;;  %v5335_v33 = vmul.f32 -1.442695, %v4700_v36  ;;  %v4929_v63 = vmax.f32 %v4700_v36, 0.0 }
 0x826   :  { %v4953_v3 = vsel %vm4705_vm3, %v5978_v29, %v4921_v41 }
 0x827   :  { %4986 = vst.msk [vmem:[%s7883_s20 + $0xb8] sm:$0xff] %vm4962_vm4, %v4953_v3  ;;  %5991 = vrcp.f32 %v4829_v11 }
 0x828   :  { %v5980_v0 = vpop.eup %5979  ;;  %5993 = vpow2.f32 %v5335_v33 }
 0x829   :  { %v5982_v19 = vpop.eup %5981  ;;  %v4954_v58 = vsel %vm4705_vm3, %v5980_v0, %v4922_v16 }
 0x82a   :  { %4987 = vst.msk [vmem:[%s7883_s20 + $0xc0] sm:$0xff] %vm4962_vm4, %v4954_v58  ;;  %v4830_v43 = vadd.f32 1.0, %v5982_v19 }
 0x82c   :  { %v5984_v62 = vpop.eup %5983  ;;  %5995 = vrcp.f32 %v4830_v43 }
 0x82d   :  { %v5986_v20 = vpop.eup %5985  ;;  %v4955_v60 = vsel %vm4705_vm3, %v5984_v62, %v4923_v35 }
 0x82e   :  { %4988 = vst.msk [vmem:[%s7883_s20 + $0xc8] sm:$0xff] %vm4962_vm4, %v4955_v60  ;;  %v4831_v31 = vadd.f32 1.0, %v5986_v20 }
 0x830   :  { %v5988_v25 = vpop.eup %5987  ;;  %5997 = vrcp.f32 %v4831_v31 }
 0x831   :  { %v5990_v37 = vpop.eup %5989  ;;  %v4956_v22 = vsel %vm4705_vm3, %v5988_v25, %v4924_v44 }
 0x832   :  { %4989 = vst.msk [vmem:[%s7883_s20 + $0xd0] sm:$0xff] %vm4962_vm4, %v4956_v22  ;;  %v4832_v6 = vadd.f32 1.0, %v5990_v37 }
 0x834   :  { %v5992_v50 = vpop.eup %5991  ;;  %5999 = vrcp.f32 %v4832_v6 }
 0x835   :  { %v5994_v56 = vpop.eup %5993  ;;  %v4957_v14 = vsel %vm4705_vm3, %v5992_v50, %v4925_v51 }
 0x836   :  { %4990 = vst.msk [vmem:[%s7883_s20 + $0xd8] sm:$0xff] %vm4962_vm4, %v4957_v14  ;;  %v4833_v38 = vadd.f32 1.0, %v5994_v56 }
 0x838   :  { %6001 = vrcp.f32 %v4833_v38 }
 0x839   :  { %v5996_v1 = vpop.eup %5995 }
 0x83a   :  { %v4958_v57 = vsel %vm4705_vm3, %v5996_v1, %v4926_v55 }
 0x83b   :  { %4991 = vst.msk [vmem:[%s7883_s20 + $0xe0] sm:$0xff] %vm4962_vm4, %v4958_v57 }
 0x83d   :  { %v5998_v23 = vpop.eup %5997 }
 0x83e   :  { %v4959_v18 = vsel %vm4705_vm3, %v5998_v23, %v4927_v8 }
 0x83f   :  { %4992 = vst.msk [vmem:[%s7883_s20 + $0xe8] sm:$0xff] %vm4962_vm4, %v4959_v18 }
 0x841   :  { %v6000_v45 = vpop.eup %5999 }
 0x842   :  { %v4960_v34 = vsel %vm4705_vm3, %v6000_v45, %v4928_v26 }
 0x843   :  { %4993 = vst.msk [vmem:[%s7883_s20 + $0xf0] sm:$0xff] %vm4962_vm4, %v4960_v34 }
 0x845   :  { %v6002_v48 = vpop.eup %6001 }
 0x846   :  { %v4961_v27 = vsel %vm4705_vm3, %v6002_v48, %v4929_v63 }
 0x847   :  { %4994 = vst.msk [vmem:[%s7883_s20 + $0xf8] sm:$0xff] %vm4962_vm4, %v4961_v27 }
 0x848   :  { %4999 = vsyncpa [#allocation3], 1 }
 0x849   :  { %5000 = vsyncpa [#allocation5], 1 }
 0x84a   :  { %5001 = vsyncpa [#allocation8], 1 }
 0x84b   :  { %5002 = vsyncpa [#allocation11], 1 }

</bundles_post_ra>
